<compile_context>
chip_gen: v6e
topology: v6e:2x2x1
jax: 0.10.0
libtpu: 0.0.40
codegen_flags: <defaults>
</compile_context>

<pallas_src>
import functools

import numpy as np
import jax
import jax.numpy as jnp
from jax.experimental import pallas as pl
from jax.experimental.pallas import tpu as pltpu

PRIMITIVES = ['skip_connect', '3d_conv_3x3']
BN_EPS = 1e-5


# ----------------------------------------------------------------------------
# Host-side helpers
# ----------------------------------------------------------------------------
def make_tap_offsets_and_mask(D, H, W, n_rep=1):
    """Flat lane offsets and zero-padding mask for a 'same' 3x3x3 conv on a
    (C, D*H*W) channels-first slab.

    mask has shape (27, n_rep * D*H*W): identical across channels, tiled per
    sample when the batch is folded into the lane axis (so the sample seam is
    also masked -> no cross-sample leakage from the circular rolls).
    """
    dhw = np.arange(D * H * W)
    dd = dhw // (H * W)
    hh = (dhw // W) % H
    ww = dhw % W
    offsets, rows = [], []
    for kd in (-1, 0, 1):
        for kh in (-1, 0, 1):
            for kw in (-1, 0, 1):
                offsets.append(kd * H * W + kh * W + kw)
                valid = ((dd + kd >= 0) & (dd + kd < D) &
                         (hh + kh >= 0) & (hh + kh < H) &
                         (ww + kw >= 0) & (ww + kw < W)).astype(np.float32)
                rows.append(valid)
    mask = np.stack(rows, axis=0)                       # (27, DHW)
    if n_rep > 1:
        mask = np.tile(mask, (1, n_rep))                # per-sample tiling
    return offsets, mask


def _plan_cell(cell_arch, steps, has_s0):
    """Static re-play of Cell.forward's control flow.

    Returns
      plan_steps:     list (per step) of ('skip'|'conv', state_idx, op_idx)
      convs_by_state: state_idx -> [op_idx, ...]  (ops sharing one im2col)
    """
    arch = np.asarray(cell_arch)
    branch_set = {int(b) for b in arch[:, 0]}
    plan_steps, convs_by_state = [], {}
    n_states, offset, ops_index = 2, 0, 0
    for _ in range(steps):
        contribs = []
        for j in range(n_states):
            if (offset + j) in branch_set:
                if (not has_s0) and j == 0:
                    ops_index += 1
                    continue
                prim = PRIMITIVES[int(arch[ops_index][1])]
                if prim == 'skip_connect':
                    contribs.append(('skip', j, None))
                else:
                    contribs.append(('conv', j, ops_index))
                    convs_by_state.setdefault(j, []).append(ops_index)
                ops_index += 1
        plan_steps.append(contribs)
        offset += n_states
        n_states += 1
    return plan_steps, convs_by_state


def _prefer_per_sample_grid():
    # v7x: 2 TensorCores per chip -> keep grid=(N,) "parallel" (1 sample / TC).
    # Single-TC chips (v5e/v6e): fold the batch into lanes instead (a per-sample
    # grid is just a serial loop there).
    try:
        kind = jax.devices()[0].device_kind.lower()
        return "v7" in kind
    except Exception:
        return False


# ----------------------------------------------------------------------------
# The fused cell-body Pallas kernel
# ----------------------------------------------------------------------------
def cell_body_pallas(s0, s1, params, *, cell_arch, steps, block_multiplier,
                     C_out, spatial, fold_batch):
    """Run the whole post-resize Cell body in one Pallas kernel.

    s0: (N, C_pp, DHW) f32 or None;  s1: (N, C_prev, DHW) f32.
    Returns (N, block_multiplier * C_out, DHW) f32.
    """
    D, H, W = spatial
    DHW = D * H * W
    N, C_prev = s1.shape[0], s1.shape[1]
    has_s0 = s0 is not None
    C_pp = s0.shape[1] if has_s0 else None
    apply_pre_pre = has_s0 and (C_pp != C_out)
    C_cat = block_multiplier * C_out

    plan_steps, convs_by_state = _plan_cell(cell_arch, steps, has_s0)

    L = N * DHW if fold_batch else DHW
    tap_offsets, mask_np = make_tap_offsets_and_mask(
        D, H, W, n_rep=(N if fold_batch else 1))

    # ---------------- assemble pallas inputs / specs ----------------
    inputs, in_specs = [], []

    def add(arr, spec):
        inputs.append(arr)
        in_specs.append(spec)
        return len(inputs) - 1

    def const_spec(shape):
        nd = len(shape)
        return pl.BlockSpec(shape, lambda n, _nd=nd: (0,) * _nd)

    if fold_batch:
        grid = (1,)
        def state_spec(c):
            return pl.BlockSpec((c, L), lambda n: (0, 0))
        s1_in = jnp.transpose(s1, (1, 0, 2)).reshape(C_prev, L)
        s0_in = (jnp.transpose(s0, (1, 0, 2)).reshape(C_pp, L)
                 if has_s0 else None)
        out_shape = jax.ShapeDtypeStruct((C_cat, L), jnp.float32)
        out_spec = pl.BlockSpec((C_cat, L), lambda n: (0, 0))
    else:
        grid = (N,)
        def state_spec(c):
            # batch dim squeezed -> kernel sees a (C, DHW) slab either way
            return pl.BlockSpec((None, c, L), lambda n: (n, 0, 0))
        s1_in, s0_in = s1, s0
        out_shape = jax.ShapeDtypeStruct((N, C_cat, L), jnp.float32)
        out_spec = pl.BlockSpec((None, C_cat, L), lambda n: (n, 0, 0))

    i_s0 = add(s0_in, state_spec(C_pp)) if has_s0 else None
    i_s1 = add(s1_in, state_spec(C_prev))
    mask_arr = jnp.asarray(mask_np)
    i_mask = add(mask_arr, const_spec(mask_arr.shape))

    i_wpp = i_bpp = None
    if apply_pre_pre:
        pp = params['pre_preprocess']
        i_wpp = add(pp['w'], const_spec(pp['w'].shape))
        i_bpp = add(pp['b'], const_spec(pp['b'].shape))
    pr = params['preprocess']
    i_wp = add(pr['w'], const_spec(pr['w'].shape))
    i_bp = add(pr['b'], const_spec(pr['b'].shape))

    # Stack BN-folded weights of convs that share the same input state so each
    # im2col feeds a single (G*C_out, 27*C) GEMM; split along kd for K=9*C
    # partial GEMMs (f32 accumulate).
    group_w_idx, group_b_idx, group_size = {}, {}, {}
    for state_idx, op_idxs in convs_by_state.items():
        ws = [params['ops'][oi]['w'] for oi in op_idxs]      # (C_out, 27*C) bf16
        bs = [params['ops'][oi]['b'] for oi in op_idxs]      # (C_out, 1)  f32
        G = len(op_idxs)
        Wst = jnp.concatenate(ws, axis=0) if G > 1 else ws[0]
        Bst = jnp.concatenate(bs, axis=0) if G > 1 else bs[0]
        # (G*C_out, 27*C) -> (3, G*C_out, 9*C)   [kd-major tap ordering]
        W3 = jnp.transpose(Wst.reshape(G * C_out, 3, 9 * C_out), (1, 0, 2))
        group_w_idx[state_idx] = add(W3, const_spec(W3.shape))
        group_b_idx[state_idx] = add(Bst, const_spec(Bst.shape))
        group_size[state_idx] = G

    # ---------------- the kernel body ----------------
    def kernel(*refs):
        out_ref = refs[-1]

        def conv1x1_bn_relu(x, wi, bi):
            # bf16 operands, f32 accumulation; BN scale already folded into w.
            y = jnp.dot(refs[wi][...], x.astype(jnp.bfloat16),
                        preferred_element_type=jnp.float32)
            return jnp.maximum(y + refs[bi][...], 0.0)

        def conv3x3_group(x, wi, bi, G):
            # In-VMEM im2col shared by all G convs on this state.  Per kd
            # tap-group: 9 lane-rolls (XLU), per-tap (1,L) pad-mask multiply,
            # cast to bf16, one MXU partial GEMM; accumulate in f32.
            acc = None
            for kd_i in range(3):
                pieces = []
                for kh_i in range(3):
                    for kw_i in range(3):
                        t = kd_i * 9 + kh_i * 3 + kw_i
                        off = tap_offsets[t]
                        if off == 0:
                            pieces.append(x)          # center tap: fully valid
                        else:
                            rolled = pltpu.roll(x, shift=(-off) % L, axis=1)
                            pieces.append(rolled * refs[i_mask][t:t + 1, :])
                cols = jnp.concatenate(pieces, axis=0).astype(jnp.bfloat16)
                part = jnp.dot(refs[wi][kd_i], cols,
                               preferred_element_type=jnp.float32)
                acc = part if acc is None else acc + part
            y = jnp.maximum(acc + refs[bi][...], 0.0)          # (G*C_out, L)
            return [y[g * C_out:(g + 1) * C_out, :] for g in range(G)]

        if has_s0:
            s0v = refs[i_s0][...]
            if apply_pre_pre:
                s0v = conv1x1_bn_relu(s0v, i_wpp, i_bpp)
        else:
            s0v = None
        s1v = conv1x1_bn_relu(refs[i_s1][...], i_wp, i_bp)

        states = [s0v, s1v]
        conv_results = {}                 # op_idx -> (C_out, L) result
        for contribs in plan_steps:
            assert contribs, "cell_arch selects no branch for this step"
            terms = []
            for kind, j, op_idx in contribs:
                h = states[j]
                if kind == 'skip':
                    terms.append(h)
                else:
                    if op_idx not in conv_results:
                        g_ops = convs_by_state[j]
                        res = conv3x3_group(h, group_w_idx[j], group_b_idx[j],
                                            group_size[j])
                        for oi, r in zip(g_ops, res):
                            conv_results[oi] = r
                    terms.append(conv_results[op_idx])
            s = terms[0]
            for t_ in terms[1:]:
                s = s + t_
            states.append(s)

        # Final channel concat written directly as lane-dense output slices.
        for i, st in enumerate(states[-block_multiplier:]):
            out_ref[i * C_out:(i + 1) * C_out, :] = st

    out = pl.pallas_call(
        kernel,
        out_shape=out_shape,
        grid=grid,
        in_specs=in_specs,
        out_specs=out_spec,
        compiler_params=pltpu.CompilerParams(
            dimension_semantics=("parallel",)),
    )(*inputs)

    if fold_batch:
        out = out.reshape(C_cat, N, DHW).transpose(1, 0, 2)   # (N, C_cat, DHW)
    return out


# ----------------------------------------------------------------------------
# Trilinear interpolation, align_corners=True (matrix-based, no gathers)
# ----------------------------------------------------------------------------
def _interp_matrix(old, new):
    if new == old:
        return None
    M = np.zeros((old, new), np.float32)
    if old == 1:
        M[0, :] = 1.0
        return M
    denom = max(new - 1, 1)
    pos = np.arange(new, dtype=np.float64) * ((old - 1) / denom)
    lo = np.clip(np.floor(pos).astype(np.int64), 0, old - 2)
    w = (pos - lo).astype(np.float32)
    cols = np.arange(new)
    M[lo, cols] += (1.0 - w)
    M[lo + 1, cols] += w
    return M


def trilinear_align_corners(x, size_dhw):
    """x: NCDHW, size_dhw: (D', H', W').  Separable matrix interpolation."""
    Md = _interp_matrix(x.shape[2], size_dhw[0])
    Mh = _interp_matrix(x.shape[3], size_dhw[1])
    Mw = _interp_matrix(x.shape[4], size_dhw[2])
    if Md is not None:
        x = jnp.einsum('ncdhw,dx->ncxhw', x, jnp.asarray(Md))
    if Mh is not None:
        x = jnp.einsum('ncdhw,hx->ncdxw', x, jnp.asarray(Mh))
    if Mw is not None:
        x = jnp.einsum('ncdhw,wx->ncdhx', x, jnp.asarray(Mw))
    return x


def scale_dimension(dim, scale):
    return int((float(dim) - 1.0) * scale + 1.0) if dim % 2 == 1 else int(float(dim) * scale)


# ----------------------------------------------------------------------------
# Parameter initialization (deterministic, synthetic; BN folded into weights)
# ----------------------------------------------------------------------------
def init_convbr(key, c_in, c_out, ksize):
    # TODO(synk): BatchNorm3d is realized in inference (running-stats) form;
    # training-mode batch statistics are not reproduced.
    k1, k2, k3, k4, k5 = jax.random.split(key, 5)
    fan_in = c_in * ksize ** 3
    w = jax.random.normal(k1, (c_out, c_in, ksize, ksize, ksize), jnp.float32)
    w = w / np.sqrt(fan_in)
    gamma = jax.random.uniform(k2, (c_out,), jnp.float32, 0.5, 1.5)
    beta = jax.random.normal(k3, (c_out,), jnp.float32) * 0.1
    mean = jax.random.normal(k4, (c_out,), jnp.float32) * 0.1
    var = jax.random.uniform(k5, (c_out,), jnp.float32, 0.5, 1.5)
    scale = gamma / jnp.sqrt(var + BN_EPS)
    bias = beta - mean * scale
    wf = w * scale[:, None, None, None, None]           # fold BN scale into conv
    if ksize == 1:
        w2d = wf.reshape(c_out, c_in)                   # (Cout, Cin)
    else:
        # (Cout, Cin, kd, kh, kw) -> (Cout, kd, kh, kw, Cin) -> (Cout, 27*Cin);
        # column ordering matches the kernel's tap-major in-VMEM im2col.
        w2d = jnp.transpose(wf, (0, 2, 3, 4, 1)).reshape(c_out, ksize ** 3 * c_in)
    # Ship weights in bf16 (MXU-native on v6e/v7x); bias stays f32.
    return {'w': w2d.astype(jnp.bfloat16), 'b': bias.reshape(c_out, 1)}


def init_cell_params(key, cell_arch, C_prev_prev, C_prev, C_out):
    keys = jax.random.split(key, 2 + len(cell_arch))
    params = {
        'pre_preprocess': init_convbr(keys[0], C_prev_prev, C_out, 1),
        'preprocess': init_convbr(keys[1], C_prev, C_out, 1),
        'ops': [],
    }
    for n, x in enumerate(cell_arch):
        prim = PRIMITIVES[int(x[1])]
        if prim == '3d_conv_3x3':
            params['ops'].append(init_convbr(keys[2 + n], C_out, C_out, 3))
        else:  # skip_connect, stride=1 -> Identity, no params
            params['ops'].append(None)
    return params


# ----------------------------------------------------------------------------
# Cell forward (mirrors the PyTorch control flow exactly; NCDHW interface)
# ----------------------------------------------------------------------------
def cell_forward(params, prev_prev_input, prev_input, *, cell_arch, steps,
                 block_multiplier, C_out, downup_sample, fold_batch):
    s0 = prev_prev_input
    s1 = prev_input

    if downup_sample != 0:
        scale = 0.5 if downup_sample == -1 else 2.0
        d = scale_dimension(s1.shape[2], scale)
        h = scale_dimension(s1.shape[3], scale)
        w = scale_dimension(s1.shape[4], scale)
        s1 = trilinear_align_corners(s1, (d, h, w))
    if s0 is not None and tuple(s0.shape[2:]) != tuple(s1.shape[2:]):
        s0 = trilinear_align_corners(s0, tuple(s1.shape[2:]))

    N, _, D, H, W = s1.shape
    DHW = D * H * W
    s1_flat = s1.reshape(N, s1.shape[1], DHW)
    s0_flat = None if s0 is None else s0.reshape(N, s0.shape[1], DHW)

    out = cell_body_pallas(
        s0_flat, s1_flat, params,
        cell_arch=cell_arch, steps=steps, block_multiplier=block_multiplier,
        C_out=C_out, spatial=(D, H, W), fold_batch=fold_batch)

    concat_feature = out.reshape(N, block_multiplier * C_out, D, H, W)
    return prev_input, concat_feature


# ----------------------------------------------------------------------------
# Example
# ----------------------------------------------------------------------------
if __name__ == "__main__":
    # Cell config (small, consistent with the module __init__)
    steps = 3
    block_multiplier = 3
    filter_multiplier = 8          # C_out = 8
    prev_filter_multiplier = 8     # C_prev = 24
    prev_prev_fmultiplier = 8      # C_prev_prev = 24
    downup_sample = -1             # s1 downsampled by 0.5 (trilinear, align_corners)
    C_out = filter_multiplier
    C_prev = block_multiplier * prev_filter_multiplier
    C_prev_prev = block_multiplier * prev_prev_fmultiplier

    # (branch_index, primitive_index); mixes '3d_conv_3x3' (1) and 'skip_connect' (0)
    cell_arch = np.array([[0, 1], [1, 0], [3, 1], [4, 0], [5, 1], [8, 1]],
                         dtype=np.int64)

    key = jax.random.PRNGKey(0)
    kp, k0, k1 = jax.random.split(key, 3)
    params = init_cell_params(kp, cell_arch, C_prev_prev, C_prev, C_out)

    # PyTorch-convention NCDHW inputs
    N = 2
    prev_input = jax.random.normal(k1, (N, C_prev, 8, 16, 16), jnp.float32)
    prev_prev_input = jax.random.normal(k0, (N, C_prev_prev, 4, 8, 8), jnp.float32)

    # Per-sample grid (2 TensorCores) only on v7x; fold batch into lanes otherwise.
    fold_batch = not _prefer_per_sample_grid()

    fwd = jax.jit(functools.partial(
        cell_forward, cell_arch=cell_arch, steps=steps,
        block_multiplier=block_multiplier, C_out=C_out,
        downup_sample=downup_sample, fold_batch=fold_batch))

    out_prev, concat = fwd(params, prev_prev_input, prev_input)
    jax.block_until_ready((out_prev, concat))

    assert out_prev.shape == prev_input.shape
    assert concat.shape == (N, block_multiplier * C_out, 4, 8, 8)
    print("KERNEL_OK")
</pallas_src>

<mosaic_0001>
module attributes {stable_mosaic.version = 11 : i64} {
  func.func @kernel(%arg0: i32, %arg1: memref<24x512xf32, #tpu.memory_space<vmem>>, %arg2: memref<24x512xf32, #tpu.memory_space<vmem>>, %arg3: memref<27x512xf32, #tpu.memory_space<vmem>>, %arg4: memref<8x24xbf16, #tpu.memory_space<vmem>>, %arg5: memref<8x1xf32, #tpu.memory_space<vmem>>, %arg6: memref<8x24xbf16, #tpu.memory_space<vmem>>, %arg7: memref<8x1xf32, #tpu.memory_space<vmem>>, %arg8: memref<3x16x72xbf16, #tpu.memory_space<vmem>>, %arg9: memref<16x1xf32, #tpu.memory_space<vmem>>, %arg10: memref<3x8x72xbf16, #tpu.memory_space<vmem>>, %arg11: memref<8x1xf32, #tpu.memory_space<vmem>>, %arg12: memref<3x8x72xbf16, #tpu.memory_space<vmem>>, %arg13: memref<8x1xf32, #tpu.memory_space<vmem>>, %arg14: memref<24x512xf32, #tpu.memory_space<vmem>>) attributes {dimension_semantics = [#tpu.dimension_semantics<parallel>], iteration_bounds = array<i64: 1>, scalar_prefetch = 0 : i64, scratch_operands = 0 : i64, tpu.core_type = #tpu.core_type<tc>, window_params = [{pipeline_mode = #tpu.pipeline_mode<synchronous>, transform_indices = @transform_0, window_bounds = array<i64: 24, 512>}, {pipeline_mode = #tpu.pipeline_mode<synchronous>, transform_indices = @transform_1, window_bounds = array<i64: 24, 512>}, {pipeline_mode = #tpu.pipeline_mode<synchronous>, transform_indices = @transform_2, window_bounds = array<i64: 27, 512>}, {pipeline_mode = #tpu.pipeline_mode<synchronous>, transform_indices = @transform_3, window_bounds = array<i64: 8, 24>}, {pipeline_mode = #tpu.pipeline_mode<synchronous>, transform_indices = @transform_4, window_bounds = array<i64: 8, 1>}, {pipeline_mode = #tpu.pipeline_mode<synchronous>, transform_indices = @transform_5, window_bounds = array<i64: 8, 24>}, {pipeline_mode = #tpu.pipeline_mode<synchronous>, transform_indices = @transform_6, window_bounds = array<i64: 8, 1>}, {pipeline_mode = #tpu.pipeline_mode<synchronous>, transform_indices = @transform_7, window_bounds = array<i64: 3, 16, 72>}, {pipeline_mode = #tpu.pipeline_mode<synchronous>, transform_indices = @transform_8, window_bounds = array<i64: 16, 1>}, {pipeline_mode = #tpu.pipeline_mode<synchronous>, transform_indices = @transform_9, window_bounds = array<i64: 3, 8, 72>}, {pipeline_mode = #tpu.pipeline_mode<synchronous>, transform_indices = @transform_10, window_bounds = array<i64: 8, 1>}, {pipeline_mode = #tpu.pipeline_mode<synchronous>, transform_indices = @transform_11, window_bounds = array<i64: 3, 8, 72>}, {pipeline_mode = #tpu.pipeline_mode<synchronous>, transform_indices = @transform_12, window_bounds = array<i64: 8, 1>}, {pipeline_mode = #tpu.pipeline_mode<synchronous>, transform_indices = @transform_13, window_bounds = array<i64: 24, 512>}]} {
    %c0 = arith.constant 0 : index
    %c0_0 = arith.constant 0 : index
    %0 = vector.load %arg1[%c0, %c0_0] : memref<24x512xf32, #tpu.memory_space<vmem>>, vector<24x512xf32>
    %c0_1 = arith.constant 0 : index
    %c0_2 = arith.constant 0 : index
    %1 = vector.load %arg4[%c0_1, %c0_2] : memref<8x24xbf16, #tpu.memory_space<vmem>>, vector<8x24xbf16>
    %2 = arith.truncf %0 : vector<24x512xf32> to vector<24x512xbf16>
    %cst = arith.constant dense<0.000000e+00> : vector<8x512xf32>
    %3 = tpu.matmul %1, %2, %cst {dimension_numbers = #tpu.dot_dimension_numbers<[1], [0], [0], [1], [0, 0, 1, 1], [], []>} : vector<8x24xbf16>, vector<24x512xbf16>, vector<8x512xf32> -> vector<8x512xf32>
    %c0_3 = arith.constant 0 : index
    %c0_4 = arith.constant 0 : index
    %4 = vector.load %arg5[%c0_3, %c0_4] : memref<8x1xf32, #tpu.memory_space<vmem>>, vector<8x1xf32>
    %5 = vector.broadcast %4 : vector<8x1xf32> to vector<8x512xf32>
    %6 = arith.addf %3, %5 : vector<8x512xf32>
    %cst_5 = arith.constant 0.000000e+00 : f32
    %7 = vector.broadcast %cst_5 : f32 to vector<8x512xf32>
    %8 = arith.maximumf %6, %7 : vector<8x512xf32>
    %c0_6 = arith.constant 0 : index
    %c0_7 = arith.constant 0 : index
    %9 = vector.load %arg2[%c0_6, %c0_7] : memref<24x512xf32, #tpu.memory_space<vmem>>, vector<24x512xf32>
    %c0_8 = arith.constant 0 : index
    %c0_9 = arith.constant 0 : index
    %10 = vector.load %arg6[%c0_8, %c0_9] : memref<8x24xbf16, #tpu.memory_space<vmem>>, vector<8x24xbf16>
    %11 = arith.truncf %9 : vector<24x512xf32> to vector<24x512xbf16>
    %cst_10 = arith.constant dense<0.000000e+00> : vector<8x512xf32>
    %12 = tpu.matmul %10, %11, %cst_10 {dimension_numbers = #tpu.dot_dimension_numbers<[1], [0], [0], [1], [0, 0, 1, 1], [], []>} : vector<8x24xbf16>, vector<24x512xbf16>, vector<8x512xf32> -> vector<8x512xf32>
    %c0_11 = arith.constant 0 : index
    %c0_12 = arith.constant 0 : index
    %13 = vector.load %arg7[%c0_11, %c0_12] : memref<8x1xf32, #tpu.memory_space<vmem>>, vector<8x1xf32>
    %14 = vector.broadcast %13 : vector<8x1xf32> to vector<8x512xf32>
    %15 = arith.addf %12, %14 : vector<8x512xf32>
    %cst_13 = arith.constant 0.000000e+00 : f32
    %16 = vector.broadcast %cst_13 : f32 to vector<8x512xf32>
    %17 = arith.maximumf %15, %16 : vector<8x512xf32>
    %c73_i32 = arith.constant 73 : i32
    %18 = tpu.dynamic_rotate %8 by %c73_i32 dim 1 : vector<8x512xf32>, i32 -> vector<8x512xf32>
    %c0_14 = arith.constant 0 : index
    %c0_15 = arith.constant 0 : index
    %19 = vector.load %arg3[%c0_14, %c0_15] : memref<27x512xf32, #tpu.memory_space<vmem>>, vector<1x512xf32>
    %20 = vector.broadcast %19 : vector<1x512xf32> to vector<8x512xf32>
    %21 = arith.mulf %18, %20 : vector<8x512xf32>
    %c72_i32 = arith.constant 72 : i32
    %22 = tpu.dynamic_rotate %8 by %c72_i32 dim 1 : vector<8x512xf32>, i32 -> vector<8x512xf32>
    %c1 = arith.constant 1 : index
    %c0_16 = arith.constant 0 : index
    %23 = vector.load %arg3[%c1, %c0_16] : memref<27x512xf32, #tpu.memory_space<vmem>>, vector<1x512xf32>
    %24 = vector.broadcast %23 : vector<1x512xf32> to vector<8x512xf32>
    %25 = arith.mulf %22, %24 : vector<8x512xf32>
    %c71_i32 = arith.constant 71 : i32
    %26 = tpu.dynamic_rotate %8 by %c71_i32 dim 1 : vector<8x512xf32>, i32 -> vector<8x512xf32>
    %c2 = arith.constant 2 : index
    %c0_17 = arith.constant 0 : index
    %27 = vector.load %arg3[%c2, %c0_17] : memref<27x512xf32, #tpu.memory_space<vmem>>, vector<1x512xf32>
    %28 = vector.broadcast %27 : vector<1x512xf32> to vector<8x512xf32>
    %29 = arith.mulf %26, %28 : vector<8x512xf32>
    %c65_i32 = arith.constant 65 : i32
    %30 = tpu.dynamic_rotate %8 by %c65_i32 dim 1 : vector<8x512xf32>, i32 -> vector<8x512xf32>
    %c3 = arith.constant 3 : index
    %c0_18 = arith.constant 0 : index
    %31 = vector.load %arg3[%c3, %c0_18] : memref<27x512xf32, #tpu.memory_space<vmem>>, vector<1x512xf32>
    %32 = vector.broadcast %31 : vector<1x512xf32> to vector<8x512xf32>
    %33 = arith.mulf %30, %32 : vector<8x512xf32>
    %c64_i32 = arith.constant 64 : i32
    %34 = tpu.dynamic_rotate %8 by %c64_i32 dim 1 : vector<8x512xf32>, i32 -> vector<8x512xf32>
    %c4 = arith.constant 4 : index
    %c0_19 = arith.constant 0 : index
    %35 = vector.load %arg3[%c4, %c0_19] : memref<27x512xf32, #tpu.memory_space<vmem>>, vector<1x512xf32>
    %36 = vector.broadcast %35 : vector<1x512xf32> to vector<8x512xf32>
    %37 = arith.mulf %34, %36 : vector<8x512xf32>
    %c63_i32 = arith.constant 63 : i32
    %38 = tpu.dynamic_rotate %8 by %c63_i32 dim 1 : vector<8x512xf32>, i32 -> vector<8x512xf32>
    %c5 = arith.constant 5 : index
    %c0_20 = arith.constant 0 : index
    %39 = vector.load %arg3[%c5, %c0_20] : memref<27x512xf32, #tpu.memory_space<vmem>>, vector<1x512xf32>
    %40 = vector.broadcast %39 : vector<1x512xf32> to vector<8x512xf32>
    %41 = arith.mulf %38, %40 : vector<8x512xf32>
    %c57_i32 = arith.constant 57 : i32
    %42 = tpu.dynamic_rotate %8 by %c57_i32 dim 1 : vector<8x512xf32>, i32 -> vector<8x512xf32>
    %c6 = arith.constant 6 : index
    %c0_21 = arith.constant 0 : index
    %43 = vector.load %arg3[%c6, %c0_21] : memref<27x512xf32, #tpu.memory_space<vmem>>, vector<1x512xf32>
    %44 = vector.broadcast %43 : vector<1x512xf32> to vector<8x512xf32>
    %45 = arith.mulf %42, %44 : vector<8x512xf32>
    %c56_i32 = arith.constant 56 : i32
    %46 = tpu.dynamic_rotate %8 by %c56_i32 dim 1 : vector<8x512xf32>, i32 -> vector<8x512xf32>
    %c7 = arith.constant 7 : index
    %c0_22 = arith.constant 0 : index
    %47 = vector.load %arg3[%c7, %c0_22] : memref<27x512xf32, #tpu.memory_space<vmem>>, vector<1x512xf32>
    %48 = vector.broadcast %47 : vector<1x512xf32> to vector<8x512xf32>
    %49 = arith.mulf %46, %48 : vector<8x512xf32>
    %c55_i32 = arith.constant 55 : i32
    %50 = tpu.dynamic_rotate %8 by %c55_i32 dim 1 : vector<8x512xf32>, i32 -> vector<8x512xf32>
    %c8 = arith.constant 8 : index
    %c0_23 = arith.constant 0 : index
    %51 = vector.load %arg3[%c8, %c0_23] : memref<27x512xf32, #tpu.memory_space<vmem>>, vector<1x512xf32>
    %52 = vector.broadcast %51 : vector<1x512xf32> to vector<8x512xf32>
    %53 = arith.mulf %50, %52 : vector<8x512xf32>
    %54 = tpu.concatenate %21, %25, %29, %33, %37, %41, %45, %49, %53 in 0 : vector<8x512xf32>, vector<8x512xf32>, vector<8x512xf32>, vector<8x512xf32>, vector<8x512xf32>, vector<8x512xf32>, vector<8x512xf32>, vector<8x512xf32>, vector<8x512xf32> -> vector<72x512xf32>
    %55 = arith.truncf %54 : vector<72x512xf32> to vector<72x512xbf16>
    %c0_24 = arith.constant 0 : index
    %c0_25 = arith.constant 0 : index
    %c0_26 = arith.constant 0 : index
    %56 = vector.load %arg8[%c0_24, %c0_25, %c0_26] : memref<3x16x72xbf16, #tpu.memory_space<vmem>>, vector<1x16x72xbf16>
    %57 = vector.shape_cast %56 : vector<1x16x72xbf16> to vector<16x72xbf16>
    %cst_27 = arith.constant dense<0.000000e+00> : vector<16x512xf32>
    %58 = tpu.matmul %57, %55, %cst_27 {dimension_numbers = #tpu.dot_dimension_numbers<[1], [0], [0], [1], [0, 0, 1, 1], [], []>} : vector<16x72xbf16>, vector<72x512xbf16>, vector<16x512xf32> -> vector<16x512xf32>
    %c9_i32 = arith.constant 9 : i32
    %59 = tpu.dynamic_rotate %8 by %c9_i32 dim 1 : vector<8x512xf32>, i32 -> vector<8x512xf32>
    %c9 = arith.constant 9 : index
    %c0_28 = arith.constant 0 : index
    %60 = vector.load %arg3[%c9, %c0_28] : memref<27x512xf32, #tpu.memory_space<vmem>>, vector<1x512xf32>
    %61 = vector.broadcast %60 : vector<1x512xf32> to vector<8x512xf32>
    %62 = arith.mulf %59, %61 : vector<8x512xf32>
    %c8_i32 = arith.constant 8 : i32
    %63 = tpu.dynamic_rotate %8 by %c8_i32 dim 1 : vector<8x512xf32>, i32 -> vector<8x512xf32>
    %c10 = arith.constant 10 : index
    %c0_29 = arith.constant 0 : index
    %64 = vector.load %arg3[%c10, %c0_29] : memref<27x512xf32, #tpu.memory_space<vmem>>, vector<1x512xf32>
    %65 = vector.broadcast %64 : vector<1x512xf32> to vector<8x512xf32>
    %66 = arith.mulf %63, %65 : vector<8x512xf32>
    %c7_i32 = arith.constant 7 : i32
    %67 = tpu.dynamic_rotate %8 by %c7_i32 dim 1 : vector<8x512xf32>, i32 -> vector<8x512xf32>
    %c11 = arith.constant 11 : index
    %c0_30 = arith.constant 0 : index
    %68 = vector.load %arg3[%c11, %c0_30] : memref<27x512xf32, #tpu.memory_space<vmem>>, vector<1x512xf32>
    %69 = vector.broadcast %68 : vector<1x512xf32> to vector<8x512xf32>
    %70 = arith.mulf %67, %69 : vector<8x512xf32>
    %c1_i32 = arith.constant 1 : i32
    %71 = tpu.dynamic_rotate %8 by %c1_i32 dim 1 : vector<8x512xf32>, i32 -> vector<8x512xf32>
    %c12 = arith.constant 12 : index
    %c0_31 = arith.constant 0 : index
    %72 = vector.load %arg3[%c12, %c0_31] : memref<27x512xf32, #tpu.memory_space<vmem>>, vector<1x512xf32>
    %73 = vector.broadcast %72 : vector<1x512xf32> to vector<8x512xf32>
    %74 = arith.mulf %71, %73 : vector<8x512xf32>
    %c511_i32 = arith.constant 511 : i32
    %75 = tpu.dynamic_rotate %8 by %c511_i32 dim 1 : vector<8x512xf32>, i32 -> vector<8x512xf32>
    %c14 = arith.constant 14 : index
    %c0_32 = arith.constant 0 : index
    %76 = vector.load %arg3[%c14, %c0_32] : memref<27x512xf32, #tpu.memory_space<vmem>>, vector<1x512xf32>
    %77 = vector.broadcast %76 : vector<1x512xf32> to vector<8x512xf32>
    %78 = arith.mulf %75, %77 : vector<8x512xf32>
    %c505_i32 = arith.constant 505 : i32
    %79 = tpu.dynamic_rotate %8 by %c505_i32 dim 1 : vector<8x512xf32>, i32 -> vector<8x512xf32>
    %c15 = arith.constant 15 : index
    %c0_33 = arith.constant 0 : index
    %80 = vector.load %arg3[%c15, %c0_33] : memref<27x512xf32, #tpu.memory_space<vmem>>, vector<1x512xf32>
    %81 = vector.broadcast %80 : vector<1x512xf32> to vector<8x512xf32>
    %82 = arith.mulf %79, %81 : vector<8x512xf32>
    %c504_i32 = arith.constant 504 : i32
    %83 = tpu.dynamic_rotate %8 by %c504_i32 dim 1 : vector<8x512xf32>, i32 -> vector<8x512xf32>
    %c16 = arith.constant 16 : index
    %c0_34 = arith.constant 0 : index
    %84 = vector.load %arg3[%c16, %c0_34] : memref<27x512xf32, #tpu.memory_space<vmem>>, vector<1x512xf32>
    %85 = vector.broadcast %84 : vector<1x512xf32> to vector<8x512xf32>
    %86 = arith.mulf %83, %85 : vector<8x512xf32>
    %c503_i32 = arith.constant 503 : i32
    %87 = tpu.dynamic_rotate %8 by %c503_i32 dim 1 : vector<8x512xf32>, i32 -> vector<8x512xf32>
    %c17 = arith.constant 17 : index
    %c0_35 = arith.constant 0 : index
    %88 = vector.load %arg3[%c17, %c0_35] : memref<27x512xf32, #tpu.memory_space<vmem>>, vector<1x512xf32>
    %89 = vector.broadcast %88 : vector<1x512xf32> to vector<8x512xf32>
    %90 = arith.mulf %87, %89 : vector<8x512xf32>
    %91 = tpu.concatenate %62, %66, %70, %74, %8, %78, %82, %86, %90 in 0 : vector<8x512xf32>, vector<8x512xf32>, vector<8x512xf32>, vector<8x512xf32>, vector<8x512xf32>, vector<8x512xf32>, vector<8x512xf32>, vector<8x512xf32>, vector<8x512xf32> -> vector<72x512xf32>
    %92 = arith.truncf %91 : vector<72x512xf32> to vector<72x512xbf16>
    %c1_36 = arith.constant 1 : index
    %c0_37 = arith.constant 0 : index
    %c0_38 = arith.constant 0 : index
    %93 = vector.load %arg8[%c1_36, %c0_37, %c0_38] : memref<3x16x72xbf16, #tpu.memory_space<vmem>>, vector<1x16x72xbf16>
    %94 = vector.shape_cast %93 : vector<1x16x72xbf16> to vector<16x72xbf16>
    %cst_39 = arith.constant dense<0.000000e+00> : vector<16x512xf32>
    %95 = tpu.matmul %94, %92, %cst_39 {dimension_numbers = #tpu.dot_dimension_numbers<[1], [0], [0], [1], [0, 0, 1, 1], [], []>} : vector<16x72xbf16>, vector<72x512xbf16>, vector<16x512xf32> -> vector<16x512xf32>
    %96 = arith.addf %58, %95 : vector<16x512xf32>
    %c457_i32 = arith.constant 457 : i32
    %97 = tpu.dynamic_rotate %8 by %c457_i32 dim 1 : vector<8x512xf32>, i32 -> vector<8x512xf32>
    %c18 = arith.constant 18 : index
    %c0_40 = arith.constant 0 : index
    %98 = vector.load %arg3[%c18, %c0_40] : memref<27x512xf32, #tpu.memory_space<vmem>>, vector<1x512xf32>
    %99 = vector.broadcast %98 : vector<1x512xf32> to vector<8x512xf32>
    %100 = arith.mulf %97, %99 : vector<8x512xf32>
    %c456_i32 = arith.constant 456 : i32
    %101 = tpu.dynamic_rotate %8 by %c456_i32 dim 1 : vector<8x512xf32>, i32 -> vector<8x512xf32>
    %c19 = arith.constant 19 : index
    %c0_41 = arith.constant 0 : index
    %102 = vector.load %arg3[%c19, %c0_41] : memref<27x512xf32, #tpu.memory_space<vmem>>, vector<1x512xf32>
    %103 = vector.broadcast %102 : vector<1x512xf32> to vector<8x512xf32>
    %104 = arith.mulf %101, %103 : vector<8x512xf32>
    %c455_i32 = arith.constant 455 : i32
    %105 = tpu.dynamic_rotate %8 by %c455_i32 dim 1 : vector<8x512xf32>, i32 -> vector<8x512xf32>
    %c20 = arith.constant 20 : index
    %c0_42 = arith.constant 0 : index
    %106 = vector.load %arg3[%c20, %c0_42] : memref<27x512xf32, #tpu.memory_space<vmem>>, vector<1x512xf32>
    %107 = vector.broadcast %106 : vector<1x512xf32> to vector<8x512xf32>
    %108 = arith.mulf %105, %107 : vector<8x512xf32>
    %c449_i32 = arith.constant 449 : i32
    %109 = tpu.dynamic_rotate %8 by %c449_i32 dim 1 : vector<8x512xf32>, i32 -> vector<8x512xf32>
    %c21 = arith.constant 21 : index
    %c0_43 = arith.constant 0 : index
    %110 = vector.load %arg3[%c21, %c0_43] : memref<27x512xf32, #tpu.memory_space<vmem>>, vector<1x512xf32>
    %111 = vector.broadcast %110 : vector<1x512xf32> to vector<8x512xf32>
    %112 = arith.mulf %109, %111 : vector<8x512xf32>
    %c448_i32 = arith.constant 448 : i32
    %113 = tpu.dynamic_rotate %8 by %c448_i32 dim 1 : vector<8x512xf32>, i32 -> vector<8x512xf32>
    %c22 = arith.constant 22 : index
    %c0_44 = arith.constant 0 : index
    %114 = vector.load %arg3[%c22, %c0_44] : memref<27x512xf32, #tpu.memory_space<vmem>>, vector<1x512xf32>
    %115 = vector.broadcast %114 : vector<1x512xf32> to vector<8x512xf32>
    %116 = arith.mulf %113, %115 : vector<8x512xf32>
    %c447_i32 = arith.constant 447 : i32
    %117 = tpu.dynamic_rotate %8 by %c447_i32 dim 1 : vector<8x512xf32>, i32 -> vector<8x512xf32>
    %c23 = arith.constant 23 : index
    %c0_45 = arith.constant 0 : index
    %118 = vector.load %arg3[%c23, %c0_45] : memref<27x512xf32, #tpu.memory_space<vmem>>, vector<1x512xf32>
    %119 = vector.broadcast %118 : vector<1x512xf32> to vector<8x512xf32>
    %120 = arith.mulf %117, %119 : vector<8x512xf32>
    %c441_i32 = arith.constant 441 : i32
    %121 = tpu.dynamic_rotate %8 by %c441_i32 dim 1 : vector<8x512xf32>, i32 -> vector<8x512xf32>
    %c24 = arith.constant 24 : index
    %c0_46 = arith.constant 0 : index
    %122 = vector.load %arg3[%c24, %c0_46] : memref<27x512xf32, #tpu.memory_space<vmem>>, vector<1x512xf32>
    %123 = vector.broadcast %122 : vector<1x512xf32> to vector<8x512xf32>
    %124 = arith.mulf %121, %123 : vector<8x512xf32>
    %c440_i32 = arith.constant 440 : i32
    %125 = tpu.dynamic_rotate %8 by %c440_i32 dim 1 : vector<8x512xf32>, i32 -> vector<8x512xf32>
    %c25 = arith.constant 25 : index
    %c0_47 = arith.constant 0 : index
    %126 = vector.load %arg3[%c25, %c0_47] : memref<27x512xf32, #tpu.memory_space<vmem>>, vector<1x512xf32>
    %127 = vector.broadcast %126 : vector<1x512xf32> to vector<8x512xf32>
    %128 = arith.mulf %125, %127 : vector<8x512xf32>
    %c439_i32 = arith.constant 439 : i32
    %129 = tpu.dynamic_rotate %8 by %c439_i32 dim 1 : vector<8x512xf32>, i32 -> vector<8x512xf32>
    %c26 = arith.constant 26 : index
    %c0_48 = arith.constant 0 : index
    %130 = vector.load %arg3[%c26, %c0_48] : memref<27x512xf32, #tpu.memory_space<vmem>>, vector<1x512xf32>
    %131 = vector.broadcast %130 : vector<1x512xf32> to vector<8x512xf32>
    %132 = arith.mulf %129, %131 : vector<8x512xf32>
    %133 = tpu.concatenate %100, %104, %108, %112, %116, %120, %124, %128, %132 in 0 : vector<8x512xf32>, vector<8x512xf32>, vector<8x512xf32>, vector<8x512xf32>, vector<8x512xf32>, vector<8x512xf32>, vector<8x512xf32>, vector<8x512xf32>, vector<8x512xf32> -> vector<72x512xf32>
    %134 = arith.truncf %133 : vector<72x512xf32> to vector<72x512xbf16>
    %c2_49 = arith.constant 2 : index
    %c0_50 = arith.constant 0 : index
    %c0_51 = arith.constant 0 : index
    %135 = vector.load %arg8[%c2_49, %c0_50, %c0_51] : memref<3x16x72xbf16, #tpu.memory_space<vmem>>, vector<1x16x72xbf16>
    %136 = vector.shape_cast %135 : vector<1x16x72xbf16> to vector<16x72xbf16>
    %cst_52 = arith.constant dense<0.000000e+00> : vector<16x512xf32>
    %137 = tpu.matmul %136, %134, %cst_52 {dimension_numbers = #tpu.dot_dimension_numbers<[1], [0], [0], [1], [0, 0, 1, 1], [], []>} : vector<16x72xbf16>, vector<72x512xbf16>, vector<16x512xf32> -> vector<16x512xf32>
    %138 = arith.addf %96, %137 : vector<16x512xf32>
    %c0_53 = arith.constant 0 : index
    %c0_54 = arith.constant 0 : index
    %139 = vector.load %arg9[%c0_53, %c0_54] : memref<16x1xf32, #tpu.memory_space<vmem>>, vector<16x1xf32>
    %140 = vector.broadcast %139 : vector<16x1xf32> to vector<16x512xf32>
    %141 = arith.addf %138, %140 : vector<16x512xf32>
    %cst_55 = arith.constant 0.000000e+00 : f32
    %142 = vector.broadcast %cst_55 : f32 to vector<16x512xf32>
    %143 = arith.maximumf %141, %142 : vector<16x512xf32>
    %144 = vector.extract_strided_slice %143 {offsets = [0, 0], sizes = [8, 512], strides = [1, 1]} : vector<16x512xf32> to vector<8x512xf32>
    %145 = vector.extract_strided_slice %143 {offsets = [8, 0], sizes = [8, 512], strides = [1, 1]} : vector<16x512xf32> to vector<8x512xf32>
    %146 = arith.addf %144, %17 : vector<8x512xf32>
    %c73_i32_56 = arith.constant 73 : i32
    %147 = tpu.dynamic_rotate %17 by %c73_i32_56 dim 1 : vector<8x512xf32>, i32 -> vector<8x512xf32>
    %c0_57 = arith.constant 0 : index
    %c0_58 = arith.constant 0 : index
    %148 = vector.load %arg3[%c0_57, %c0_58] : memref<27x512xf32, #tpu.memory_space<vmem>>, vector<1x512xf32>
    %149 = vector.broadcast %148 : vector<1x512xf32> to vector<8x512xf32>
    %150 = arith.mulf %147, %149 : vector<8x512xf32>
    %c72_i32_59 = arith.constant 72 : i32
    %151 = tpu.dynamic_rotate %17 by %c72_i32_59 dim 1 : vector<8x512xf32>, i32 -> vector<8x512xf32>
    %c1_60 = arith.constant 1 : index
    %c0_61 = arith.constant 0 : index
    %152 = vector.load %arg3[%c1_60, %c0_61] : memref<27x512xf32, #tpu.memory_space<vmem>>, vector<1x512xf32>
    %153 = vector.broadcast %152 : vector<1x512xf32> to vector<8x512xf32>
    %154 = arith.mulf %151, %153 : vector<8x512xf32>
    %c71_i32_62 = arith.constant 71 : i32
    %155 = tpu.dynamic_rotate %17 by %c71_i32_62 dim 1 : vector<8x512xf32>, i32 -> vector<8x512xf32>
    %c2_63 = arith.constant 2 : index
    %c0_64 = arith.constant 0 : index
    %156 = vector.load %arg3[%c2_63, %c0_64] : memref<27x512xf32, #tpu.memory_space<vmem>>, vector<1x512xf32>
    %157 = vector.broadcast %156 : vector<1x512xf32> to vector<8x512xf32>
    %158 = arith.mulf %155, %157 : vector<8x512xf32>
    %c65_i32_65 = arith.constant 65 : i32
    %159 = tpu.dynamic_rotate %17 by %c65_i32_65 dim 1 : vector<8x512xf32>, i32 -> vector<8x512xf32>
    %c3_66 = arith.constant 3 : index
    %c0_67 = arith.constant 0 : index
    %160 = vector.load %arg3[%c3_66, %c0_67] : memref<27x512xf32, #tpu.memory_space<vmem>>, vector<1x512xf32>
    %161 = vector.broadcast %160 : vector<1x512xf32> to vector<8x512xf32>
    %162 = arith.mulf %159, %161 : vector<8x512xf32>
    %c64_i32_68 = arith.constant 64 : i32
    %163 = tpu.dynamic_rotate %17 by %c64_i32_68 dim 1 : vector<8x512xf32>, i32 -> vector<8x512xf32>
    %c4_69 = arith.constant 4 : index
    %c0_70 = arith.constant 0 : index
    %164 = vector.load %arg3[%c4_69, %c0_70] : memref<27x512xf32, #tpu.memory_space<vmem>>, vector<1x512xf32>
    %165 = vector.broadcast %164 : vector<1x512xf32> to vector<8x512xf32>
    %166 = arith.mulf %163, %165 : vector<8x512xf32>
    %c63_i32_71 = arith.constant 63 : i32
    %167 = tpu.dynamic_rotate %17 by %c63_i32_71 dim 1 : vector<8x512xf32>, i32 -> vector<8x512xf32>
    %c5_72 = arith.constant 5 : index
    %c0_73 = arith.constant 0 : index
    %168 = vector.load %arg3[%c5_72, %c0_73] : memref<27x512xf32, #tpu.memory_space<vmem>>, vector<1x512xf32>
    %169 = vector.broadcast %168 : vector<1x512xf32> to vector<8x512xf32>
    %170 = arith.mulf %167, %169 : vector<8x512xf32>
    %c57_i32_74 = arith.constant 57 : i32
    %171 = tpu.dynamic_rotate %17 by %c57_i32_74 dim 1 : vector<8x512xf32>, i32 -> vector<8x512xf32>
    %c6_75 = arith.constant 6 : index
    %c0_76 = arith.constant 0 : index
    %172 = vector.load %arg3[%c6_75, %c0_76] : memref<27x512xf32, #tpu.memory_space<vmem>>, vector<1x512xf32>
    %173 = vector.broadcast %172 : vector<1x512xf32> to vector<8x512xf32>
    %174 = arith.mulf %171, %173 : vector<8x512xf32>
    %c56_i32_77 = arith.constant 56 : i32
    %175 = tpu.dynamic_rotate %17 by %c56_i32_77 dim 1 : vector<8x512xf32>, i32 -> vector<8x512xf32>
    %c7_78 = arith.constant 7 : index
    %c0_79 = arith.constant 0 : index
    %176 = vector.load %arg3[%c7_78, %c0_79] : memref<27x512xf32, #tpu.memory_space<vmem>>, vector<1x512xf32>
    %177 = vector.broadcast %176 : vector<1x512xf32> to vector<8x512xf32>
    %178 = arith.mulf %175, %177 : vector<8x512xf32>
    %c55_i32_80 = arith.constant 55 : i32
    %179 = tpu.dynamic_rotate %17 by %c55_i32_80 dim 1 : vector<8x512xf32>, i32 -> vector<8x512xf32>
    %c8_81 = arith.constant 8 : index
    %c0_82 = arith.constant 0 : index
    %180 = vector.load %arg3[%c8_81, %c0_82] : memref<27x512xf32, #tpu.memory_space<vmem>>, vector<1x512xf32>
    %181 = vector.broadcast %180 : vector<1x512xf32> to vector<8x512xf32>
    %182 = arith.mulf %179, %181 : vector<8x512xf32>
    %183 = tpu.concatenate %150, %154, %158, %162, %166, %170, %174, %178, %182 in 0 : vector<8x512xf32>, vector<8x512xf32>, vector<8x512xf32>, vector<8x512xf32>, vector<8x512xf32>, vector<8x512xf32>, vector<8x512xf32>, vector<8x512xf32>, vector<8x512xf32> -> vector<72x512xf32>
    %184 = arith.truncf %183 : vector<72x512xf32> to vector<72x512xbf16>
    %c0_83 = arith.constant 0 : index
    %c0_84 = arith.constant 0 : index
    %c0_85 = arith.constant 0 : index
    %185 = vector.load %arg10[%c0_83, %c0_84, %c0_85] : memref<3x8x72xbf16, #tpu.memory_space<vmem>>, vector<1x8x72xbf16>
    %186 = vector.shape_cast %185 : vector<1x8x72xbf16> to vector<8x72xbf16>
    %cst_86 = arith.constant dense<0.000000e+00> : vector<8x512xf32>
    %187 = tpu.matmul %186, %184, %cst_86 {dimension_numbers = #tpu.dot_dimension_numbers<[1], [0], [0], [1], [0, 0, 1, 1], [], []>} : vector<8x72xbf16>, vector<72x512xbf16>, vector<8x512xf32> -> vector<8x512xf32>
    %c9_i32_87 = arith.constant 9 : i32
    %188 = tpu.dynamic_rotate %17 by %c9_i32_87 dim 1 : vector<8x512xf32>, i32 -> vector<8x512xf32>
    %c9_88 = arith.constant 9 : index
    %c0_89 = arith.constant 0 : index
    %189 = vector.load %arg3[%c9_88, %c0_89] : memref<27x512xf32, #tpu.memory_space<vmem>>, vector<1x512xf32>
    %190 = vector.broadcast %189 : vector<1x512xf32> to vector<8x512xf32>
    %191 = arith.mulf %188, %190 : vector<8x512xf32>
    %c8_i32_90 = arith.constant 8 : i32
    %192 = tpu.dynamic_rotate %17 by %c8_i32_90 dim 1 : vector<8x512xf32>, i32 -> vector<8x512xf32>
    %c10_91 = arith.constant 10 : index
    %c0_92 = arith.constant 0 : index
    %193 = vector.load %arg3[%c10_91, %c0_92] : memref<27x512xf32, #tpu.memory_space<vmem>>, vector<1x512xf32>
    %194 = vector.broadcast %193 : vector<1x512xf32> to vector<8x512xf32>
    %195 = arith.mulf %192, %194 : vector<8x512xf32>
    %c7_i32_93 = arith.constant 7 : i32
    %196 = tpu.dynamic_rotate %17 by %c7_i32_93 dim 1 : vector<8x512xf32>, i32 -> vector<8x512xf32>
    %c11_94 = arith.constant 11 : index
    %c0_95 = arith.constant 0 : index
    %197 = vector.load %arg3[%c11_94, %c0_95] : memref<27x512xf32, #tpu.memory_space<vmem>>, vector<1x512xf32>
    %198 = vector.broadcast %197 : vector<1x512xf32> to vector<8x512xf32>
    %199 = arith.mulf %196, %198 : vector<8x512xf32>
    %c1_i32_96 = arith.constant 1 : i32
    %200 = tpu.dynamic_rotate %17 by %c1_i32_96 dim 1 : vector<8x512xf32>, i32 -> vector<8x512xf32>
    %c12_97 = arith.constant 12 : index
    %c0_98 = arith.constant 0 : index
    %201 = vector.load %arg3[%c12_97, %c0_98] : memref<27x512xf32, #tpu.memory_space<vmem>>, vector<1x512xf32>
    %202 = vector.broadcast %201 : vector<1x512xf32> to vector<8x512xf32>
    %203 = arith.mulf %200, %202 : vector<8x512xf32>
    %c511_i32_99 = arith.constant 511 : i32
    %204 = tpu.dynamic_rotate %17 by %c511_i32_99 dim 1 : vector<8x512xf32>, i32 -> vector<8x512xf32>
    %c14_100 = arith.constant 14 : index
    %c0_101 = arith.constant 0 : index
    %205 = vector.load %arg3[%c14_100, %c0_101] : memref<27x512xf32, #tpu.memory_space<vmem>>, vector<1x512xf32>
    %206 = vector.broadcast %205 : vector<1x512xf32> to vector<8x512xf32>
    %207 = arith.mulf %204, %206 : vector<8x512xf32>
    %c505_i32_102 = arith.constant 505 : i32
    %208 = tpu.dynamic_rotate %17 by %c505_i32_102 dim 1 : vector<8x512xf32>, i32 -> vector<8x512xf32>
    %c15_103 = arith.constant 15 : index
    %c0_104 = arith.constant 0 : index
    %209 = vector.load %arg3[%c15_103, %c0_104] : memref<27x512xf32, #tpu.memory_space<vmem>>, vector<1x512xf32>
    %210 = vector.broadcast %209 : vector<1x512xf32> to vector<8x512xf32>
    %211 = arith.mulf %208, %210 : vector<8x512xf32>
    %c504_i32_105 = arith.constant 504 : i32
    %212 = tpu.dynamic_rotate %17 by %c504_i32_105 dim 1 : vector<8x512xf32>, i32 -> vector<8x512xf32>
    %c16_106 = arith.constant 16 : index
    %c0_107 = arith.constant 0 : index
    %213 = vector.load %arg3[%c16_106, %c0_107] : memref<27x512xf32, #tpu.memory_space<vmem>>, vector<1x512xf32>
    %214 = vector.broadcast %213 : vector<1x512xf32> to vector<8x512xf32>
    %215 = arith.mulf %212, %214 : vector<8x512xf32>
    %c503_i32_108 = arith.constant 503 : i32
    %216 = tpu.dynamic_rotate %17 by %c503_i32_108 dim 1 : vector<8x512xf32>, i32 -> vector<8x512xf32>
    %c17_109 = arith.constant 17 : index
    %c0_110 = arith.constant 0 : index
    %217 = vector.load %arg3[%c17_109, %c0_110] : memref<27x512xf32, #tpu.memory_space<vmem>>, vector<1x512xf32>
    %218 = vector.broadcast %217 : vector<1x512xf32> to vector<8x512xf32>
    %219 = arith.mulf %216, %218 : vector<8x512xf32>
    %220 = tpu.concatenate %191, %195, %199, %203, %17, %207, %211, %215, %219 in 0 : vector<8x512xf32>, vector<8x512xf32>, vector<8x512xf32>, vector<8x512xf32>, vector<8x512xf32>, vector<8x512xf32>, vector<8x512xf32>, vector<8x512xf32>, vector<8x512xf32> -> vector<72x512xf32>
    %221 = arith.truncf %220 : vector<72x512xf32> to vector<72x512xbf16>
    %c1_111 = arith.constant 1 : index
    %c0_112 = arith.constant 0 : index
    %c0_113 = arith.constant 0 : index
    %222 = vector.load %arg10[%c1_111, %c0_112, %c0_113] : memref<3x8x72xbf16, #tpu.memory_space<vmem>>, vector<1x8x72xbf16>
    %223 = vector.shape_cast %222 : vector<1x8x72xbf16> to vector<8x72xbf16>
    %cst_114 = arith.constant dense<0.000000e+00> : vector<8x512xf32>
    %224 = tpu.matmul %223, %221, %cst_114 {dimension_numbers = #tpu.dot_dimension_numbers<[1], [0], [0], [1], [0, 0, 1, 1], [], []>} : vector<8x72xbf16>, vector<72x512xbf16>, vector<8x512xf32> -> vector<8x512xf32>
    %225 = arith.addf %187, %224 : vector<8x512xf32>
    %c457_i32_115 = arith.constant 457 : i32
    %226 = tpu.dynamic_rotate %17 by %c457_i32_115 dim 1 : vector<8x512xf32>, i32 -> vector<8x512xf32>
    %c18_116 = arith.constant 18 : index
    %c0_117 = arith.constant 0 : index
    %227 = vector.load %arg3[%c18_116, %c0_117] : memref<27x512xf32, #tpu.memory_space<vmem>>, vector<1x512xf32>
    %228 = vector.broadcast %227 : vector<1x512xf32> to vector<8x512xf32>
    %229 = arith.mulf %226, %228 : vector<8x512xf32>
    %c456_i32_118 = arith.constant 456 : i32
    %230 = tpu.dynamic_rotate %17 by %c456_i32_118 dim 1 : vector<8x512xf32>, i32 -> vector<8x512xf32>
    %c19_119 = arith.constant 19 : index
    %c0_120 = arith.constant 0 : index
    %231 = vector.load %arg3[%c19_119, %c0_120] : memref<27x512xf32, #tpu.memory_space<vmem>>, vector<1x512xf32>
    %232 = vector.broadcast %231 : vector<1x512xf32> to vector<8x512xf32>
    %233 = arith.mulf %230, %232 : vector<8x512xf32>
    %c455_i32_121 = arith.constant 455 : i32
    %234 = tpu.dynamic_rotate %17 by %c455_i32_121 dim 1 : vector<8x512xf32>, i32 -> vector<8x512xf32>
    %c20_122 = arith.constant 20 : index
    %c0_123 = arith.constant 0 : index
    %235 = vector.load %arg3[%c20_122, %c0_123] : memref<27x512xf32, #tpu.memory_space<vmem>>, vector<1x512xf32>
    %236 = vector.broadcast %235 : vector<1x512xf32> to vector<8x512xf32>
    %237 = arith.mulf %234, %236 : vector<8x512xf32>
    %c449_i32_124 = arith.constant 449 : i32
    %238 = tpu.dynamic_rotate %17 by %c449_i32_124 dim 1 : vector<8x512xf32>, i32 -> vector<8x512xf32>
    %c21_125 = arith.constant 21 : index
    %c0_126 = arith.constant 0 : index
    %239 = vector.load %arg3[%c21_125, %c0_126] : memref<27x512xf32, #tpu.memory_space<vmem>>, vector<1x512xf32>
    %240 = vector.broadcast %239 : vector<1x512xf32> to vector<8x512xf32>
    %241 = arith.mulf %238, %240 : vector<8x512xf32>
    %c448_i32_127 = arith.constant 448 : i32
    %242 = tpu.dynamic_rotate %17 by %c448_i32_127 dim 1 : vector<8x512xf32>, i32 -> vector<8x512xf32>
    %c22_128 = arith.constant 22 : index
    %c0_129 = arith.constant 0 : index
    %243 = vector.load %arg3[%c22_128, %c0_129] : memref<27x512xf32, #tpu.memory_space<vmem>>, vector<1x512xf32>
    %244 = vector.broadcast %243 : vector<1x512xf32> to vector<8x512xf32>
    %245 = arith.mulf %242, %244 : vector<8x512xf32>
    %c447_i32_130 = arith.constant 447 : i32
    %246 = tpu.dynamic_rotate %17 by %c447_i32_130 dim 1 : vector<8x512xf32>, i32 -> vector<8x512xf32>
    %c23_131 = arith.constant 23 : index
    %c0_132 = arith.constant 0 : index
    %247 = vector.load %arg3[%c23_131, %c0_132] : memref<27x512xf32, #tpu.memory_space<vmem>>, vector<1x512xf32>
    %248 = vector.broadcast %247 : vector<1x512xf32> to vector<8x512xf32>
    %249 = arith.mulf %246, %248 : vector<8x512xf32>
    %c441_i32_133 = arith.constant 441 : i32
    %250 = tpu.dynamic_rotate %17 by %c441_i32_133 dim 1 : vector<8x512xf32>, i32 -> vector<8x512xf32>
    %c24_134 = arith.constant 24 : index
    %c0_135 = arith.constant 0 : index
    %251 = vector.load %arg3[%c24_134, %c0_135] : memref<27x512xf32, #tpu.memory_space<vmem>>, vector<1x512xf32>
    %252 = vector.broadcast %251 : vector<1x512xf32> to vector<8x512xf32>
    %253 = arith.mulf %250, %252 : vector<8x512xf32>
    %c440_i32_136 = arith.constant 440 : i32
    %254 = tpu.dynamic_rotate %17 by %c440_i32_136 dim 1 : vector<8x512xf32>, i32 -> vector<8x512xf32>
    %c25_137 = arith.constant 25 : index
    %c0_138 = arith.constant 0 : index
    %255 = vector.load %arg3[%c25_137, %c0_138] : memref<27x512xf32, #tpu.memory_space<vmem>>, vector<1x512xf32>
    %256 = vector.broadcast %255 : vector<1x512xf32> to vector<8x512xf32>
    %257 = arith.mulf %254, %256 : vector<8x512xf32>
    %c439_i32_139 = arith.constant 439 : i32
    %258 = tpu.dynamic_rotate %17 by %c439_i32_139 dim 1 : vector<8x512xf32>, i32 -> vector<8x512xf32>
    %c26_140 = arith.constant 26 : index
    %c0_141 = arith.constant 0 : index
    %259 = vector.load %arg3[%c26_140, %c0_141] : memref<27x512xf32, #tpu.memory_space<vmem>>, vector<1x512xf32>
    %260 = vector.broadcast %259 : vector<1x512xf32> to vector<8x512xf32>
    %261 = arith.mulf %258, %260 : vector<8x512xf32>
    %262 = tpu.concatenate %229, %233, %237, %241, %245, %249, %253, %257, %261 in 0 : vector<8x512xf32>, vector<8x512xf32>, vector<8x512xf32>, vector<8x512xf32>, vector<8x512xf32>, vector<8x512xf32>, vector<8x512xf32>, vector<8x512xf32>, vector<8x512xf32> -> vector<72x512xf32>
    %263 = arith.truncf %262 : vector<72x512xf32> to vector<72x512xbf16>
    %c2_142 = arith.constant 2 : index
    %c0_143 = arith.constant 0 : index
    %c0_144 = arith.constant 0 : index
    %264 = vector.load %arg10[%c2_142, %c0_143, %c0_144] : memref<3x8x72xbf16, #tpu.memory_space<vmem>>, vector<1x8x72xbf16>
    %265 = vector.shape_cast %264 : vector<1x8x72xbf16> to vector<8x72xbf16>
    %cst_145 = arith.constant dense<0.000000e+00> : vector<8x512xf32>
    %266 = tpu.matmul %265, %263, %cst_145 {dimension_numbers = #tpu.dot_dimension_numbers<[1], [0], [0], [1], [0, 0, 1, 1], [], []>} : vector<8x72xbf16>, vector<72x512xbf16>, vector<8x512xf32> -> vector<8x512xf32>
    %267 = arith.addf %225, %266 : vector<8x512xf32>
    %c0_146 = arith.constant 0 : index
    %c0_147 = arith.constant 0 : index
    %268 = vector.load %arg11[%c0_146, %c0_147] : memref<8x1xf32, #tpu.memory_space<vmem>>, vector<8x1xf32>
    %269 = vector.broadcast %268 : vector<8x1xf32> to vector<8x512xf32>
    %270 = arith.addf %267, %269 : vector<8x512xf32>
    %cst_148 = arith.constant 0.000000e+00 : f32
    %271 = vector.broadcast %cst_148 : f32 to vector<8x512xf32>
    %272 = arith.maximumf %270, %271 : vector<8x512xf32>
    %273 = arith.addf %272, %146 : vector<8x512xf32>
    %c73_i32_149 = arith.constant 73 : i32
    %274 = tpu.dynamic_rotate %273 by %c73_i32_149 dim 1 : vector<8x512xf32>, i32 -> vector<8x512xf32>
    %c0_150 = arith.constant 0 : index
    %c0_151 = arith.constant 0 : index
    %275 = vector.load %arg3[%c0_150, %c0_151] : memref<27x512xf32, #tpu.memory_space<vmem>>, vector<1x512xf32>
    %276 = vector.broadcast %275 : vector<1x512xf32> to vector<8x512xf32>
    %277 = arith.mulf %274, %276 : vector<8x512xf32>
    %c72_i32_152 = arith.constant 72 : i32
    %278 = tpu.dynamic_rotate %273 by %c72_i32_152 dim 1 : vector<8x512xf32>, i32 -> vector<8x512xf32>
    %c1_153 = arith.constant 1 : index
    %c0_154 = arith.constant 0 : index
    %279 = vector.load %arg3[%c1_153, %c0_154] : memref<27x512xf32, #tpu.memory_space<vmem>>, vector<1x512xf32>
    %280 = vector.broadcast %279 : vector<1x512xf32> to vector<8x512xf32>
    %281 = arith.mulf %278, %280 : vector<8x512xf32>
    %c71_i32_155 = arith.constant 71 : i32
    %282 = tpu.dynamic_rotate %273 by %c71_i32_155 dim 1 : vector<8x512xf32>, i32 -> vector<8x512xf32>
    %c2_156 = arith.constant 2 : index
    %c0_157 = arith.constant 0 : index
    %283 = vector.load %arg3[%c2_156, %c0_157] : memref<27x512xf32, #tpu.memory_space<vmem>>, vector<1x512xf32>
    %284 = vector.broadcast %283 : vector<1x512xf32> to vector<8x512xf32>
    %285 = arith.mulf %282, %284 : vector<8x512xf32>
    %c65_i32_158 = arith.constant 65 : i32
    %286 = tpu.dynamic_rotate %273 by %c65_i32_158 dim 1 : vector<8x512xf32>, i32 -> vector<8x512xf32>
    %c3_159 = arith.constant 3 : index
    %c0_160 = arith.constant 0 : index
    %287 = vector.load %arg3[%c3_159, %c0_160] : memref<27x512xf32, #tpu.memory_space<vmem>>, vector<1x512xf32>
    %288 = vector.broadcast %287 : vector<1x512xf32> to vector<8x512xf32>
    %289 = arith.mulf %286, %288 : vector<8x512xf32>
    %c64_i32_161 = arith.constant 64 : i32
    %290 = tpu.dynamic_rotate %273 by %c64_i32_161 dim 1 : vector<8x512xf32>, i32 -> vector<8x512xf32>
    %c4_162 = arith.constant 4 : index
    %c0_163 = arith.constant 0 : index
    %291 = vector.load %arg3[%c4_162, %c0_163] : memref<27x512xf32, #tpu.memory_space<vmem>>, vector<1x512xf32>
    %292 = vector.broadcast %291 : vector<1x512xf32> to vector<8x512xf32>
    %293 = arith.mulf %290, %292 : vector<8x512xf32>
    %c63_i32_164 = arith.constant 63 : i32
    %294 = tpu.dynamic_rotate %273 by %c63_i32_164 dim 1 : vector<8x512xf32>, i32 -> vector<8x512xf32>
    %c5_165 = arith.constant 5 : index
    %c0_166 = arith.constant 0 : index
    %295 = vector.load %arg3[%c5_165, %c0_166] : memref<27x512xf32, #tpu.memory_space<vmem>>, vector<1x512xf32>
    %296 = vector.broadcast %295 : vector<1x512xf32> to vector<8x512xf32>
    %297 = arith.mulf %294, %296 : vector<8x512xf32>
    %c57_i32_167 = arith.constant 57 : i32
    %298 = tpu.dynamic_rotate %273 by %c57_i32_167 dim 1 : vector<8x512xf32>, i32 -> vector<8x512xf32>
    %c6_168 = arith.constant 6 : index
    %c0_169 = arith.constant 0 : index
    %299 = vector.load %arg3[%c6_168, %c0_169] : memref<27x512xf32, #tpu.memory_space<vmem>>, vector<1x512xf32>
    %300 = vector.broadcast %299 : vector<1x512xf32> to vector<8x512xf32>
    %301 = arith.mulf %298, %300 : vector<8x512xf32>
    %c56_i32_170 = arith.constant 56 : i32
    %302 = tpu.dynamic_rotate %273 by %c56_i32_170 dim 1 : vector<8x512xf32>, i32 -> vector<8x512xf32>
    %c7_171 = arith.constant 7 : index
    %c0_172 = arith.constant 0 : index
    %303 = vector.load %arg3[%c7_171, %c0_172] : memref<27x512xf32, #tpu.memory_space<vmem>>, vector<1x512xf32>
    %304 = vector.broadcast %303 : vector<1x512xf32> to vector<8x512xf32>
    %305 = arith.mulf %302, %304 : vector<8x512xf32>
    %c55_i32_173 = arith.constant 55 : i32
    %306 = tpu.dynamic_rotate %273 by %c55_i32_173 dim 1 : vector<8x512xf32>, i32 -> vector<8x512xf32>
    %c8_174 = arith.constant 8 : index
    %c0_175 = arith.constant 0 : index
    %307 = vector.load %arg3[%c8_174, %c0_175] : memref<27x512xf32, #tpu.memory_space<vmem>>, vector<1x512xf32>
    %308 = vector.broadcast %307 : vector<1x512xf32> to vector<8x512xf32>
    %309 = arith.mulf %306, %308 : vector<8x512xf32>
    %310 = tpu.concatenate %277, %281, %285, %289, %293, %297, %301, %305, %309 in 0 : vector<8x512xf32>, vector<8x512xf32>, vector<8x512xf32>, vector<8x512xf32>, vector<8x512xf32>, vector<8x512xf32>, vector<8x512xf32>, vector<8x512xf32>, vector<8x512xf32> -> vector<72x512xf32>
    %311 = arith.truncf %310 : vector<72x512xf32> to vector<72x512xbf16>
    %c0_176 = arith.constant 0 : index
    %c0_177 = arith.constant 0 : index
    %c0_178 = arith.constant 0 : index
    %312 = vector.load %arg12[%c0_176, %c0_177, %c0_178] : memref<3x8x72xbf16, #tpu.memory_space<vmem>>, vector<1x8x72xbf16>
    %313 = vector.shape_cast %312 : vector<1x8x72xbf16> to vector<8x72xbf16>
    %cst_179 = arith.constant dense<0.000000e+00> : vector<8x512xf32>
    %314 = tpu.matmul %313, %311, %cst_179 {dimension_numbers = #tpu.dot_dimension_numbers<[1], [0], [0], [1], [0, 0, 1, 1], [], []>} : vector<8x72xbf16>, vector<72x512xbf16>, vector<8x512xf32> -> vector<8x512xf32>
    %c9_i32_180 = arith.constant 9 : i32
    %315 = tpu.dynamic_rotate %273 by %c9_i32_180 dim 1 : vector<8x512xf32>, i32 -> vector<8x512xf32>
    %c9_181 = arith.constant 9 : index
    %c0_182 = arith.constant 0 : index
    %316 = vector.load %arg3[%c9_181, %c0_182] : memref<27x512xf32, #tpu.memory_space<vmem>>, vector<1x512xf32>
    %317 = vector.broadcast %316 : vector<1x512xf32> to vector<8x512xf32>
    %318 = arith.mulf %315, %317 : vector<8x512xf32>
    %c8_i32_183 = arith.constant 8 : i32
    %319 = tpu.dynamic_rotate %273 by %c8_i32_183 dim 1 : vector<8x512xf32>, i32 -> vector<8x512xf32>
    %c10_184 = arith.constant 10 : index
    %c0_185 = arith.constant 0 : index
    %320 = vector.load %arg3[%c10_184, %c0_185] : memref<27x512xf32, #tpu.memory_space<vmem>>, vector<1x512xf32>
    %321 = vector.broadcast %320 : vector<1x512xf32> to vector<8x512xf32>
    %322 = arith.mulf %319, %321 : vector<8x512xf32>
    %c7_i32_186 = arith.constant 7 : i32
    %323 = tpu.dynamic_rotate %273 by %c7_i32_186 dim 1 : vector<8x512xf32>, i32 -> vector<8x512xf32>
    %c11_187 = arith.constant 11 : index
    %c0_188 = arith.constant 0 : index
    %324 = vector.load %arg3[%c11_187, %c0_188] : memref<27x512xf32, #tpu.memory_space<vmem>>, vector<1x512xf32>
    %325 = vector.broadcast %324 : vector<1x512xf32> to vector<8x512xf32>
    %326 = arith.mulf %323, %325 : vector<8x512xf32>
    %c1_i32_189 = arith.constant 1 : i32
    %327 = tpu.dynamic_rotate %273 by %c1_i32_189 dim 1 : vector<8x512xf32>, i32 -> vector<8x512xf32>
    %c12_190 = arith.constant 12 : index
    %c0_191 = arith.constant 0 : index
    %328 = vector.load %arg3[%c12_190, %c0_191] : memref<27x512xf32, #tpu.memory_space<vmem>>, vector<1x512xf32>
    %329 = vector.broadcast %328 : vector<1x512xf32> to vector<8x512xf32>
    %330 = arith.mulf %327, %329 : vector<8x512xf32>
    %c511_i32_192 = arith.constant 511 : i32
    %331 = tpu.dynamic_rotate %273 by %c511_i32_192 dim 1 : vector<8x512xf32>, i32 -> vector<8x512xf32>
    %c14_193 = arith.constant 14 : index
    %c0_194 = arith.constant 0 : index
    %332 = vector.load %arg3[%c14_193, %c0_194] : memref<27x512xf32, #tpu.memory_space<vmem>>, vector<1x512xf32>
    %333 = vector.broadcast %332 : vector<1x512xf32> to vector<8x512xf32>
    %334 = arith.mulf %331, %333 : vector<8x512xf32>
    %c505_i32_195 = arith.constant 505 : i32
    %335 = tpu.dynamic_rotate %273 by %c505_i32_195 dim 1 : vector<8x512xf32>, i32 -> vector<8x512xf32>
    %c15_196 = arith.constant 15 : index
    %c0_197 = arith.constant 0 : index
    %336 = vector.load %arg3[%c15_196, %c0_197] : memref<27x512xf32, #tpu.memory_space<vmem>>, vector<1x512xf32>
    %337 = vector.broadcast %336 : vector<1x512xf32> to vector<8x512xf32>
    %338 = arith.mulf %335, %337 : vector<8x512xf32>
    %c504_i32_198 = arith.constant 504 : i32
    %339 = tpu.dynamic_rotate %273 by %c504_i32_198 dim 1 : vector<8x512xf32>, i32 -> vector<8x512xf32>
    %c16_199 = arith.constant 16 : index
    %c0_200 = arith.constant 0 : index
    %340 = vector.load %arg3[%c16_199, %c0_200] : memref<27x512xf32, #tpu.memory_space<vmem>>, vector<1x512xf32>
    %341 = vector.broadcast %340 : vector<1x512xf32> to vector<8x512xf32>
    %342 = arith.mulf %339, %341 : vector<8x512xf32>
    %c503_i32_201 = arith.constant 503 : i32
    %343 = tpu.dynamic_rotate %273 by %c503_i32_201 dim 1 : vector<8x512xf32>, i32 -> vector<8x512xf32>
    %c17_202 = arith.constant 17 : index
    %c0_203 = arith.constant 0 : index
    %344 = vector.load %arg3[%c17_202, %c0_203] : memref<27x512xf32, #tpu.memory_space<vmem>>, vector<1x512xf32>
    %345 = vector.broadcast %344 : vector<1x512xf32> to vector<8x512xf32>
    %346 = arith.mulf %343, %345 : vector<8x512xf32>
    %347 = tpu.concatenate %318, %322, %326, %330, %273, %334, %338, %342, %346 in 0 : vector<8x512xf32>, vector<8x512xf32>, vector<8x512xf32>, vector<8x512xf32>, vector<8x512xf32>, vector<8x512xf32>, vector<8x512xf32>, vector<8x512xf32>, vector<8x512xf32> -> vector<72x512xf32>
    %348 = arith.truncf %347 : vector<72x512xf32> to vector<72x512xbf16>
    %c1_204 = arith.constant 1 : index
    %c0_205 = arith.constant 0 : index
    %c0_206 = arith.constant 0 : index
    %349 = vector.load %arg12[%c1_204, %c0_205, %c0_206] : memref<3x8x72xbf16, #tpu.memory_space<vmem>>, vector<1x8x72xbf16>
    %350 = vector.shape_cast %349 : vector<1x8x72xbf16> to vector<8x72xbf16>
    %cst_207 = arith.constant dense<0.000000e+00> : vector<8x512xf32>
    %351 = tpu.matmul %350, %348, %cst_207 {dimension_numbers = #tpu.dot_dimension_numbers<[1], [0], [0], [1], [0, 0, 1, 1], [], []>} : vector<8x72xbf16>, vector<72x512xbf16>, vector<8x512xf32> -> vector<8x512xf32>
    %352 = arith.addf %314, %351 : vector<8x512xf32>
    %c457_i32_208 = arith.constant 457 : i32
    %353 = tpu.dynamic_rotate %273 by %c457_i32_208 dim 1 : vector<8x512xf32>, i32 -> vector<8x512xf32>
    %c18_209 = arith.constant 18 : index
    %c0_210 = arith.constant 0 : index
    %354 = vector.load %arg3[%c18_209, %c0_210] : memref<27x512xf32, #tpu.memory_space<vmem>>, vector<1x512xf32>
    %355 = vector.broadcast %354 : vector<1x512xf32> to vector<8x512xf32>
    %356 = arith.mulf %353, %355 : vector<8x512xf32>
    %c456_i32_211 = arith.constant 456 : i32
    %357 = tpu.dynamic_rotate %273 by %c456_i32_211 dim 1 : vector<8x512xf32>, i32 -> vector<8x512xf32>
    %c19_212 = arith.constant 19 : index
    %c0_213 = arith.constant 0 : index
    %358 = vector.load %arg3[%c19_212, %c0_213] : memref<27x512xf32, #tpu.memory_space<vmem>>, vector<1x512xf32>
    %359 = vector.broadcast %358 : vector<1x512xf32> to vector<8x512xf32>
    %360 = arith.mulf %357, %359 : vector<8x512xf32>
    %c455_i32_214 = arith.constant 455 : i32
    %361 = tpu.dynamic_rotate %273 by %c455_i32_214 dim 1 : vector<8x512xf32>, i32 -> vector<8x512xf32>
    %c20_215 = arith.constant 20 : index
    %c0_216 = arith.constant 0 : index
    %362 = vector.load %arg3[%c20_215, %c0_216] : memref<27x512xf32, #tpu.memory_space<vmem>>, vector<1x512xf32>
    %363 = vector.broadcast %362 : vector<1x512xf32> to vector<8x512xf32>
    %364 = arith.mulf %361, %363 : vector<8x512xf32>
    %c449_i32_217 = arith.constant 449 : i32
    %365 = tpu.dynamic_rotate %273 by %c449_i32_217 dim 1 : vector<8x512xf32>, i32 -> vector<8x512xf32>
    %c21_218 = arith.constant 21 : index
    %c0_219 = arith.constant 0 : index
    %366 = vector.load %arg3[%c21_218, %c0_219] : memref<27x512xf32, #tpu.memory_space<vmem>>, vector<1x512xf32>
    %367 = vector.broadcast %366 : vector<1x512xf32> to vector<8x512xf32>
    %368 = arith.mulf %365, %367 : vector<8x512xf32>
    %c448_i32_220 = arith.constant 448 : i32
    %369 = tpu.dynamic_rotate %273 by %c448_i32_220 dim 1 : vector<8x512xf32>, i32 -> vector<8x512xf32>
    %c22_221 = arith.constant 22 : index
    %c0_222 = arith.constant 0 : index
    %370 = vector.load %arg3[%c22_221, %c0_222] : memref<27x512xf32, #tpu.memory_space<vmem>>, vector<1x512xf32>
    %371 = vector.broadcast %370 : vector<1x512xf32> to vector<8x512xf32>
    %372 = arith.mulf %369, %371 : vector<8x512xf32>
    %c447_i32_223 = arith.constant 447 : i32
    %373 = tpu.dynamic_rotate %273 by %c447_i32_223 dim 1 : vector<8x512xf32>, i32 -> vector<8x512xf32>
    %c23_224 = arith.constant 23 : index
    %c0_225 = arith.constant 0 : index
    %374 = vector.load %arg3[%c23_224, %c0_225] : memref<27x512xf32, #tpu.memory_space<vmem>>, vector<1x512xf32>
    %375 = vector.broadcast %374 : vector<1x512xf32> to vector<8x512xf32>
    %376 = arith.mulf %373, %375 : vector<8x512xf32>
    %c441_i32_226 = arith.constant 441 : i32
    %377 = tpu.dynamic_rotate %273 by %c441_i32_226 dim 1 : vector<8x512xf32>, i32 -> vector<8x512xf32>
    %c24_227 = arith.constant 24 : index
    %c0_228 = arith.constant 0 : index
    %378 = vector.load %arg3[%c24_227, %c0_228] : memref<27x512xf32, #tpu.memory_space<vmem>>, vector<1x512xf32>
    %379 = vector.broadcast %378 : vector<1x512xf32> to vector<8x512xf32>
    %380 = arith.mulf %377, %379 : vector<8x512xf32>
    %c440_i32_229 = arith.constant 440 : i32
    %381 = tpu.dynamic_rotate %273 by %c440_i32_229 dim 1 : vector<8x512xf32>, i32 -> vector<8x512xf32>
    %c25_230 = arith.constant 25 : index
    %c0_231 = arith.constant 0 : index
    %382 = vector.load %arg3[%c25_230, %c0_231] : memref<27x512xf32, #tpu.memory_space<vmem>>, vector<1x512xf32>
    %383 = vector.broadcast %382 : vector<1x512xf32> to vector<8x512xf32>
    %384 = arith.mulf %381, %383 : vector<8x512xf32>
    %c439_i32_232 = arith.constant 439 : i32
    %385 = tpu.dynamic_rotate %273 by %c439_i32_232 dim 1 : vector<8x512xf32>, i32 -> vector<8x512xf32>
    %c26_233 = arith.constant 26 : index
    %c0_234 = arith.constant 0 : index
    %386 = vector.load %arg3[%c26_233, %c0_234] : memref<27x512xf32, #tpu.memory_space<vmem>>, vector<1x512xf32>
    %387 = vector.broadcast %386 : vector<1x512xf32> to vector<8x512xf32>
    %388 = arith.mulf %385, %387 : vector<8x512xf32>
    %389 = tpu.concatenate %356, %360, %364, %368, %372, %376, %380, %384, %388 in 0 : vector<8x512xf32>, vector<8x512xf32>, vector<8x512xf32>, vector<8x512xf32>, vector<8x512xf32>, vector<8x512xf32>, vector<8x512xf32>, vector<8x512xf32>, vector<8x512xf32> -> vector<72x512xf32>
    %390 = arith.truncf %389 : vector<72x512xf32> to vector<72x512xbf16>
    %c2_235 = arith.constant 2 : index
    %c0_236 = arith.constant 0 : index
    %c0_237 = arith.constant 0 : index
    %391 = vector.load %arg12[%c2_235, %c0_236, %c0_237] : memref<3x8x72xbf16, #tpu.memory_space<vmem>>, vector<1x8x72xbf16>
    %392 = vector.shape_cast %391 : vector<1x8x72xbf16> to vector<8x72xbf16>
    %cst_238 = arith.constant dense<0.000000e+00> : vector<8x512xf32>
    %393 = tpu.matmul %392, %390, %cst_238 {dimension_numbers = #tpu.dot_dimension_numbers<[1], [0], [0], [1], [0, 0, 1, 1], [], []>} : vector<8x72xbf16>, vector<72x512xbf16>, vector<8x512xf32> -> vector<8x512xf32>
    %394 = arith.addf %352, %393 : vector<8x512xf32>
    %c0_239 = arith.constant 0 : index
    %c0_240 = arith.constant 0 : index
    %395 = vector.load %arg13[%c0_239, %c0_240] : memref<8x1xf32, #tpu.memory_space<vmem>>, vector<8x1xf32>
    %396 = vector.broadcast %395 : vector<8x1xf32> to vector<8x512xf32>
    %397 = arith.addf %394, %396 : vector<8x512xf32>
    %cst_241 = arith.constant 0.000000e+00 : f32
    %398 = vector.broadcast %cst_241 : f32 to vector<8x512xf32>
    %399 = arith.maximumf %397, %398 : vector<8x512xf32>
    %400 = arith.addf %145, %399 : vector<8x512xf32>
    %c0_242 = arith.constant 0 : index
    %c0_243 = arith.constant 0 : index
    %401 = vector.load %arg14[%c0_242, %c0_243] : memref<24x512xf32, #tpu.memory_space<vmem>>, vector<8x512xf32>
    tpu.vector_store %arg14[%c0_242, %c0_243], %146 {strides = array<i32>} : memref<24x512xf32, #tpu.memory_space<vmem>>, vector<8x512xf32>,
    %c8_244 = arith.constant 8 : index
    %c0_245 = arith.constant 0 : index
    %402 = vector.load %arg14[%c8_244, %c0_245] : memref<24x512xf32, #tpu.memory_space<vmem>>, vector<8x512xf32>
    tpu.vector_store %arg14[%c8_244, %c0_245], %273 {strides = array<i32>} : memref<24x512xf32, #tpu.memory_space<vmem>>, vector<8x512xf32>,
    %c16_246 = arith.constant 16 : index
    %c0_247 = arith.constant 0 : index
    %403 = vector.load %arg14[%c16_246, %c0_247] : memref<24x512xf32, #tpu.memory_space<vmem>>, vector<8x512xf32>
    tpu.vector_store %arg14[%c16_246, %c0_247], %400 {strides = array<i32>} : memref<24x512xf32, #tpu.memory_space<vmem>>, vector<8x512xf32>,
    return
  }
  func.func @transform_0(%arg0: i32) -> (i32, i32) {
    %c0_i32 = arith.constant 0 : i32
    %c0_i32_0 = arith.constant 0 : i32
    %c0_i32_1 = arith.constant 0 : i32
    return %c0_i32, %c0_i32_0 : i32, i32
  }
  func.func @transform_1(%arg0: i32) -> (i32, i32) {
    %c0_i32 = arith.constant 0 : i32
    %c0_i32_0 = arith.constant 0 : i32
    %c0_i32_1 = arith.constant 0 : i32
    return %c0_i32, %c0_i32_0 : i32, i32
  }
  func.func @transform_2(%arg0: i32) -> (i32, i32) {
    %c0_i32 = arith.constant 0 : i32
    %c0_i32_0 = arith.constant 0 : i32
    %c0_i32_1 = arith.constant 0 : i32
    return %c0_i32, %c0_i32_0 : i32, i32
  }
  func.func @transform_3(%arg0: i32) -> (i32, i32) {
    %c0_i32 = arith.constant 0 : i32
    %c0_i32_0 = arith.constant 0 : i32
    %c0_i32_1 = arith.constant 0 : i32
    return %c0_i32, %c0_i32_0 : i32, i32
  }
  func.func @transform_4(%arg0: i32) -> (i32, i32) {
    %c0_i32 = arith.constant 0 : i32
    %c0_i32_0 = arith.constant 0 : i32
    %c0_i32_1 = arith.constant 0 : i32
    return %c0_i32, %c0_i32_0 : i32, i32
  }
  func.func @transform_5(%arg0: i32) -> (i32, i32) {
    %c0_i32 = arith.constant 0 : i32
    %c0_i32_0 = arith.constant 0 : i32
    %c0_i32_1 = arith.constant 0 : i32
    return %c0_i32, %c0_i32_0 : i32, i32
  }
  func.func @transform_6(%arg0: i32) -> (i32, i32) {
    %c0_i32 = arith.constant 0 : i32
    %c0_i32_0 = arith.constant 0 : i32
    %c0_i32_1 = arith.constant 0 : i32
    return %c0_i32, %c0_i32_0 : i32, i32
  }
  func.func @transform_7(%arg0: i32) -> (i32, i32, i32) {
    %c0_i32 = arith.constant 0 : i32
    %c0_i32_0 = arith.constant 0 : i32
    %c0_i32_1 = arith.constant 0 : i32
    %c0_i32_2 = arith.constant 0 : i32
    return %c0_i32, %c0_i32_0, %c0_i32_1 : i32, i32, i32
  }
  func.func @transform_8(%arg0: i32) -> (i32, i32) {
    %c0_i32 = arith.constant 0 : i32
    %c0_i32_0 = arith.constant 0 : i32
    %c0_i32_1 = arith.constant 0 : i32
    return %c0_i32, %c0_i32_0 : i32, i32
  }
  func.func @transform_9(%arg0: i32) -> (i32, i32, i32) {
    %c0_i32 = arith.constant 0 : i32
    %c0_i32_0 = arith.constant 0 : i32
    %c0_i32_1 = arith.constant 0 : i32
    %c0_i32_2 = arith.constant 0 : i32
    return %c0_i32, %c0_i32_0, %c0_i32_1 : i32, i32, i32
  }
  func.func @transform_10(%arg0: i32) -> (i32, i32) {
    %c0_i32 = arith.constant 0 : i32
    %c0_i32_0 = arith.constant 0 : i32
    %c0_i32_1 = arith.constant 0 : i32
    return %c0_i32, %c0_i32_0 : i32, i32
  }
  func.func @transform_11(%arg0: i32) -> (i32, i32, i32) {
    %c0_i32 = arith.constant 0 : i32
    %c0_i32_0 = arith.constant 0 : i32
    %c0_i32_1 = arith.constant 0 : i32
    %c0_i32_2 = arith.constant 0 : i32
    return %c0_i32, %c0_i32_0, %c0_i32_1 : i32, i32, i32
  }
  func.func @transform_12(%arg0: i32) -> (i32, i32) {
    %c0_i32 = arith.constant 0 : i32
    %c0_i32_0 = arith.constant 0 : i32
    %c0_i32_1 = arith.constant 0 : i32
    return %c0_i32, %c0_i32_0 : i32, i32
  }
  func.func @transform_13(%arg0: i32) -> (i32, i32) {
    %c0_i32 = arith.constant 0 : i32
    %c0_i32_0 = arith.constant 0 : i32
    %c0_i32_1 = arith.constant 0 : i32
    return %c0_i32, %c0_i32_0 : i32, i32
  }
}

</mosaic_0001>

<bundles_post_ra>
// kernel: cell_forward.1
= control target key start
LH: loop header
LB: loop body
LE: loop exit
PB: predicated region body
PF: predicated region fallthrough
CT: control target
= control target key end

     0   :  { %vm76_vm0 = vcmask 1043456   ;;  %v5615_v3 = vmov 0   ;;  %vm72_vm1 = vcmask 195584   ;;  %s3148_s25 = smov 120   ;;  %s3149_s26 = smov 127   ;;  %vm1034_vm11 = vcmask 588800   ;;  %s5601_s0 = inlined_call_operand.vmem [shape: f32[24,512], index: 0, kind: input, shape index: {}]   ;;  %s5602_s1 = inlined_call_operand.vmem [shape: f32[24,512], index: 1, kind: input, shape index: {}]   ;;  %s5603_s3 = inlined_call_operand.vmem [shape: bf16[8,24], index: 3, kind: input, shape index: {}]   ;;  %s5604_s4 = inlined_call_operand.vmem [shape: f32[8,1], index: 4, kind: input, shape index: {}]   ;;  %s5605_s6 = inlined_call_operand.vmem [shape: f32[8,1], index: 6, kind: input, shape index: {}]   ;;  %s5606_s5 = inlined_call_operand.vmem [shape: bf16[8,24], index: 5, kind: input, shape index: {}]   ;;  %s5607_s7 = inlined_call_operand.vmem [shape: bf16[3,16,72], index: 7, kind: input, shape index: {}]   ;;  %s5608_s2 = inlined_call_operand.vmem [shape: f32[27,512], index: 2, kind: input, shape index: {}]   ;;  %s5609_s8 = inlined_call_operand.vmem [shape: f32[16,1], index: 8, kind: input, shape index: {}]   ;;  %s5610_s9 = inlined_call_operand.vmem [shape: bf16[3,8,72], index: 9, kind: input, shape index: {}]   ;;  %s5611_s10 = inlined_call_operand.vmem [shape: f32[8,1], index: 10, kind: input, shape index: {}]   ;;  %s5612_s13 = inlined_call_operand.vmem [shape: f32[24,512], index: 13, kind: output, shape index: {}]   ;;  %s5613_s12 = inlined_call_operand.vmem [shape: f32[8,1], index: 12, kind: input, shape index: {}]   ;;  %s5614_s11 = inlined_call_operand.vmem [shape: bf16[3,8,72], index: 11, kind: input, shape index: {}]  }
   0x1   :  { %v54_v0 = vld [vmem:[%s5601_s0 + $0x48] sm:$0xff]  ;;  %v56_v1 = vld [vmem:[%s5601_s0 + $0x58] sm:$0xff]  ;;  %v53_v2 = vld [vmem:[%s5601_s0 + $0x40] sm:$0xff]  ;;  %121 = vmatprep.mubr.bf16.mxu0 %v5615_v3  ;;  %162 = vmatprep.mubr.bf16.mxu1 %v5615_v3  ;;  %s3150_s27 = smov 7   ;;  %s3151_s28 = smov 1  }
   0x2   :  { %v63_v4 = vpack.c.bf16 %v54_v0, %v54_v0  ;;  %v65_v5 = vpack.c.bf16 %v56_v1, %v56_v1  ;;  %v62_v6 = vpack.c.bf16 %v53_v2, %v53_v2  ;;  %v55_v7 = vld [vmem:[%s5601_s0 + $0x50] sm:$0xff]  ;;  %v46_v8 = vld [vmem:[%s5601_s0 + $0x8] sm:$0xff]  ;;  %3140 = vset.pattern.permute.xlu0 %v5615_v3  ;;  %3141 = vset.pattern.permute.xlu1 %v5615_v3  ;;  %v48_v12 = vld [vmem:[%s5601_s0 + $0x18] sm:$0xff]  ;;  %s3152_s29 = smov 9   ;;  %s3153_s30 = smov 8  }
   0x3   :  { %v50_v9 = vld [vmem:[%s5601_s0 + $0x28] sm:$0xff]  ;;  %v64_v10 = vpack.c.bf16 %v55_v7, %v55_v7  ;;  %v52_v13 = vld [vmem:[%s5601_s0 + $0x38] sm:$0xff]  ;;  %v45_v14 = vld [vmem:[%s5601_s0] sm:$0xff]  ;;  %s3154_s14 = smov 55   ;;  %s3155_s15 = smov 57  }
   0x4   :  { %v59_v11 = vpack.c.bf16 %v50_v9, %v46_v8  ;;  %3042 = vmatprep.subr.msk.bf16.mxu0 %vm76_vm0, %v63_v4  ;;  %3044 = vmatprep.subr.msk.bf16.mxu1 %vm76_vm0, %v65_v5  ;;  %v78_v15 = vsel %vm76_vm0, %v62_v6, 0  ;;  %v61_v16 = vpack.c.bf16 %v52_v13, %v48_v12  ;;  %v49_v17 = vld [vmem:[%s5601_s0 + $0x20] sm:$0xff]  ;;  %v47_v18 = vld [vmem:[%s5601_s0 + $0x10] sm:$0xff]  ;;  %v184_v22 = vld [vmem:[%s5602_s1 + $0x48] sm:$0xff]  ;;  %s3156_s16 = smov 56   ;;  %s3157_s17 = smov 64  }
   0x5   :  { %v51_v19 = vld [vmem:[%s5601_s0 + $0x30] sm:$0xff]  ;;  %102 = vmatpush1.bf16.msra.mxu0 %v78_v15  ;;  %v84_v20 = vsel %vm76_vm0, %v64_v10, 0  ;;  %v58_v21 = vpack.c.bf16 %v49_v17, %v45_v14  ;;  %v186_v23 = vld [vmem:[%s5602_s1 + $0x58] sm:$0xff]  ;;  %v193_v25 = vpack.c.bf16 %v184_v22, %v184_v22  ;;  %v183_v26 = vld [vmem:[%s5602_s1 + $0x40] sm:$0xff]  ;;  %s3158_s18 = smov 63   ;;  %s3159_s19 = smov 71  }
   0x6   :  { %143 = vmatpush1.bf16.msra.mxu1 %v84_v20  ;;  %103 = vmatprep.subr.bf16.mxu0 %v59_v11  ;;  %v60_v24 = vpack.c.bf16 %v51_v19, %v47_v18  ;;  %v185_v27 = vld [vmem:[%s5602_s1 + $0x50] sm:$0xff]  ;;  %v195_v28 = vpack.c.bf16 %v186_v23, %v186_v23  ;;  %v192_v29 = vpack.c.bf16 %v183_v26, %v183_v26  ;;  %v176_v31 = vld [vmem:[%s5602_s1 + $0x8] sm:$0xff]  ;;  %v178_v33 = vld [vmem:[%s5602_s1 + $0x18] sm:$0xff]  ;;  %v311_v11 = vlaneseq  ;;  %s3160_s20 = smov 65   ;;  %s3161_s0 = smov 73  }
   0x7   :  { %144 = vmatprep.subr.bf16.mxu1 %v61_v16  ;;  %v194_v30 = vpack.c.bf16 %v185_v27, %v185_v27  ;;  %v180_v32 = vld [vmem:[%s5602_s1 + $0x28] sm:$0xff]  ;;  %v182_v34 = vld [vmem:[%s5602_s1 + $0x38] sm:$0xff]  ;;  %v57_v35 = vld [vmem:[%s5603_s3] sm:$0xf]  ;;  %s3162_s21 = smov 72  }
   0x8   :  { %v66_v36 = vld [vmem:[%s5604_s4] sm:$0xff]  ;;  %v206_v37 = vsel %vm76_vm0, %v192_v29, 0  ;;  %v189_v38 = vpack.c.bf16 %v180_v32, %v176_v31  ;;  %v191_v42 = vpack.c.bf16 %v182_v34, %v178_v33  ;;  %v177_v43 = vld [vmem:[%s5602_s1 + $0x10] sm:$0xff]  ;;  %v321_v12 = vshrl.u32 %v311_v11, 7 }
   0x9   :  { %104 = vmatpush1.bf16.msra.mxu0 %v58_v21  ;;  %v175_v39 = vld [vmem:[%s5602_s1] sm:$0xff]  ;;  %v212_v41 = vsel %vm76_vm0, %v194_v30, 0  ;;  %v181_v44 = vld [vmem:[%s5602_s1 + $0x30] sm:$0xff]  ;;  %69 = vperm.xlu0 %3140, %v66_v36   ;;  %v3469_v14 = vand.u32 127, %v311_v11 }
   0xa   :  { %145 = vmatpush1.bf16.msra.mxu1 %v60_v24  ;;  %3046 = vmatprep.subr.msk.bf16.mxu0 %vm76_vm0, %v193_v25  ;;  %v179_v40 = vld [vmem:[%s5602_s1 + $0x20] sm:$0xff]  ;;  %v190_v47 = vpack.c.bf16 %v181_v44, %v177_v43  ;;  %v3471_v15 = vsub.s32 0, %v321_v12  ;;  %v3473_v16 = vsub.s32 1, %v321_v12  ;;  %v3480_v20 = vsub.s32 2, %v321_v12 }
   0xb   :  { %3048 = vmatprep.subr.msk.bf16.mxu1 %vm76_vm0, %v195_v28  ;;  %v188_v45 = vpack.c.bf16 %v179_v40, %v175_v39  ;;  %v196_v46 = vld [vmem:[%s5605_s6] sm:$0xff]  ;;  %s3147_s6 = smov 121   ;;  %5826 = vst [vmem:[#allocation2_spill] sm:$0xff] %v3469_v14  ;;  %v3484_v21 = vsub.s32 3, %v321_v12  ;;  %vm974_vm2 = vcmp.lt.s32.totalorder %v3469_v14, 119  ;;  %vm894_vm3 = vcmp.lt.s32.totalorder %v3469_v14, 121 }
   0xc   :  { %3043 = vmatmul.mubr.msk.bf16.vlgmr.msra.gmra.mxu0 %vm72_vm1, %v57_v35  ;;  %v187_v48 = vld [vmem:[%s5606_s5] sm:$0xf]  ;;  %s3146_s5 = smov 119   ;;  %vm934_vm4 = vcmp.lt.s32.totalorder %v3469_v14, 120  ;;  %vm854_vm5 = vcmp.lt.s32.totalorder %v3469_v14, 127  ;;  %vm774_vm6 = vcmp.lt.s32.totalorder %v3469_v14, 7 }
   0xd   :  { %3045 = vmatmul.mubr.msk.bf16.vlgmr.msra.gmra.mxu1 %vm72_vm1, %v57_v35  ;;  %230 = vmatpush1.bf16.msra.mxu0 %v206_v37  ;;  %v3065_v17 = vld [vmem:[%s5608_s2 + $0x41] ss:$8 sm:$0xf]  ;;  %vm814_vm7 = vcmp.lt.s32.totalorder %v3469_v14, 1  ;;  %vm694_vm8 = vcmp.lt.s32.totalorder %v3469_v14, 9  ;;  %vm734_vm9 = vcmp.lt.s32.totalorder %v3469_v14, 8 }
   0xe   :  { %271 = vmatpush1.bf16.msra.mxu1 %v212_v41  ;;  %231 = vmatprep.subr.bf16.mxu0 %v189_v38  ;;  %v3488_v22 = vrot.slane %v3065_v17, %v3471_v15  ;;  %v3491_v23 = vrot.slane %v3065_v17, %v3473_v16  ;;  %v3506_v30 = vrot.slane %v3065_v17, %v3480_v20  ;;  %vm5798_vm10 = vcmp.lt.s32.totalorder %v3469_v14, 55 }
   0xf   :  { %272 = vmatprep.subr.bf16.mxu1 %v191_v42  ;;  %249 = vmatprep.mubr.bf16.mxu0 %v5615_v3  ;;  %v3509_v31 = vrot.slane %v3065_v17, %v3484_v21  ;;  %vm5797_vm12 = vcmp.lt.s32.totalorder %v3469_v14, 57  ;;  %vm5796_vm13 = vcmp.lt.s32.totalorder %v3469_v14, 56  ;;  %vm5803_vm14 = vcmp.lt.s32.totalorder %v3469_v14, 64 }
  0x10   :  { %290 = vmatprep.mubr.bf16.mxu1 %v5615_v3  ;;  %199 = vperm.xlu0 %3140, %v196_v46   ;;  %5827 = vst [vmem:[#allocation3_spill] sm:$0xff] %v3488_v22  ;;  %5828 = vst [vmem:[#allocation4_spill] sm:$0xff] %v3491_v23  ;;  %v3063_v46 = vld [vmem:[%s5608_s2 + $0x27] ss:$8 sm:$0xf]  ;;  %vm5681_vm15 = vcmp.lt.s32.totalorder %v3469_v14, 63 }
  0x11   :  { %232 = vmatpush1.bf16.msra.mxu0 %v188_v45  ;;  %5829 = vst [vmem:[#allocation5_spill] sm:$0xff] %v3506_v30  ;;  %5830 = vst [vmem:[#allocation6_spill] sm:$0xff] %v3509_v31 }
  0x12   :  { %273 = vmatpush1.bf16.msra.mxu1 %v190_v47 }
  0x14   :  { %3047 = vmatmul.mubr.msk.bf16.vlgmr.msra.gmra.mxu0 %vm72_vm1, %v187_v48 }
  0x15   :  { %3049 = vmatmul.mubr.msk.bf16.vlgmr.msra.gmra.mxu1 %vm72_vm1, %v187_v48  ;;  %1082 = vmatprep.mubr.bf16.mxu0 %v5615_v3  ;;  %v3064_v48 = vld [vmem:[%s5608_s2 + $0x40] ss:$8 sm:$0xf]  ;;  %vm5751_vm1 = vcmp.lt.s32.totalorder %v3469_v14, 71 }
  0x16   :  { %1125 = vmatprep.mubr.bf16.mxu1 %v5615_v3  ;;  %v3585_v12 = vrot.slane %v3064_v48, %v3484_v21 }
  0x18   :  { %5840 = vst [vmem:[#allocation16_spill] sm:$0xff] %v3585_v12 }
  0x84   :  { %v70_v49 = vpop.permute.xlu0 %69 }
  0x8b   :  { %v3465_v13 = vpop.permute.xlu0 %199 }
  0xcc   :  { %v123_v50 = vpop.f32.mrf.mxu0 }
  0xcd   :  { %v124_v51 = vadd.f32 %v123_v50, %v70_v49  ;;  %v164_v52 = vpop.f32.mrf.mxu1 }
  0xce   :  { %v165_v53 = vadd.f32 %v164_v52, %v70_v49  ;;  %v125_v54 = vpop.f32.mrf.mxu0  ;;  %v3545_v52 = vrot.slane %v3063_v46, %v3471_v15 }
  0xcf   :  { %v3337_v55 = vmax.f32 %v124_v51, 0.0  ;;  %v126_v56 = vadd.f32 %v125_v54, %v70_v49  ;;  %v166_v57 = vpop.f32.mrf.mxu1 }
  0xd0   :  { %v3339_v58 = vmax.f32 %v165_v53, 0.0  ;;  %v127_v59 = vpop.f32.mrf.mxu0  ;;  %v167_v63 = vadd.f32 %v166_v57, %v70_v49  ;;  %5832 = vst [vmem:[#allocation8_spill] sm:$0xff] %v3545_v52  ;;  %v3548_v53 = vrot.slane %v3063_v46, %v3473_v16  ;;  %v3557_v57 = vrot.slane %v3064_v48, %v3471_v15 }
  0xd1   :  { %v168_v60 = vpop.f32.mrf.mxu1  ;;  %966 = vrot.lane.b32.xlu1 %v3337_v55, %s3146_s5  ;;  %v3345_v62 = vmax.f32 %v126_v56, 0.0  ;;  %v3560_v59 = vrot.slane %v3064_v48, %v3473_v16 }
  0xd2   :  { %970 = vrot.lane.b32.xlu0 %v3339_v58, %s3146_s5  ;;  %v128_v61 = vpop.f32.mrf.mxu0  ;;  %v3357_v5 = vmax.f32 %v167_v63, 0.0  ;;  %5833 = vst [vmem:[#allocation9_spill] sm:$0xff] %v3548_v53  ;;  %5834 = vst [vmem:[#allocation10_spill] sm:$0xff] %v3557_v57 }
  0xd3   :  { %v169_v0 = vpop.f32.mrf.mxu1  ;;  %5835 = vst [vmem:[#allocation11_spill] sm:$0xff] %v3560_v59  ;;  %v3565_v61 = vrot.slane %v3063_v46, %v3480_v20 }
  0xd4   :  { %v3347_v1 = vpop.f32.mrf.mxu0 }
  0xd5   :  { %v3349_v2 = vpop.f32.mrf.mxu1  ;;  %968 = vrot.lane.b32.xlu1 %v3345_v62, %s3146_s5  ;;  %v252_v44 = vadd.f32 %v3347_v1, %v3465_v13  ;;  %5836 = vst [vmem:[#allocation12_spill] sm:$0xff] %v3565_v61  ;;  %v3574_v1 = vrot.slane %v3063_v46, %v3484_v21 }
  0xd6   :  { %886 = vrot.lane.b32.xlu0 %v3337_v55, %s3147_s6  ;;  %v3355_v4 = vpop.f32.mrf.mxu0  ;;  %v293_v49 = vadd.f32 %v3349_v2, %v3465_v13 }
  0xd7   :  { %v3359_v6 = vpop.f32.mrf.mxu1  ;;  %v3542_v51 = vmax.f32 %v252_v44, 0.0  ;;  %v254_v0 = vadd.f32 %v3355_v4, %v3465_v13  ;;  %5838 = vst [vmem:[#allocation14_spill] sm:$0xff] %v3574_v1  ;;  %v3062_v4 = vld [vmem:[%s5608_s2 + $0x26] ss:$8 sm:$0xf] }
  0xd8   :  { %v255_v7 = vpop.f32.mrf.mxu0  ;;  %v3569_v63 = vmax.f32 %v293_v49, 0.0 }
  0xd9   :  { %972 = vrot.lane.b32.xlu1 %v3357_v5, %s3146_s5  ;;  %v296_v8 = vpop.f32.mrf.mxu1  ;;  %5831 = vst [vmem:[#allocation7_spill] sm:$0xff] %v3542_v51  ;;  %v3577_v7 = vrot.slane %v3064_v48, %v3480_v20 }
  0xda   :  { %890 = vrot.lane.b32.xlu0 %v3339_v58, %s3147_s6  ;;  %v256_v9 = vpop.f32.mrf.mxu0  ;;  %5837 = vst [vmem:[#allocation13_spill] sm:$0xff] %v3569_v63 }
  0xdb   :  { %v297_v10 = vpop.f32.mrf.mxu1  ;;  %5839 = vst [vmem:[#allocation15_spill] sm:$0xff] %v3577_v7 }
  0xdd   :  { %888 = vrot.lane.b32.xlu1 %v3345_v62, %s3147_s6 }
  0xde   :  { %926 = vrot.lane.b32.xlu0 %v3337_v55, %s3148_s25 }
  0xe1   :  { %892 = vrot.lane.b32.xlu1 %v3357_v5, %s3147_s6 }
  0xe2   :  { %930 = vrot.lane.b32.xlu0 %v3339_v58, %s3148_s25 }
  0xe5   :  { %928 = vrot.lane.b32.xlu1 %v3345_v62, %s3148_s25 }
  0xe6   :  { %846 = vrot.lane.b32.xlu0 %v3337_v55, %s3149_s26 }
  0xe9   :  { %932 = vrot.lane.b32.xlu1 %v3357_v5, %s3148_s25 }
  0xea   :  { %850 = vrot.lane.b32.xlu0 %v3339_v58, %s3149_s26 }
  0xed   :  { %848 = vrot.lane.b32.xlu1 %v3345_v62, %s3149_s26 }
  0xee   :  { %766 = vrot.lane.b32.xlu0 %v3337_v55, %s3150_s27 }
  0xf1   :  { %852 = vrot.lane.b32.xlu1 %v3357_v5, %s3149_s26 }
  0xf2   :  { %770 = vrot.lane.b32.xlu0 %v3339_v58, %s3150_s27 }
  0xf5   :  { %768 = vrot.lane.b32.xlu1 %v3345_v62, %s3150_s27 }
  0xf6   :  { %806 = vrot.lane.b32.xlu0 %v3337_v55, %s3151_s28 }
  0xf9   :  { %772 = vrot.lane.b32.xlu1 %v3357_v5, %s3150_s27 }
  0xfa   :  { %810 = vrot.lane.b32.xlu0 %v3339_v58, %s3151_s28 }
  0xfd   :  { %808 = vrot.lane.b32.xlu1 %v3345_v62, %s3151_s28 }
  0xfe   :  { %686 = vrot.lane.b32.xlu0 %v3337_v55, %s3152_s29 }
 0x101   :  { %812 = vrot.lane.b32.xlu1 %v3357_v5, %s3151_s28 }
 0x102   :  { %690 = vrot.lane.b32.xlu0 %v3339_v58, %s3152_s29 }
 0x105   :  { %688 = vrot.lane.b32.xlu1 %v3345_v62, %s3152_s29 }
 0x106   :  { %726 = vrot.lane.b32.xlu0 %v3337_v55, %s3153_s30 }
 0x109   :  { %692 = vrot.lane.b32.xlu1 %v3357_v5, %s3152_s29 }
 0x10a   :  { %730 = vrot.lane.b32.xlu0 %v3339_v58, %s3153_s30 }
 0x10d   :  { %728 = vrot.lane.b32.xlu1 %v3345_v62, %s3153_s30 }
 0x10e   :  { %624 = vrot.lane.b32.xlu0 %v3337_v55, %s3154_s14 }
 0x111   :  { %732 = vrot.lane.b32.xlu1 %v3357_v5, %s3153_s30 }
 0x112   :  { %628 = vrot.lane.b32.xlu0 %v3339_v58, %s3154_s14 }
 0x115   :  { %626 = vrot.lane.b32.xlu1 %v3345_v62, %s3154_s14 }
 0x116   :  { %544 = vrot.lane.b32.xlu0 %v3337_v55, %s3155_s15 }
 0x119   :  { %630 = vrot.lane.b32.xlu1 %v3357_v5, %s3154_s14 }
 0x11a   :  { %548 = vrot.lane.b32.xlu0 %v3339_v58, %s3155_s15 }
 0x11d   :  { %546 = vrot.lane.b32.xlu1 %v3345_v62, %s3155_s15 }
 0x11e   :  { %584 = vrot.lane.b32.xlu0 %v3337_v55, %s3156_s16 }
 0x121   :  { %550 = vrot.lane.b32.xlu1 %v3357_v5, %s3155_s15 }
 0x122   :  { %588 = vrot.lane.b32.xlu0 %v3339_v58, %s3156_s16 }
 0x125   :  { %586 = vrot.lane.b32.xlu1 %v3345_v62, %s3156_s16 }
 0x126   :  { %464 = vrot.lane.b32.xlu0 %v3337_v55, %s3157_s17 }
 0x129   :  { %590 = vrot.lane.b32.xlu1 %v3357_v5, %s3156_s16 }
 0x12a   :  { %468 = vrot.lane.b32.xlu0 %v3339_v58, %s3157_s17 }
 0x12d   :  { %466 = vrot.lane.b32.xlu1 %v3345_v62, %s3157_s17 }
 0x12e   :  { %504 = vrot.lane.b32.xlu0 %v3337_v55, %s3158_s18 }
 0x131   :  { %470 = vrot.lane.b32.xlu1 %v3357_v5, %s3157_s17 }
 0x132   :  { %508 = vrot.lane.b32.xlu0 %v3339_v58, %s3158_s18 }
 0x135   :  { %506 = vrot.lane.b32.xlu1 %v3345_v62, %s3158_s18 }
 0x136   :  { %384 = vrot.lane.b32.xlu0 %v3337_v55, %s3159_s19 }
 0x139   :  { %510 = vrot.lane.b32.xlu1 %v3357_v5, %s3158_s18 }
 0x13a   :  { %388 = vrot.lane.b32.xlu0 %v3339_v58, %s3159_s19 }
 0x13d   :  { %386 = vrot.lane.b32.xlu1 %v3345_v62, %s3159_s19 }
 0x13e   :  { %424 = vrot.lane.b32.xlu0 %v3337_v55, %s3160_s20 }
 0x141   :  { %390 = vrot.lane.b32.xlu1 %v3357_v5, %s3159_s19 }
 0x142   :  { %428 = vrot.lane.b32.xlu0 %v3339_v58, %s3160_s20 }
 0x143   :  { %v967_v18 = vpop.permute.xlu1 %966 }
 0x144   :  { %v971_v19 = vpop.permute.xlu0 %970 }
 0x145   :  { %426 = vrot.lane.b32.xlu1 %v3345_v62, %s3160_s20 }
 0x146   :  { %303 = vrot.lane.b32.xlu0 %v3337_v55, %s3161_s0 }
 0x147   :  { %v969_v24 = vpop.permute.xlu1 %968 }
 0x148   :  { %v3495_v25 = vpop.permute.xlu0 %886  ;;  %v976_v26 = vsel %vm974_vm2, %v969_v24, %v971_v19  ;;  %v977_v27 = vsel %vm974_vm2, %v967_v18, %v969_v24 }
 0x149   :  { %v1002_v28 = vmul.f32 %v3488_v22, %v977_v27  ;;  %v1003_v29 = vmul.f32 %v3491_v23, %v976_v26  ;;  %430 = vrot.lane.b32.xlu1 %v3357_v5, %s3160_s20  ;;  %v295_v26 = vadd.f32 %v3359_v6, %v3465_v13 }
 0x14a   :  { %307 = vrot.lane.b32.xlu0 %v3339_v58, %s3161_s0 }
 0x14b   :  { %v1022_v32 = vpack.c.bf16 %v1002_v28, %v1002_v28  ;;  %v1023_v33 = vpack.c.bf16 %v1003_v29, %v1003_v29  ;;  %v973_v34 = vpop.permute.xlu1 %972  ;;  %v3604_v28 = vmax.f32 %v254_v0, 0.0 }
 0x14c   :  { %v891_v35 = vpop.permute.xlu0 %890  ;;  %v975_v36 = vsel %vm974_vm2, %v971_v19, %v973_v34  ;;  %v978_v37 = vsel %vm974_vm2, %v973_v34, %v967_v18  ;;  %v3607_v34 = vrot.slane %v3062_v4, %v3471_v15 }
 0x14d   :  { %v1004_v38 = vmul.f32 %v3506_v30, %v975_v36  ;;  %v1005_v39 = vmul.f32 %v3509_v31, %v978_v37  ;;  %305 = vrot.lane.b32.xlu1 %v3345_v62, %s3161_s0  ;;  %3069 = vmatprep.subr.msk.bf16.mxu0 %vm76_vm0, %v1023_v33  ;;  %v1039_v40 = vsel %vm76_vm0, %v1022_v32, 0  ;;  %5841 = vst [vmem:[#allocation17_spill] sm:$0xff] %v3604_v28 }
 0x14e   :  { %344 = vrot.lane.b32.xlu0 %v3337_v55, %s3162_s21  ;;  %1057 = vmatpush1.bf16.msra.mxu0 %v1039_v40  ;;  %5842 = vst [vmem:[#allocation18_spill] sm:$0xff] %v3607_v34  ;;  %v3625_v40 = vmax.f32 %v295_v26, 0.0 }
 0x14f   :  { %v1024_v41 = vpack.c.bf16 %v1004_v38, %v1004_v38  ;;  %v1025_v42 = vpack.c.bf16 %v1005_v39, %v1005_v39  ;;  %v889_v43 = vpop.permute.xlu1 %888 }
 0x150   :  { %v927_v45 = vpop.permute.xlu0 %926  ;;  %v897_v56 = vsel %vm894_vm3, %v3495_v25, %v889_v43  ;;  %v896_v60 = vsel %vm894_vm3, %v889_v43, %v891_v35  ;;  %5844 = vst [vmem:[#allocation20_spill] sm:$0xff] %v3625_v40 }
 0x151   :  { %309 = vrot.lane.b32.xlu1 %v3357_v5, %s3161_s0  ;;  %3071 = vmatprep.subr.msk.bf16.mxu1 %vm76_vm0, %v1025_v42  ;;  %v1045_v47 = vsel %vm76_vm0, %v1024_v41, 0  ;;  %v922_v8 = vmul.f32 %v3545_v52, %v897_v56  ;;  %v923_v17 = vmul.f32 %v3548_v53, %v896_v60 }
 0x152   :  { %348 = vrot.lane.b32.xlu0 %v3339_v58, %s3162_s21  ;;  %1100 = vmatpush1.bf16.msra.mxu1 %v1045_v47  ;;  %v3632_v47 = vrot.slane %v3062_v4, %v3480_v20 }
 0x153   :  { %v893_v50 = vpop.permute.xlu1 %892 }
 0x154   :  { %v931_v54 = vpop.permute.xlu0 %930  ;;  %v895_v18 = vsel %vm894_vm3, %v891_v35, %v893_v50  ;;  %v898_v27 = vsel %vm894_vm3, %v893_v50, %v3495_v25  ;;  %v3615_v25 = vrot.slane %v3062_v4, %v3473_v16  ;;  %5845 = vst [vmem:[#allocation21_spill] sm:$0xff] %v3632_v47  ;;  %v3639_v50 = vrot.slane %v3062_v4, %v3484_v21 }
 0x155   :  { %346 = vrot.lane.b32.xlu1 %v3345_v62, %s3162_s21  ;;  %v924_v35 = vmul.f32 %v3565_v61, %v895_v18  ;;  %v925_v37 = vmul.f32 %v3574_v1, %v898_v27 }
 0x156   :  { %1931 = vrot.lane.b32.xlu0 %v3542_v51, %s3146_s5  ;;  %5843 = vst [vmem:[#allocation19_spill] sm:$0xff] %v3615_v25  ;;  %5846 = vst [vmem:[#allocation22_spill] sm:$0xff] %v3639_v50 }
 0x157   :  { %v929_v2 = vpop.permute.xlu1 %928 }
 0x158   :  { %v847_v9 = vpop.permute.xlu0 %846  ;;  %v936_v10 = vsel %vm934_vm4, %v929_v2, %v931_v54  ;;  %v937_v11 = vsel %vm934_vm4, %v927_v45, %v929_v2 }
 0x159   :  { %v962_v19 = vmul.f32 %v3557_v57, %v937_v11  ;;  %v963_v24 = vmul.f32 %v3560_v59, %v936_v10  ;;  %350 = vrot.lane.b32.xlu1 %v3357_v5, %s3162_s21 }
 0x15a   :  { %1935 = vrot.lane.b32.xlu0 %v3569_v63, %s3146_s5 }
 0x15b   :  { %v1018_v29 = vpack.c.bf16 %v962_v19, %v922_v8  ;;  %v933_v32 = vpop.permute.xlu1 %932  ;;  %v1019_v33 = vpack.c.bf16 %v963_v24, %v923_v17 }
 0x15c   :  { %v851_v36 = vpop.permute.xlu0 %850  ;;  %v935_v6 = vsel %vm934_vm4, %v931_v54, %v933_v32  ;;  %v938_v13 = vsel %vm934_vm4, %v933_v32, %v927_v45 }
 0x15d   :  { %v964_v38 = vmul.f32 %v3577_v7, %v935_v6  ;;  %v965_v39 = vmul.f32 %v3585_v12, %v938_v13  ;;  %1933 = vrot.lane.b32.xlu1 %v3604_v28, %s3146_s5  ;;  %1058 = vmatprep.subr.bf16.mxu0 %v1019_v33 }
 0x15e   :  { %1899 = vrot.lane.b32.xlu0 %v3542_v51, %s3147_s6  ;;  %1059 = vmatpush1.bf16.msra.mxu0 %v1018_v29 }
 0x15f   :  { %v1020_v41 = vpack.c.bf16 %v964_v38, %v924_v35  ;;  %v849_v42 = vpop.permute.xlu1 %848  ;;  %v1021_v43 = vpack.c.bf16 %v965_v39, %v925_v37 }
 0x160   :  { %v767_v44 = vpop.permute.xlu0 %766  ;;  %v856_v45 = vsel %vm854_vm5, %v849_v42, %v851_v36  ;;  %v857_v46 = vsel %vm854_vm5, %v847_v9, %v849_v42 }
 0x161   :  { %v882_v48 = vmul.f32 %v3607_v34, %v857_v46  ;;  %v883_v49 = vmul.f32 %v3615_v25, %v856_v45  ;;  %1937 = vrot.lane.b32.xlu1 %v3625_v40, %s3146_s5  ;;  %1101 = vmatprep.subr.bf16.mxu1 %v1021_v43 }
 0x162   :  { %1903 = vrot.lane.b32.xlu0 %v3569_v63, %s3147_s6  ;;  %1102 = vmatpush1.bf16.msra.mxu1 %v1020_v41 }
 0x163   :  { %v1014_v54 = vpack.c.bf16 %v882_v48, %v3337_v55  ;;  %v853_v56 = vpop.permute.xlu1 %852  ;;  %v1015_v60 = vpack.c.bf16 %v883_v49, %v3345_v62 }
 0x164   :  { %v771_v0 = vpop.permute.xlu0 %770  ;;  %v855_v2 = vsel %vm854_vm5, %v851_v36, %v853_v56  ;;  %v858_v8 = vsel %vm854_vm5, %v853_v56, %v847_v9  ;;  %v3060_v9 = vld [vmem:[%s5608_s2 + $0x23] ss:$8 sm:$0xf] }
 0x165   :  { %v884_v10 = vmul.f32 %v3632_v47, %v855_v2  ;;  %v885_v11 = vmul.f32 %v3639_v50, %v858_v8  ;;  %1901 = vrot.lane.b32.xlu1 %v3604_v28, %s3147_s6  ;;  %1060 = vmatprep.subr.bf16.mxu0 %v1015_v60  ;;  %v3669_v19 = vrot.slane %v3060_v9, %v3473_v16 }
 0x166   :  { %1915 = vrot.lane.b32.xlu0 %v3542_v51, %s3148_s25  ;;  %1061 = vmatpush1.bf16.msra.mxu0 %v1014_v54  ;;  %v3682_v27 = vrot.slane %v3060_v9, %v3471_v15  ;;  %v3685_v29 = vrot.slane %v3060_v9, %v3484_v21  ;;  %v3711_v43 = vrot.slane %v3060_v9, %v3480_v20  ;;  %v3058_v9 = vld [vmem:[%s5608_s2 + $0x21] ss:$8 sm:$0xf] }
 0x167   :  { %v1016_v55 = vpack.c.bf16 %v884_v10, %v3339_v58  ;;  %v769_v62 = vpop.permute.xlu1 %768  ;;  %v1017_v4 = vpack.c.bf16 %v885_v11, %v3357_v5  ;;  %v3061_v58 = vld [vmem:[%s5608_s2 + $0x24] ss:$8 sm:$0xf]  ;;  %5847 = vst [vmem:[#allocation23_spill] sm:$0xff] %v3669_v19 }
 0x168   :  { %v807_v17 = vpop.permute.xlu0 %806  ;;  %v3675_v24 = vrot.slane %v3061_v58, %v3473_v16  ;;  %v777_v26 = vsel %vm774_vm6, %v767_v44, %v769_v62  ;;  %5849 = vst [vmem:[#allocation25_spill] sm:$0xff] %v3682_v27  ;;  %5850 = vst [vmem:[#allocation26_spill] sm:$0xff] %v3685_v29  ;;  %v3688_v35 = vrot.slane %v3061_v58, %v3480_v20 }
 0x169   :  { %1905 = vrot.lane.b32.xlu1 %v3625_v40, %s3147_s6  ;;  %1103 = vmatprep.subr.bf16.mxu1 %v1017_v4  ;;  %v3693_v6 = vrot.slane %v3061_v58, %v3471_v15  ;;  %v3696_v13 = vrot.slane %v3061_v58, %v3484_v21  ;;  %v803_v37 = vmul.f32 %v3669_v19, %v777_v26  ;;  %v3059_v58 = vld [vmem:[%s5608_s2 + $0x22] ss:$8 sm:$0xf] }
 0x16a   :  { %1919 = vrot.lane.b32.xlu0 %v3569_v63, %s3148_s25  ;;  %1104 = vmatpush1.bf16.msra.mxu1 %v1016_v55  ;;  %5848 = vst [vmem:[#allocation24_spill] sm:$0xff] %v3675_v24  ;;  %5851 = vst [vmem:[#allocation27_spill] sm:$0xff] %v3688_v35  ;;  %v776_v45 = vsel %vm774_vm6, %v769_v62, %v771_v0  ;;  %v3741_v26 = vrot.slane %v3058_v9, %v3473_v16 }
 0x16b   :  { %v773_v5 = vpop.permute.xlu1 %772  ;;  %5852 = vst [vmem:[#allocation28_spill] sm:$0xff] %v3693_v6  ;;  %5853 = vst [vmem:[#allocation29_spill] sm:$0xff] %v3696_v13 }
 0x16c   :  { %v811_v18 = vpop.permute.xlu0 %810  ;;  %v775_v38 = vsel %vm774_vm6, %v771_v0, %v773_v5  ;;  %v778_v39 = vsel %vm774_vm6, %v773_v5, %v767_v44  ;;  %5854 = vst [vmem:[#allocation30_spill] sm:$0xff] %v3711_v43  ;;  %v804_v0 = vmul.f32 %v3711_v43, %v776_v45  ;;  %5855 = vst [vmem:[#allocation31_spill] sm:$0xff] %v3741_v26 }
 0x16d   :  { %1917 = vrot.lane.b32.xlu1 %v3604_v28, %s3148_s25  ;;  %v802_v44 = vmul.f32 %v3682_v27, %v778_v39  ;;  %v805_v49 = vmul.f32 %v3685_v29, %v775_v38  ;;  %v3754_v38 = vrot.slane %v3058_v9, %v3471_v15  ;;  %v3757_v39 = vrot.slane %v3058_v9, %v3484_v21 }
 0x16e   :  { %1883 = vrot.lane.b32.xlu0 %v3542_v51, %s3149_s26  ;;  %v3762_v45 = vrot.slane %v3059_v58, %v3471_v15 }
 0x16f   :  { %v809_v32 = vpop.permute.xlu1 %808  ;;  %5857 = vst [vmem:[#allocation33_spill] sm:$0xff] %v3754_v38  ;;  %5858 = vst [vmem:[#allocation34_spill] sm:$0xff] %v3757_v39 }
 0x170   :  { %v687_v33 = vpop.permute.xlu0 %686  ;;  %v817_v36 = vsel %vm814_vm7, %v807_v17, %v809_v32  ;;  %v816_v42 = vsel %vm814_vm7, %v809_v32, %v811_v18  ;;  %v3747_v32 = vrot.slane %v3059_v58, %v3473_v16  ;;  %5859 = vst [vmem:[#allocation35_spill] sm:$0xff] %v3762_v45 }
 0x171   :  { %v843_v41 = vmul.f32 %v3675_v24, %v817_v36  ;;  %1921 = vrot.lane.b32.xlu1 %v3625_v40, %s3148_s25  ;;  %v844_v2 = vmul.f32 %v3688_v35, %v816_v42 }
 0x172   :  { %1887 = vrot.lane.b32.xlu0 %v3569_v63, %s3149_s26  ;;  %5856 = vst [vmem:[#allocation32_spill] sm:$0xff] %v3747_v32 }
 0x173   :  { %v813_v46 = vpop.permute.xlu1 %812  ;;  %v1011_v48 = vpack.c.bf16 %v843_v41, %v803_v37 }
 0x174   :  { %v691_v54 = vpop.permute.xlu0 %690  ;;  %v815_v56 = vsel %vm814_vm7, %v811_v18, %v813_v46  ;;  %v818_v60 = vsel %vm814_vm7, %v813_v46, %v807_v17  ;;  %v1012_v17 = vpack.c.bf16 %v844_v2, %v804_v0  ;;  %v3057_v46 = vld [vmem:[%s5608_s2 + $0x20] ss:$8 sm:$0xf]  ;;  %v3779_v2 = vrot.slane %v3059_v58, %v3480_v20 }
 0x175   :  { %v842_v8 = vmul.f32 %v3693_v6, %v818_v60  ;;  %v845_v10 = vmul.f32 %v3696_v13, %v815_v56  ;;  %1885 = vrot.lane.b32.xlu1 %v3604_v28, %s3149_s26  ;;  %1062 = vmatprep.subr.bf16.mxu0 %v1011_v48  ;;  %v3774_v56 = vrot.slane %v3059_v58, %v3484_v21 }
 0x176   :  { %1851 = vrot.lane.b32.xlu0 %v3542_v51, %s3150_s27  ;;  %5861 = vst [vmem:[#allocation37_spill] sm:$0xff] %v3779_v2 }
 0x177   :  { %v1010_v11 = vpack.c.bf16 %v842_v8, %v802_v44  ;;  %v689_v55 = vpop.permute.xlu1 %688  ;;  %v1013_v62 = vpack.c.bf16 %v845_v10, %v805_v49  ;;  %5860 = vst [vmem:[#allocation36_spill] sm:$0xff] %v3774_v56  ;;  %v3784_v8 = vrot.slane %v3058_v9, %v3480_v20 }
 0x178   :  { %v727_v4 = vpop.permute.xlu0 %726  ;;  %v697_v36 = vsel %vm694_vm8, %v687_v33, %v689_v55 }
 0x179   :  { %1889 = vrot.lane.b32.xlu1 %v3625_v40, %s3149_s26  ;;  %1063 = vmatpush1.bf16.msra.mxu0 %v1010_v11  ;;  %v723_v48 = vmul.f32 %v3741_v26, %v697_v36  ;;  %5862 = vst [vmem:[#allocation38_spill] sm:$0xff] %v3784_v8  ;;  %v3789_v11 = vrot.slane %v3057_v46, %v3473_v16 }
 0x17a   :  { %1855 = vrot.lane.b32.xlu0 %v3569_v63, %s3150_s27  ;;  %1105 = vmatprep.subr.bf16.mxu1 %v1013_v62  ;;  %v696_v62 = vsel %vm694_vm8, %v689_v55, %v691_v54  ;;  %v3808_v55 = vrot.slane %v3057_v46, %v3480_v20 }
 0x17b   :  { %1106 = vmatpush1.bf16.msra.mxu1 %v1012_v17  ;;  %v693_v5 = vpop.permute.xlu1 %692  ;;  %5863 = vst [vmem:[#allocation39_spill] sm:$0xff] %v3789_v11 }
 0x17c   :  { %v731_v18 = vpop.permute.xlu0 %730  ;;  %v698_v44 = vsel %vm694_vm8, %v693_v5, %v687_v33  ;;  %v695_v60 = vsel %vm694_vm8, %v691_v54, %v693_v5  ;;  %5864 = vst [vmem:[#allocation40_spill] sm:$0xff] %v3808_v55 }
 0x17d   :  { %1853 = vrot.lane.b32.xlu1 %v3604_v28, %s3150_s27  ;;  %v722_v17 = vmul.f32 %v3754_v38, %v698_v44  ;;  %v725_v36 = vmul.f32 %v3757_v39, %v695_v60  ;;  %v724_v44 = vmul.f32 %v3784_v8, %v696_v62  ;;  %v3829_v62 = vrot.slane %v3057_v46, %v3484_v21 }
 0x17e   :  { %1867 = vrot.lane.b32.xlu0 %v3542_v51, %s3151_s28 }
 0x17f   :  { %v729_v37 = vpop.permute.xlu1 %728  ;;  %5866 = vst [vmem:[#allocation42_spill] sm:$0xff] %v3829_v62 }
 0x180   :  { %v625_v41 = vpop.permute.xlu0 %624  ;;  %v737_v42 = vsel %vm734_vm9, %v727_v4, %v729_v37  ;;  %v736_v33 = vsel %vm734_vm9, %v729_v37, %v731_v18 }
 0x181   :  { %v763_v49 = vmul.f32 %v3747_v32, %v737_v42  ;;  %1857 = vrot.lane.b32.xlu1 %v3625_v40, %s3150_s27  ;;  %v764_v54 = vmul.f32 %v3779_v2, %v736_v33 }
 0x182   :  { %1871 = vrot.lane.b32.xlu0 %v3569_v63, %s3151_s28 }
 0x183   :  { %v733_v10 = vpop.permute.xlu1 %732  ;;  %v1007_v0 = vpack.c.bf16 %v763_v49, %v723_v48 }
 0x184   :  { %v629_v58 = vpop.permute.xlu0 %628  ;;  %v735_v5 = vsel %vm734_vm9, %v731_v18, %v733_v10  ;;  %v738_v9 = vsel %vm734_vm9, %v733_v10, %v727_v4 }
 0x185   :  { %v762_v37 = vmul.f32 %v3762_v45, %v738_v9  ;;  %v765_v42 = vmul.f32 %v3774_v56, %v735_v5  ;;  %1869 = vrot.lane.b32.xlu1 %v3604_v28, %s3151_s28  ;;  %1064 = vmatprep.subr.bf16.mxu0 %v1007_v0  ;;  %v3826_v0 = vrot.slane %v3057_v46, %v3471_v15 }
 0x186   :  { %1819 = vrot.lane.b32.xlu0 %v3542_v51, %s3152_s29 }
 0x187   :  { %v1006_v4 = vpack.c.bf16 %v762_v37, %v722_v17  ;;  %v627_v18 = vpop.permute.xlu1 %626  ;;  %v1009_v48 = vpack.c.bf16 %v765_v42, %v725_v36  ;;  %5865 = vst [vmem:[#allocation41_spill] sm:$0xff] %v3826_v0  ;;  %v1008_v17 = vpack.c.bf16 %v764_v54, %v724_v44  ;;  %v3142_v37 = vld [vmem:[%s5607_s7 + $0x8] sm:$0xff]  }
 0x188   :  { %v3811_v49 = vpop.permute.xlu0 %544  ;;  %v3815_v60 = vsel %vm5798_vm10, %v627_v18, %v629_v58  ;;  %v3819_v33 = vsel %vm5798_vm10, %v625_v41, %v627_v18 }
 0x189   :  { %v661_v10 = vmul.f32 %v3789_v11, %v3819_v33  ;;  %1873 = vrot.lane.b32.xlu1 %v3625_v40, %s3151_s28  ;;  %v662_v5 = vmul.f32 %v3808_v55, %v3815_v60  ;;  %1065 = vmatpush1.bf16.msra.mxu0 %v1006_v4 }
 0x18a   :  { %1823 = vrot.lane.b32.xlu0 %v3569_v63, %s3152_s29  ;;  %1107 = vmatprep.subr.bf16.mxu1 %v1009_v48 }
 0x18b   :  { %v681_v9 = vpack.c.bf16 %v661_v10, %v661_v10  ;;  %v631_v36 = vpop.permute.xlu1 %630  ;;  %1108 = vmatpush1.bf16.msra.mxu1 %v1008_v17  ;;  %v682_v48 = vpack.c.bf16 %v662_v5, %v662_v5  ;;  %v3055_v17 = vld [vmem:[%s5608_s2 + $0x6] ss:$8 sm:$0xf] }
 0x18c   :  { %v549_v42 = vpop.permute.xlu0 %548  ;;  %v3840_v46 = vsel %vm5798_vm10, %v629_v58, %v631_v36  ;;  %v3844_v54 = vsel %vm5798_vm10, %v631_v36, %v625_v41  ;;  %3070 = vmatmul.mubr.msk.bf16.vlgmr.msra.gmra.mxu0 %vm1034_vm11, %v3142_v37  ;;  %v3056_v36 = vld [vmem:[%s5608_s2 + $0x7] ss:$8 sm:$0xf]  ;;  %v3930_v38 = vrot.slane %v3055_v17, %v3480_v20 }
 0x18d   :  { %v660_v4 = vmul.f32 %v3826_v0, %v3844_v54  ;;  %v663_v18 = vmul.f32 %v3829_v62, %v3840_v46  ;;  %1821 = vrot.lane.b32.xlu1 %v3604_v28, %s3152_s29  ;;  %3074 = vmatprep.subr.msk.bf16.mxu0 %vm76_vm0, %v681_v9  ;;  %v1151_v9 = vsel %vm76_vm0, %v682_v48, 0  ;;  %v3880_v48 = vrot.slane %v3056_v36, %v3473_v16 }
 0x18e   :  { %1835 = vrot.lane.b32.xlu0 %v3542_v51, %s3153_s30  ;;  %3072 = vmatmul.mubr.msk.bf16.vlgmr.msra.gmra.mxu1 %vm1034_vm11, %v3142_v37  ;;  %v3906_v11 = vrot.slane %v3056_v36, %v3471_v15  ;;  %v3909_v8 = vrot.slane %v3056_v36, %v3484_v21  ;;  %5874 = vst [vmem:[#allocation50_spill] sm:$0xff] %v3930_v38 }
 0x18f   :  { %v680_v58 = vpack.c.bf16 %v660_v4, %v660_v4  ;;  %v683_v44 = vpack.c.bf16 %v663_v18, %v663_v18  ;;  %v547_v41 = vpop.permute.xlu1 %546  ;;  %1188 = vmatprep.mubr.bf16.mxu0 %v5615_v3  ;;  %1231 = vmatprep.mubr.bf16.mxu1 %v5615_v3  ;;  %v3874_v18 = vrot.slane %v3055_v17, %v3473_v16 }
 0x190   :  { %v585_v10 = vpop.permute.xlu0 %584  ;;  %5868 = vst [vmem:[#allocation44_spill] sm:$0xff] %v3880_v48  ;;  %5871 = vst [vmem:[#allocation47_spill] sm:$0xff] %v3906_v11  ;;  %v3934_v32 = vsel %vm5797_vm12, %v547_v41, %v549_v42 }
 0x191   :  { %1825 = vrot.lane.b32.xlu1 %v3625_v40, %s3152_s29  ;;  %3076 = vmatprep.subr.msk.bf16.mxu1 %vm76_vm0, %v683_v44  ;;  %v1145_v5 = vsel %vm76_vm0, %v680_v58, 0  ;;  %5867 = vst [vmem:[#allocation43_spill] sm:$0xff] %v3874_v18  ;;  %v3885_v58 = vsel %vm5797_vm12, %v3811_v49, %v547_v41  ;;  %5872 = vst [vmem:[#allocation48_spill] sm:$0xff] %v3909_v8 }
 0x192   :  { %1839 = vrot.lane.b32.xlu0 %v3569_v63, %s3153_s30  ;;  %1163 = vmatpush1.bf16.msra.mxu0 %v1145_v5  ;;  %v3890_v5 = vrot.slane %v3055_v17, %v3471_v15  ;;  %v581_v0 = vmul.f32 %v3874_v18, %v3885_v58 }
 0x193   :  { %1206 = vmatpush1.bf16.msra.mxu1 %v1151_v9  ;;  %v551_v37 = vpop.permute.xlu1 %550  ;;  %v3893_v9 = vrot.slane %v3055_v17, %v3484_v21 }
 0x194   :  { %v589_v4 = vpop.permute.xlu0 %588  ;;  %5869 = vst [vmem:[#allocation45_spill] sm:$0xff] %v3890_v5  ;;  %v3913_v56 = vsel %vm5797_vm12, %v549_v42, %v551_v37  ;;  %v3918_v18 = vsel %vm5797_vm12, %v551_v37, %v3811_v49 }
 0x195   :  { %1837 = vrot.lane.b32.xlu1 %v3604_v28, %s3153_s30  ;;  %5870 = vst [vmem:[#allocation46_spill] sm:$0xff] %v3893_v9 }
 0x196   :  { %1782 = vrot.lane.b32.xlu0 %v3542_v51, %s3154_s14 }
 0x197   :  { %v587_v44 = vpop.permute.xlu1 %586 }
 0x198   :  { %v465_v3 = vpop.permute.xlu0 %464  ;;  %v3897_v62 = vsel %vm5796_vm13, %v585_v10, %v587_v44  ;;  %v3927_v45 = vsel %vm5796_vm13, %v587_v44, %v589_v4  ;;  %v580_v44 = vmul.f32 %v3890_v5, %v3918_v18 }
 0x199   :  { %v621_v55 = vmul.f32 %v3880_v48, %v3897_v62  ;;  %1841 = vrot.lane.b32.xlu1 %v3625_v40, %s3153_s30  ;;  %v3921_v48 = vrot.slane %v3056_v36, %v3480_v20 }
 0x19a   :  { %1786 = vrot.lane.b32.xlu0 %v3569_v63, %s3154_s14 }
 0x19b   :  { %5873 = vst [vmem:[#allocation49_spill] sm:$0xff] %v3921_v48  ;;  %v591_v2 = vpop.permute.xlu1 %590  ;;  %v677_v39 = vpack.c.bf16 %v621_v55, %v581_v0  ;;  %v583_v55 = vmul.f32 %v3893_v9, %v3913_v56  ;;  %v622_v41 = vmul.f32 %v3921_v48, %v3927_v45  ;;  %v3053_v9 = vld [vmem:[%s5608_s2 + $0x4] ss:$8 sm:$0xf] }
 0x19c   :  { %v469_v49 = vpop.permute.xlu0 %468  ;;  %v3938_v36 = vsel %vm5796_vm13, %v589_v4, %v591_v2  ;;  %v3942_v37 = vsel %vm5796_vm13, %v591_v2, %v585_v10  ;;  %v582_v4 = vmul.f32 %v3930_v38, %v3934_v32  ;;  %v4028_v35 = vrot.slane %v3053_v9, %v3480_v20 }
 0x19d   :  { %v620_v0 = vmul.f32 %v3906_v11, %v3942_v37  ;;  %v623_v42 = vmul.f32 %v3909_v8, %v3938_v36  ;;  %1784 = vrot.lane.b32.xlu1 %v3604_v28, %s3154_s14  ;;  %1164 = vmatprep.subr.bf16.mxu0 %v677_v39  ;;  %v3054_v39 = vld [vmem:[%s5608_s2 + $0x5] ss:$8 sm:$0xf] }
 0x19e   :  { %1750 = vrot.lane.b32.xlu0 %v3542_v51, %s3155_s15  ;;  %v678_v8 = vpack.c.bf16 %v622_v41, %v582_v4  ;;  %v4005_v26 = vrot.slane %v3054_v39, %v3471_v15  ;;  %v4008_v43 = vrot.slane %v3054_v39, %v3484_v21  ;;  %5884 = vst [vmem:[#allocation60_spill] sm:$0xff] %v4028_v35 }
 0x19f   :  { %v676_v2 = vpack.c.bf16 %v620_v0, %v580_v44  ;;  %v467_v10 = vpop.permute.xlu1 %466  ;;  %v679_v17 = vpack.c.bf16 %v623_v42, %v583_v55  ;;  %v3972_v0 = vrot.slane %v3053_v9, %v3473_v16  ;;  %v3978_v42 = vrot.slane %v3054_v39, %v3473_v16 }
 0x1a0   :  { %v505_v11 = vpop.permute.xlu0 %504  ;;  %v3982_v41 = vsel %vm5803_vm14, %v465_v3, %v467_v10  ;;  %5879 = vst [vmem:[#allocation55_spill] sm:$0xff] %v4005_v26  ;;  %5880 = vst [vmem:[#allocation56_spill] sm:$0xff] %v4008_v43  ;;  %v4032_v24 = vsel %vm5803_vm14, %v467_v10, %v469_v49 }
 0x1a1   :  { %1788 = vrot.lane.b32.xlu1 %v3625_v40, %s3154_s14  ;;  %1165 = vmatpush1.bf16.msra.mxu0 %v676_v2  ;;  %5875 = vst [vmem:[#allocation51_spill] sm:$0xff] %v3972_v0  ;;  %5876 = vst [vmem:[#allocation52_spill] sm:$0xff] %v3978_v42  ;;  %v3987_v2 = vrot.slane %v3053_v9, %v3471_v15  ;;  %v501_v48 = vmul.f32 %v3972_v0, %v3982_v41 }
 0x1a2   :  { %1754 = vrot.lane.b32.xlu0 %v3569_v63, %s3155_s15  ;;  %1207 = vmatprep.subr.bf16.mxu1 %v679_v17  ;;  %v3990_v17 = vrot.slane %v3053_v9, %v3484_v21  ;;  %v4019_v0 = vrot.slane %v3054_v39, %v3480_v20  ;;  %5885 = vst [vmem:[#allocation61_spill] sm:$0xff] %v4032_v24 }
 0x1a3   :  { %v471_v44 = vpop.permute.xlu1 %470  ;;  %1208 = vmatpush1.bf16.msra.mxu1 %v678_v8  ;;  %5877 = vst [vmem:[#allocation53_spill] sm:$0xff] %v3987_v2 }
 0x1a4   :  { %v509_v55 = vpop.permute.xlu0 %508  ;;  %5878 = vst [vmem:[#allocation54_spill] sm:$0xff] %v3990_v17  ;;  %v4012_v13 = vsel %vm5803_vm14, %v469_v49, %v471_v44  ;;  %v4016_v6 = vsel %vm5803_vm14, %v471_v44, %v465_v3  ;;  %5883 = vst [vmem:[#allocation59_spill] sm:$0xff] %v4019_v0 }
 0x1a5   :  { %1752 = vrot.lane.b32.xlu1 %v3604_v28, %s3155_s15  ;;  %5881 = vst [vmem:[#allocation57_spill] sm:$0xff] %v4012_v13  ;;  %5882 = vst [vmem:[#allocation58_spill] sm:$0xff] %v4016_v6 }
 0x1a6   :  { %1766 = vrot.lane.b32.xlu0 %v3542_v51, %s3156_s16 }
 0x1a7   :  { %v507_v8 = vpop.permute.xlu1 %506 }
 0x1a8   :  { %v3992_v4 = vpop.permute.xlu0 %384  ;;  %v3996_v38 = vsel %vm5681_vm15, %v505_v11, %v507_v8 }
 0x1a9   :  { %v541_v5 = vmul.f32 %v3978_v42, %v3996_v38  ;;  %1756 = vrot.lane.b32.xlu1 %v3625_v40, %s3155_s15  ;;  %v4025_v42 = vsel %vm5681_vm15, %v507_v8, %v509_v55  ;;  %v500_v8 = vmul.f32 %v3987_v2, %v4016_v6 }
 0x1aa   :  { %1770 = vrot.lane.b32.xlu0 %v3569_v63, %s3156_s16  ;;  %v542_v49 = vmul.f32 %v4019_v0, %v4025_v42 }
 0x1ab   :  { %v511_v29 = vpop.permute.xlu1 %510  ;;  %v673_v27 = vpack.c.bf16 %v541_v5, %v501_v48  ;;  %v503_v48 = vmul.f32 %v3990_v17, %v4012_v13  ;;  %v3051_v17 = vld [vmem:[%s5608_s2 + $0x2] ss:$8 sm:$0xf] }
 0x1ac   :  { %v389_v3 = vpop.permute.xlu0 %388  ;;  %v4036_v39 = vsel %vm5681_vm15, %v509_v55, %v511_v29  ;;  %v4040_v44 = vsel %vm5681_vm15, %v511_v29, %v505_v11  ;;  %v502_v55 = vmul.f32 %v4028_v35, %v4032_v24  ;;  %vm5745_vm15 = vcmp.lt.s32.totalorder %v3469_v14, 65  ;;  %v3084_v35 = vld [vmem:[%s5608_s2 + $0x60] ss:$8 sm:$0xf] }
 0x1ad   :  { %5886 = vst [vmem:[#allocation62_spill] sm:$0xff] %v4040_v44  ;;  %v540_v5 = vmul.f32 %v4005_v26, %v4040_v44  ;;  %v543_v9 = vmul.f32 %v4008_v43, %v4036_v39  ;;  %1768 = vrot.lane.b32.xlu1 %v3604_v28, %s3156_s16  ;;  %1166 = vmatprep.subr.bf16.mxu0 %v673_v27  ;;  %v3052_v27 = vld [vmem:[%s5608_s2 + $0x3] ss:$8 sm:$0xf] }
 0x1ae   :  { %1718 = vrot.lane.b32.xlu0 %v3542_v51, %s3157_s17  ;;  %v674_v43 = vpack.c.bf16 %v542_v49, %v502_v55  ;;  %v4079_v49 = vrot.slane %v3052_v27, %v3473_v16  ;;  %v4098_v0 = vrot.slane %v3051_v17, %v3471_v15  ;;  %v4101_v2 = vrot.slane %v3051_v17, %v3484_v21 }
 0x1af   :  { %v672_v29 = vpack.c.bf16 %v540_v5, %v500_v8  ;;  %v387_v11 = vpop.permute.xlu1 %386  ;;  %v675_v10 = vpack.c.bf16 %v543_v9, %v503_v48  ;;  %v3086_v48 = vld [vmem:[%s5608_s2 + $0x62] ss:$8 sm:$0xf]  ;;  %v4073_v9 = vrot.slane %v3051_v17, %v3473_v16  ;;  %v4116_v61 = vrot.slane %v3052_v27, %v3471_v15 }
 0x1b0   :  { %v425_v26 = vpop.permute.xlu0 %424  ;;  %5888 = vst [vmem:[#allocation64_spill] sm:$0xff] %v4079_v49  ;;  %v4092_v55 = vrot.slane %v3086_v48, %v3473_v16  ;;  %5892 = vst [vmem:[#allocation68_spill] sm:$0xff] %v4098_v0  ;;  %v4119_v25 = vrot.slane %v3052_v27, %v3484_v21  ;;  %v4122_v7 = vrot.slane %v3086_v48, %v3480_v20 }
 0x1b1   :  { %1772 = vrot.lane.b32.xlu1 %v3625_v40, %s3156_s16  ;;  %1167 = vmatpush1.bf16.msra.mxu0 %v672_v29  ;;  %5887 = vst [vmem:[#allocation63_spill] sm:$0xff] %v4073_v9  ;;  %v4084_v29 = vsel %vm5751_vm1, %v3992_v4, %v387_v11  ;;  %5893 = vst [vmem:[#allocation69_spill] sm:$0xff] %v4101_v2  ;;  %v4139_v57 = vrot.slane %v3086_v48, %v3484_v21 }
 0x1b2   :  { %1722 = vrot.lane.b32.xlu0 %v3569_v63, %s3157_s17  ;;  %1209 = vmatprep.subr.bf16.mxu1 %v675_v10  ;;  %5889 = vst [vmem:[#allocation65_spill] sm:$0xff] %v4084_v29  ;;  %5891 = vst [vmem:[#allocation67_spill] sm:$0xff] %v4092_v55  ;;  %v421_v47 = vmul.f32 %v4073_v9, %v4084_v29  ;;  %v4134_v9 = vrot.slane %v3052_v27, %v3480_v20  ;;  %v318_v29 = vld [vmem:[%s5608_s2] ss:$8 sm:$0xf] }
 0x1b3   :  { %v391_v8 = vpop.permute.xlu1 %390  ;;  %1210 = vmatpush1.bf16.msra.mxu1 %v674_v43  ;;  %v4089_v43 = vrot.slane %v3086_v48, %v3471_v15  ;;  %5895 = vst [vmem:[#allocation71_spill] sm:$0xff] %v4116_v61  ;;  %5896 = vst [vmem:[#allocation72_spill] sm:$0xff] %v4119_v25  ;;  %v4142_v1 = vrot.slane %v3084_v35, %v3471_v15  ;;  %v4152_v27 = vrot.slane %v3051_v17, %v3480_v20 }
 0x1b4   :  { %v429_v5 = vpop.permute.xlu0 %428  ;;  %5897 = vst [vmem:[#allocation73_spill] sm:$0xff] %v4122_v7  ;;  %v4126_v52 = vsel %vm5751_vm1, %v389_v3, %v391_v8  ;;  %5900 = vst [vmem:[#allocation76_spill] sm:$0xff] %v4134_v9 }
 0x1b5   :  { %1720 = vrot.lane.b32.xlu1 %v3604_v28, %s3157_s17  ;;  %5890 = vst [vmem:[#allocation66_spill] sm:$0xff] %v4089_v43  ;;  %5898 = vst [vmem:[#allocation74_spill] sm:$0xff] %v4126_v52  ;;  %v423_v17 = vmul.f32 %v4101_v2, %v4126_v52  ;;  %v3083_v2 = vld [vmem:[%s5608_s2 + $0x47] ss:$8 sm:$0xf] }
 0x1b6   :  { %1734 = vrot.lane.b32.xlu0 %v3542_v51, %s3158_s18  ;;  %5901 = vst [vmem:[#allocation77_spill] sm:$0xff] %v4139_v57  ;;  %5903 = vst [vmem:[#allocation79_spill] sm:$0xff] %v4152_v27  ;;  %v4239_v52 = vrot.slane %v3083_v2, %v3473_v16 }
 0x1b7   :  { %v427_v10 = vpop.permute.xlu1 %426 }
 0x1b8   :  { %v4103_v19 = vpop.permute.xlu0 %303  ;;  %v4107_v50 = vsel %vm5745_vm15, %v425_v26, %v427_v10  ;;  %v4146_v12 = vsel %vm5745_vm15, %v427_v10, %v429_v5 }
 0x1b9   :  { %5894 = vst [vmem:[#allocation70_spill] sm:$0xff] %v4107_v50  ;;  %v461_v34 = vmul.f32 %v4079_v49, %v4107_v50  ;;  %1724 = vrot.lane.b32.xlu1 %v3625_v40, %s3157_s17  ;;  %v4131_v49 = vsel %vm5751_vm1, %v391_v8, %v3992_v4  ;;  %5902 = vst [vmem:[#allocation78_spill] sm:$0xff] %v4146_v12  ;;  %v3085_v4 = vld [vmem:[%s5608_s2 + $0x61] ss:$8 sm:$0xf]  ;;  %v4156_v8 = vsel %vm5751_vm1, %v387_v11, %v389_v3 }
 0x1ba   :  { %5899 = vst [vmem:[#allocation75_spill] sm:$0xff] %v4131_v49  ;;  %1738 = vrot.lane.b32.xlu0 %v3569_v63, %s3158_s18  ;;  %5904 = vst [vmem:[#allocation80_spill] sm:$0xff] %v4156_v8  ;;  %v462_v10 = vmul.f32 %v4134_v9, %v4146_v12  ;;  %v4203_v9 = vrot.slane %v3085_v4, %v3473_v16  ;;  %v4206_v22 = vrot.slane %v3085_v4, %v3480_v20 }
 0x1bb   :  { %v431_v53 = vpop.permute.xlu1 %430  ;;  %v669_v59 = vpack.c.bf16 %v461_v34, %v421_v47  ;;  %v420_v47 = vmul.f32 %v4098_v0, %v4131_v49  ;;  %v3081_v49 = vld [vmem:[%s5608_s2 + $0x45] ss:$8 sm:$0xf]  ;;  %v4253_v50 = vrot.slane %v3083_v2, %v3484_v21  ;;  %vm352_vm1 = vcmp.lt.s32.totalorder %v3469_v14, 72 }
 0x1bc   :  { %v4158_v48 = vpop.permute.xlu0 %307  ;;  %v4162_v31 = vsel %vm5745_vm15, %v429_v5, %v431_v53  ;;  %v4166_v34 = vsel %vm5745_vm15, %v431_v53, %v425_v26  ;;  %v4179_v5 = vrot.slane %v3084_v35, %v3473_v16  ;;  %v4182_v53 = vrot.slane %v3084_v35, %v3480_v20  ;;  %v3082_v26 = vld [vmem:[%s5608_s2 + $0x46] ss:$8 sm:$0xf] }
 0x1bd   :  { %5905 = vst [vmem:[#allocation81_spill] sm:$0xff] %v4162_v31  ;;  %5906 = vst [vmem:[#allocation82_spill] sm:$0xff] %v4166_v34  ;;  %v460_v3 = vmul.f32 %v4116_v61, %v4166_v34  ;;  %v463_v11 = vmul.f32 %v4119_v25, %v4162_v31  ;;  %1736 = vrot.lane.b32.xlu1 %v3604_v28, %s3158_s18  ;;  %1168 = vmatprep.subr.bf16.mxu0 %v669_v59  ;;  %vm313_vm15 = vcmp.lt.s32.totalorder %v3469_v14, 73 }
 0x1be   :  { %1686 = vrot.lane.b32.xlu0 %v3542_v51, %s3159_s19  ;;  %v4192_v25 = vrot.slane %v3084_v35, %v3484_v21  ;;  %v4195_v61 = vrot.slane %v3085_v4, %v3471_v15  ;;  %v4209_v59 = vrot.slane %v3085_v4, %v3484_v21  ;;  %v3080_v35 = vld [vmem:[%s5608_s2 + $0x44] ss:$8 sm:$0xf]  ;;  %v422_v31 = vmul.f32 %v4152_v27, %v4156_v8 }
 0x1bf   :  { %v668_v0 = vpack.c.bf16 %v460_v3, %v420_v47  ;;  %v4200_v30 = vpop.permute.xlu1 %305  ;;  %v671_v23 = vpack.c.bf16 %v463_v11, %v423_v17  ;;  %v4219_v17 = vrot.slane %v3082_v26, %v3471_v15  ;;  %v4222_v3 = vrot.slane %v3082_v26, %v3473_v16  ;;  %5913 = vst [vmem:[#allocation89_spill] sm:$0xff] %v4253_v50 }
 0x1c0   :  { %v4216_v47 = vpop.permute.xlu0 %344  ;;  %v4225_v11 = vrot.slane %v3082_v26, %v3480_v20  ;;  %v4228_v4 = vrot.slane %v3082_v26, %v3484_v21  ;;  %v4236_v27 = vrot.slane %v3083_v2, %v3471_v15  ;;  %v670_v8 = vpack.c.bf16 %v462_v10, %v422_v31  ;;  %v3050_v26 = vld [vmem:[%s5608_s2 + $0x1] ss:$8 sm:$0xf] }
 0x1c1   :  { %5907 = vst [vmem:[#allocation83_spill] sm:$0xff] %v4219_v17  ;;  %5908 = vst [vmem:[#allocation84_spill] sm:$0xff] %v4222_v3  ;;  %1740 = vrot.lane.b32.xlu1 %v3625_v40, %s3158_s18  ;;  %1169 = vmatpush1.bf16.msra.mxu0 %v668_v0  ;;  %v4250_v34 = vrot.slane %v3083_v2, %v3480_v20  ;;  %v4256_v31 = vrot.slane %v3080_v35, %v3471_v15  ;;  %v3078_v2 = vld [vmem:[%s5608_s2 + $0x42] ss:$8 sm:$0xf] }
 0x1c2   :  { %5909 = vst [vmem:[#allocation85_spill] sm:$0xff] %v4225_v11  ;;  %5910 = vst [vmem:[#allocation86_spill] sm:$0xff] %v4228_v4  ;;  %1690 = vrot.lane.b32.xlu0 %v3569_v63, %s3159_s19  ;;  %1211 = vmatprep.subr.bf16.mxu1 %v671_v23  ;;  %v4260_v12 = vrot.slane %v3080_v35, %v3473_v16  ;;  %v4263_v0 = vrot.slane %v3080_v35, %v3480_v20  ;;  %v3079_v11 = vld [vmem:[%s5608_s2 + $0x43] ss:$8 sm:$0xf] }
 0x1c3   :  { %5911 = vst [vmem:[#allocation87_spill] sm:$0xff] %v4236_v27  ;;  %5912 = vst [vmem:[#allocation88_spill] sm:$0xff] %v4250_v34  ;;  %v310_v10 = vpop.permute.xlu1 %309  ;;  %v4266_v4 = vrot.slane %v3080_v35, %v3484_v21  ;;  %v4269_v6 = vrot.slane %v3081_v49, %v3471_v15  ;;  %1212 = vmatpush1.bf16.msra.mxu1 %v670_v8  ;;  %v4275_v23 = vrot.slane %v3081_v49, %v3473_v16 }
 0x1c4   :  { %5914 = vst [vmem:[#allocation90_spill] sm:$0xff] %v4256_v31  ;;  %5915 = vst [vmem:[#allocation91_spill] sm:$0xff] %v4260_v12  ;;  %v349_v31 = vpop.permute.xlu0 %348  ;;  %v4278_v12 = vrot.slane %v318_v29, %v3473_v16  ;;  %v4284_v35 = vrot.slane %v3050_v26, %v3473_v16  ;;  %v4290_v8 = vrot.slane %v3081_v49, %v3484_v21 }
 0x1c5   :  { %5916 = vst [vmem:[#allocation92_spill] sm:$0xff] %v4263_v0  ;;  %5917 = vst [vmem:[#allocation93_spill] sm:$0xff] %v4266_v4  ;;  %1688 = vrot.lane.b32.xlu1 %v3604_v28, %s3159_s19  ;;  %v4287_v4 = vrot.slane %v3081_v49, %v3480_v20  ;;  %v4293_v0 = vrot.slane %v318_v29, %v3480_v20  ;;  %v4310_v49 = vrot.slane %v318_v29, %v3471_v15 }
 0x1c6   :  { %5918 = vst [vmem:[#allocation94_spill] sm:$0xff] %v4269_v6  ;;  %5919 = vst [vmem:[#allocation95_spill] sm:$0xff] %v4275_v23  ;;  %v4299_v6 = vsel %vm313_vm15, %v4103_v19, %v4200_v30  ;;  %1702 = vrot.lane.b32.xlu0 %v3542_v51, %s3160_s20  ;;  %v4304_v23 = vrot.slane %v3078_v2, %v3471_v15  ;;  %v4319_v50 = vrot.slane %v3078_v2, %v3480_v20 }
 0x1c7   :  { %5920 = vst [vmem:[#allocation96_spill] sm:$0xff] %v4278_v12  ;;  %5921 = vst [vmem:[#allocation97_spill] sm:$0xff] %v4284_v35  ;;  %v347_v13 = vpop.permute.xlu1 %346  ;;  %v341_v3 = vmul.f32 %v4278_v12, %v4299_v6  ;;  %v4346_v24 = vrot.slane %v3050_v26, %v3484_v21  ;;  %v4349_v17 = vrot.slane %v3078_v2, %v3484_v21 }
 0x1c8   :  { %5922 = vst [vmem:[#allocation98_spill] sm:$0xff] %v4287_v4  ;;  %5923 = vst [vmem:[#allocation99_spill] sm:$0xff] %v4290_v8  ;;  %v4307_v4 = vrot.slane %v3078_v2, %v3473_v16  ;;  %v4313_v8 = vrot.slane %v318_v29, %v3484_v21  ;;  %v4321_v44 = vpop.permute.xlu0 %1931  ;;  %v4332_v29 = vrot.slane %v3050_v26, %v3471_v15 }
 0x1c9   :  { %5924 = vst [vmem:[#allocation100_spill] sm:$0xff] %v4299_v6  ;;  %5925 = vst [vmem:[#allocation101_spill] sm:$0xff] %v4304_v23  ;;  %v4324_v23 = vrot.slane %v3050_v26, %v3480_v20  ;;  %1692 = vrot.lane.b32.xlu1 %v3625_v40, %s3159_s19  ;;  %v4354_v12 = vsel %vm313_vm15, %v4158_v48, %v310_v10  ;;  %v1481_v26 = vmul.f32 %v4089_v43, %v3819_v33 }
 0x1ca   :  { %5926 = vst [vmem:[#allocation102_spill] sm:$0xff] %v4307_v4  ;;  %5927 = vst [vmem:[#allocation103_spill] sm:$0xff] %v4310_v49  ;;  %v4329_v4 = vsel %vm352_vm1, %v4216_v47, %v347_v13  ;;  %1706 = vrot.lane.b32.xlu0 %v3569_v63, %s3160_s20  ;;  %v1482_v2 = vmul.f32 %v4092_v55, %v3815_v60 }
 0x1cb   :  { %5928 = vst [vmem:[#allocation104_spill] sm:$0xff] %v4313_v8  ;;  %5929 = vst [vmem:[#allocation105_spill] sm:$0xff] %v4319_v50  ;;  %v4339_v50 = vsel %vm313_vm15, %v310_v10, %v4103_v19  ;;  %v4357_v19 = vrot.slane %v3079_v11, %v3471_v15  ;;  %v4371_v10 = vmul.f32 %v4122_v7, %v3840_v46 }
 0x1cc   :  { %5930 = vst [vmem:[#allocation106_spill] sm:$0xff] %v4321_v44  ;;  %5931 = vst [vmem:[#allocation107_spill] sm:$0xff] %v4324_v23  ;;  %v381_v44 = vmul.f32 %v4284_v35, %v4329_v4  ;;  %v4361_v35 = vsel %vm352_vm1, %v347_v13, %v349_v31  ;;  %v4377_v13 = vsel %vm313_vm15, %v4200_v30, %v4158_v48 }
 0x1cd   :  { %5932 = vst [vmem:[#allocation108_spill] sm:$0xff] %v4332_v29  ;;  %5933 = vst [vmem:[#allocation109_spill] sm:$0xff] %v4346_v24  ;;  %v340_v6 = vmul.f32 %v4310_v49, %v4339_v50  ;;  %v343_v46 = vmul.f32 %v4313_v8, %v4354_v12  ;;  %v382_v30 = vmul.f32 %v4324_v23, %v4361_v35  ;;  %1704 = vrot.lane.b32.xlu1 %v3604_v28, %s3160_s20 }
 0x1ce   :  { %5934 = vst [vmem:[#allocation110_spill] sm:$0xff] %v4349_v17  ;;  %5935 = vst [vmem:[#allocation111_spill] sm:$0xff] %v4357_v19  ;;  %v351_v17 = vpop.permute.xlu1 %350  ;;  %v665_v15 = vpack.c.bf16 %v381_v44, %v341_v3  ;;  %v4381_v19 = vpop.permute.xlu0 %1935  ;;  %v1484_v3 = vmul.f32 %v4139_v57, %v3844_v54  ;;  %1654 = vrot.lane.b32.xlu0 %v3542_v51, %s3161_s0  ;;  %v1501_v49 = vpack.c.bf16 %v1481_v26, %v1481_v26 }
 0x1cf   :  { %v4385_v60 = vsel %vm352_vm1, %v349_v31, %v351_v17  ;;  %v4390_v33 = vsel %vm352_vm1, %v351_v17, %v4216_v47  ;;  %v4405_v47 = vrot.slane %v3079_v11, %v3473_v16  ;;  %v4408_v17 = vrot.slane %v3079_v11, %v3480_v20 }
 0x1d0   :  { %v380_v44 = vmul.f32 %v4332_v29, %v4390_v33  ;;  %v383_v48 = vmul.f32 %v4346_v24, %v4385_v60  ;;  %1170 = vmatprep.subr.bf16.mxu0 %v665_v15  ;;  %v342_v31 = vmul.f32 %v4293_v0, %v4377_v13  ;;  %v4415_v24 = vrot.slane %v3079_v11, %v3484_v21  ;;  %v3143_v15 = vld [vmem:[%s5607_s7] sm:$0xff]  }
 0x1d1   :  { %5936 = vst [vmem:[#allocation112_spill] sm:$0xff] %v4405_v47  ;;  %5937 = vst [vmem:[#allocation113_spill] sm:$0xff] %v4408_v17  ;;  %v1502_v16 = vpack.c.bf16 %v1482_v2, %v1482_v2  ;;  %v1503_v20 = vpack.c.bf16 %v4371_v10, %v4371_v10  ;;  %v1454_v23 = vmul.f32 %v4195_v61, %v3897_v62  ;;  %1708 = vrot.lane.b32.xlu1 %v3625_v40, %s3160_s20 }
 0x1d2   :  { %5938 = vst [vmem:[#allocation114_spill] sm:$0xff] %v4415_v24  ;;  %v664_v29 = vpack.c.bf16 %v380_v44, %v340_v6  ;;  %v4417_v8 = vpop.permute.xlu1 %1933  ;;  %v667_v54 = vpack.c.bf16 %v383_v48, %v343_v46  ;;  %v4423_v57 = vpop.permute.xlu0 %1899  ;;  %v1455_v21 = vmul.f32 %v4203_v9, %v3927_v45  ;;  %v1457_v6 = vmul.f32 %v4209_v59, %v3942_v37  ;;  %v5940_v44 = vld [vmem:[#allocation61_spill] sm:$0xff]  ;;  %v5941_v48 = vld [vmem:[#allocation84_spill] sm:$0xff] }
 0x1d3   :  { %v666_v11 = vpack.c.bf16 %v382_v30, %v342_v31  ;;  %v1504_v26 = vpack.c.bf16 %v1484_v3, %v1484_v3  ;;  %v1427_v62 = vmul.f32 %v4142_v1, %v3885_v58  ;;  %v1428_v2 = vmul.f32 %v4179_v5, %v3934_v32  ;;  %1658 = vrot.lane.b32.xlu0 %v3569_v63, %s3161_s0  ;;  %v5942_v31 = vld [vmem:[#allocation62_spill] sm:$0xff] }
 0x1d4   :  { %1171 = vmatpush1.bf16.msra.mxu0 %v664_v29  ;;  %1213 = vmatprep.subr.bf16.mxu1 %v667_v54  ;;  %v1429_v45 = vmul.f32 %v4182_v53, %v3913_v56  ;;  %v1430_v37 = vmul.f32 %v4192_v25, %v3918_v18  ;;  %v1456_v29 = vmul.f32 %v4206_v22, %v3938_v36  ;;  %v1517_v56 = vsel %vm76_vm0, %v1501_v49, 0  ;;  %v5943_v54 = vld [vmem:[#allocation89_spill] sm:$0xff] }
 0x1d5   :  { %1214 = vmatpush1.bf16.msra.mxu1 %v666_v11  ;;  %3090 = vmatprep.subr.msk.bf16.mxu0 %vm76_vm0, %v1502_v16  ;;  %v1497_v10 = vpack.c.bf16 %v1454_v23, %v1427_v62  ;;  %v1400_v32 = vmul.f32 %v4236_v27, %v3996_v38  ;;  %v1401_v46 = vmul.f32 %v4239_v52, %v4025_v42  ;;  %v5939_v23 = vld [vmem:[#allocation83_spill] sm:$0xff]  ;;  %v5944_v11 = vld [vmem:[#allocation57_spill] sm:$0xff]  ;;  %v5947_v62 = vld [vmem:[#allocation86_spill] sm:$0xff] }
 0x1d6   :  { %v4447_v58 = vpop.permute.xlu1 %1937  ;;  %v4453_v30 = vpop.permute.xlu0 %1903  ;;  %3092 = vmatprep.subr.msk.bf16.mxu1 %vm76_vm0, %v1504_v26  ;;  %v1402_v18 = vmul.f32 %v4250_v34, %v4036_v39  ;;  %1656 = vrot.lane.b32.xlu1 %v3604_v28, %s3161_s0  ;;  %v1498_v36 = vpack.c.bf16 %v1455_v21, %v1428_v2  ;;  %v1500_v38 = vpack.c.bf16 %v1457_v6, %v1430_v37  ;;  %v1523_v39 = vsel %vm76_vm0, %v1503_v20, 0  ;;  %v5945_v21 = vld [vmem:[#allocation85_spill] sm:$0xff]  ;;  %v5946_v26 = vld [vmem:[#allocation58_spill] sm:$0xff] }
 0x1d7   :  { %3075 = vmatmul.mubr.msk.bf16.vlgmr.msra.gmra.mxu0 %vm1034_vm11, %v3143_v15  ;;  %v1373_v42 = vmul.f32 %v5939_v23, %v3982_v41  ;;  %v1374_v3 = vmul.f32 %v5941_v48, %v5940_v44  ;;  %v1403_v16 = vmul.f32 %v5943_v54, %v5942_v31  ;;  %1670 = vrot.lane.b32.xlu0 %v3542_v51, %s3162_s21  ;;  %v5949_v44 = vld [vmem:[#allocation95_spill] sm:$0xff]  ;;  %v5950_v20 = vmov 0   ;;  %v5953_v34 = vld [vmem:[#allocation82_spill] sm:$0xff] }
 0x1d8   :  { %1535 = vmatpush1.bf16.msra.mxu0 %v1517_v56  ;;  %3077 = vmatmul.mubr.msk.bf16.vlgmr.msra.gmra.mxu1 %vm1034_vm11, %v3143_v15  ;;  %v1499_v49 = vpack.c.bf16 %v1456_v29, %v1429_v45  ;;  %v1375_v6 = vmul.f32 %v5945_v21, %v5944_v11  ;;  %v1376_v41 = vmul.f32 %v5947_v62, %v5946_v26  ;;  %v5948_v56 = vld [vmem:[#allocation78_spill] sm:$0xff]  ;;  %v5954_v26 = vld [vmem:[#allocation99_spill] sm:$0xff] }
 0x1d9   :  { %1536 = vmatprep.subr.bf16.mxu0 %v1498_v36  ;;  %1578 = vmatpush1.bf16.msra.mxu1 %v1523_v39  ;;  %v1493_v37 = vpack.c.bf16 %v1400_v32, %v1373_v42  ;;  %v1347_v31 = vmul.f32 %v5949_v44, %v5948_v56  ;;  %v1494_v15 = vpack.c.bf16 %v1401_v46, %v1374_v3  ;;  %v5951_v29 = vld [vmem:[#allocation70_spill] sm:$0xff]  ;;  %v5955_v32 = vld [vmem:[#allocation65_spill] sm:$0xff]  ;;  %v5957_v56 = vld [vmem:[#allocation80_spill] sm:$0xff] }
 0x1da   :  { %v4476_v2 = vpop.permute.xlu1 %1901  ;;  %v4480_v23 = vpop.permute.xlu0 %1915  ;;  %1579 = vmatprep.subr.bf16.mxu1 %v1500_v38  ;;  %1560 = vmatprep.mubr.bf16.mxu0 %v5950_v20  ;;  %v1495_v45 = vpack.c.bf16 %v1402_v18, %v1375_v6  ;;  %v5952_v11 = vld [vmem:[#allocation94_spill] sm:$0xff]  ;;  %v1349_v36 = vmul.f32 %v5954_v26, %v5953_v34  ;;  %v5958_v44 = vld [vmem:[#allocation91_spill] sm:$0xff]  ;;  %v1496_v46 = vpack.c.bf16 %v1403_v16, %v1376_v41  ;;  %v5960_v3 = vld [vmem:[#allocation92_spill] sm:$0xff] }
 0x1db   :  { %v1346_v21 = vmul.f32 %v5952_v11, %v5951_v29  ;;  %1660 = vrot.lane.b32.xlu1 %v3625_v40, %s3161_s0  ;;  %v5956_v42 = vld [vmem:[#allocation90_spill] sm:$0xff]  ;;  %v1320_v38 = vmul.f32 %v5958_v44, %v5957_v56  ;;  %1674 = vrot.lane.b32.xlu0 %v3569_v63, %s3162_s21  ;;  %v5961_v29 = vld [vmem:[#allocation75_spill] sm:$0xff]  ;;  %v5962_v34 = vld [vmem:[#allocation93_spill] sm:$0xff]  ;;  %v1293_v16 = vmul.f32 %v4405_v47, %v4361_v35 }
 0x1dc   :  { %1537 = vmatpush1.bf16.msra.mxu0 %v1497_v10  ;;  %v1319_v39 = vmul.f32 %v5956_v42, %v5955_v32  ;;  %v5959_v18 = vld [vmem:[#allocation74_spill] sm:$0xff]  ;;  %v1322_v11 = vmul.f32 %v5962_v34, %v5961_v29  ;;  %v5963_v26 = vld [vmem:[#allocation81_spill] sm:$0xff]  ;;  %1603 = vmatprep.mubr.bf16.mxu1 %v5950_v20  ;;  %v1940_v41 = vsel %vm974_vm2, %v4417_v8, %v4381_v19 }
 0x1dd   :  { %1538 = vmatprep.subr.bf16.mxu0 %v1494_v15  ;;  %v1321_v6 = vmul.f32 %v5960_v3, %v5959_v18  ;;  %v5964_v27 = vld [vmem:[#allocation98_spill] sm:$0xff]  ;;  %1580 = vmatpush1.bf16.msra.mxu1 %v1499_v49  ;;  %v1490_v56 = vpack.c.bf16 %v1347_v31, %v1320_v38  ;;  %v1295_v42 = vmul.f32 %v4415_v24, %v4390_v33  ;;  %v5967_v31 = vld [vmem:[#allocation111_spill] sm:$0xff] }
 0x1de   :  { %v1348_v10 = vmul.f32 %v5964_v27, %v5963_v26  ;;  %v1906_v62 = vpop.permute.xlu1 %1905  ;;  %v1622_v32 = vld [vmem:[%s5609_s8] sm:$0xff]  ;;  %v1920_v26 = vpop.permute.xlu0 %1919  ;;  %1581 = vmatprep.subr.bf16.mxu1 %v1496_v46  ;;  %v1489_v18 = vpack.c.bf16 %v1346_v21, %v1319_v39  ;;  %v1492_v35 = vpack.c.bf16 %v1349_v36, %v1322_v11  ;;  %v5968_v11 = vld [vmem:[#allocation3_spill] sm:$0xff]  ;;  %v5969_v39 = vld [vmem:[#allocation4_spill] sm:$0xff] }
 0x1df   :  { %v5965_v15 = vld [vmem:[#allocation106_spill] sm:$0xff]  ;;  %1672 = vrot.lane.b32.xlu1 %v3604_v28, %s3162_s21  ;;  %1626 = vperm.xlu0 %3140, %v1622_v32   ;;  %v1944_v33 = vmul.f32 %v1940_v41, %v5969_v39  ;;  %v5970_v46 = vld [vmem:[#allocation100_spill] sm:$0xff] }
 0x1e0   :  { %v1941_v49 = vsel %vm974_vm2, %v5965_v15, %v4417_v8  ;;  %v5966_v29 = vld [vmem:[#allocation102_spill] sm:$0xff]  ;;  %1539 = vmatpush1.bf16.msra.mxu0 %v1493_v37  ;;  %v1939_v8 = vsel %vm974_vm2, %v4381_v19, %v4447_v58  ;;  %v1942_v21 = vsel %vm974_vm2, %v4447_v58, %v5965_v15  ;;  %v1292_v37 = vmul.f32 %v5967_v31, %v4329_v4  ;;  %v5973_v4 = vld [vmem:[#allocation5_spill] sm:$0xff]  ;;  %v6045_v31 = vld [vmem:[#allocation72_spill] sm:$0xff] }
 0x1e1   :  { %v1266_v3 = vmul.f32 %v5966_v29, %v4377_v13  ;;  %1540 = vmatprep.subr.bf16.mxu0 %v1490_v56  ;;  %v1491_v13 = vpack.c.bf16 %v1348_v10, %v1321_v6  ;;  %v1943_v36 = vmul.f32 %v1941_v49, %v5968_v11  ;;  %1582 = vmatpush1.bf16.msra.mxu1 %v1495_v45  ;;  %v5971_v29 = vld [vmem:[#allocation101_spill] sm:$0xff]  ;;  %v5972_v24 = vld [vmem:[#allocation110_spill] sm:$0xff]  ;;  %v6026_v11 = vld [vmem:[#allocation56_spill] sm:$0xff] }
 0x1e2   :  { %v1918_v38 = vpop.permute.xlu1 %1917  ;;  %v1265_v19 = vmul.f32 %v5971_v29, %v5970_v46  ;;  %v1268_v47 = vmul.f32 %v5972_v24, %v4339_v50  ;;  %v1294_v58 = vmul.f32 %v4408_v17, %v4385_v60  ;;  %v4539_v32 = vpop.permute.xlu0 %1883  ;;  %1583 = vmatprep.subr.bf16.mxu1 %v1492_v35  ;;  %v1945_v10 = vmul.f32 %v1939_v8, %v5973_v4  ;;  %v5974_v15 = vld [vmem:[#allocation6_spill] sm:$0xff]  ;;  %v5975_v50 = vld [vmem:[#allocation105_spill] sm:$0xff]  ;;  %v6046_v24 = vld [vmem:[#allocation79_spill] sm:$0xff] }
 0x1e3   :  { %v1486_v6 = vpack.c.bf16 %v1293_v16, %v1266_v3  ;;  %v1946_v49 = vmul.f32 %v1942_v21, %v5974_v15  ;;  %v1924_v45 = vsel %vm934_vm4, %v1918_v38, %v1920_v26  ;;  %1676 = vrot.lane.b32.xlu1 %v3625_v40, %s3162_s21  ;;  %v1267_v41 = vmul.f32 %v5975_v50, %v4354_v12 }
 0x1e4   :  { %1541 = vmatpush1.bf16.msra.mxu0 %v1489_v18  ;;  %v1488_v60 = vpack.c.bf16 %v1295_v42, %v1268_v47  ;;  %v1485_v56 = vpack.c.bf16 %v1292_v37, %v1265_v19  ;;  %v1963_v46 = vpack.c.bf16 %v1943_v36, %v1943_v36  ;;  %v1964_v35 = vpack.c.bf16 %v1944_v33, %v1944_v33  ;;  %v5976_v18 = vld [vmem:[#allocation11_spill] sm:$0xff]  ;;  %v5977_v19 = vld [vmem:[#allocation9_spill] sm:$0xff] }
 0x1e5   :  { %1542 = vmatprep.subr.bf16.mxu0 %v1486_v6  ;;  %v1908_v3 = vsel %vm894_vm3, %v4476_v2, %v4453_v30  ;;  %1584 = vmatpush1.bf16.msra.mxu1 %v1491_v13  ;;  %v1910_v8 = vsel %vm894_vm3, %v1906_v62, %v4423_v57  ;;  %v1925_v12 = vsel %vm934_vm4, %v4480_v23, %v1918_v38  ;;  %v3144_v13 = vld [vmem:[%s5607_s7 + $0x10] sm:$0xff]  }
 0x1e6   :  { %v1922_v16 = vpop.permute.xlu1 %1921  ;;  %v1928_v47 = vmul.f32 %v1924_v45, %v5976_v18  ;;  %v1888_v42 = vpop.permute.xlu0 %1887  ;;  %1585 = vmatprep.subr.bf16.mxu1 %v1488_v60  ;;  %v1487_v37 = vpack.c.bf16 %v1294_v58, %v1267_v41  ;;  %v1965_v36 = vpack.c.bf16 %v1945_v10, %v1945_v10  ;;  %v1966_v33 = vpack.c.bf16 %v1946_v49, %v1946_v49  ;;  %v5978_v60 = vld [vmem:[#allocation16_spill] sm:$0xff]  ;;  %v5979_v10 = vld [vmem:[#allocation14_spill] sm:$0xff] }
 0x1e7   :  { %v1926_v21 = vsel %vm934_vm4, %v1922_v16, %v4480_v23  ;;  %v1909_v38 = vsel %vm894_vm3, %v4423_v57, %v4476_v2  ;;  %v1912_v6 = vmul.f32 %v1908_v3, %v5977_v19  ;;  %v1923_v45 = vsel %vm934_vm4, %v1920_v26, %v1922_v16  ;;  %v5980_v41 = vld [vmem:[#allocation10_spill] sm:$0xff]  ;;  %v5982_v16 = vld [vmem:[#allocation15_spill] sm:$0xff] }
 0x1e8   :  { %1543 = vmatpush1.bf16.msra.mxu0 %v1485_v56  ;;  %v1930_v23 = vmul.f32 %v1926_v21, %v5978_v60  ;;  %v1907_v58 = vsel %vm894_vm3, %v4453_v30, %v1906_v62  ;;  %v1914_v49 = vmul.f32 %v1910_v8, %v5979_v10  ;;  %v1927_v56 = vmul.f32 %v1925_v12, %v5980_v41  ;;  %v5983_v12 = vld [vmem:[#allocation19_spill] sm:$0xff] }
 0x1e9   :  { %3095 = vmatprep.subr.msk.bf16.mxu0 %vm76_vm0, %v1964_v35  ;;  %1586 = vmatpush1.bf16.msra.mxu1 %v1487_v37  ;;  %v1973_v30 = vsel %vm76_vm0, %v1963_v46, 0  ;;  %v1960_v62 = vpack.c.bf16 %v1928_v47, %v1912_v6  ;;  %v5981_v35 = vld [vmem:[#allocation8_spill] sm:$0xff]  ;;  %v1929_v8 = vmul.f32 %v1923_v45, %v5982_v16  ;;  %v5985_v46 = vld [vmem:[#allocation18_spill] sm:$0xff] }
 0x1ea   :  { %v1886_v18 = vpop.permute.xlu1 %1885  ;;  %v1852_v57 = vpop.permute.xlu0 %1851  ;;  %3097 = vmatprep.subr.msk.bf16.mxu1 %vm76_vm0, %v1966_v33  ;;  %v1911_v3 = vmul.f32 %v1909_v38, %v5981_v35  ;;  %v5984_v37 = vld [vmem:[#allocation12_spill] sm:$0xff]  ;;  %v1962_v60 = vpack.c.bf16 %v1930_v23, %v1914_v49  ;;  %v5986_v23 = vld [vmem:[#allocation21_spill] sm:$0xff] }
 0x1eb   :  { %v1892_v2 = vsel %vm854_vm5, %v1886_v18, %v1888_v42  ;;  %v1893_v26 = vsel %vm854_vm5, %v4539_v32, %v1886_v18  ;;  %3091 = vmatmul.mubr.msk.bf16.vlgmr.msra.gmra.mxu0 %vm1034_vm11, %v3144_v13  ;;  %v1913_v33 = vmul.f32 %v1907_v58, %v5984_v37  ;;  %v1979_v18 = vsel %vm76_vm0, %v1965_v36, 0  ;;  %v6015_v37 = vld [vmem:[#allocation50_spill] sm:$0xff] }
 0x1ec   :  { %v1896_v21 = vmul.f32 %v1892_v2, %v5983_v12  ;;  %1991 = vmatpush1.bf16.msra.mxu0 %v1973_v30  ;;  %2016 = vmatprep.mubr.bf16.mxu0 %v5950_v20  ;;  %v1959_v10 = vpack.c.bf16 %v1927_v56, %v1911_v3  ;;  %v1895_v47 = vmul.f32 %v1893_v26, %v5985_v46  ;;  %v5987_v56 = vld [vmem:[#allocation22_spill] sm:$0xff]  ;;  %v5993_v12 = vld [vmem:[#allocation28_spill] sm:$0xff] }
 0x1ed   :  { %3093 = vmatmul.mubr.msk.bf16.vlgmr.msra.gmra.mxu1 %vm1034_vm11, %v3144_v13  ;;  %1992 = vmatprep.subr.bf16.mxu0 %v1960_v62  ;;  %v1961_v36 = vpack.c.bf16 %v1929_v8, %v1913_v33 }
 0x1ee   :  { %2032 = vmatpush1.bf16.msra.mxu1 %v1979_v18  ;;  %v1890_v38 = vpop.permute.xlu1 %1889  ;;  %v1956_v6 = vpack.c.bf16 %v1896_v21, %v3604_v28  ;;  %2057 = vmatprep.mubr.bf16.mxu1 %v5950_v20  ;;  %v1856_v45 = vpop.permute.xlu0 %1855  ;;  %v1955_v26 = vpack.c.bf16 %v1895_v47, %v3542_v51  ;;  %v5988_v18 = vld [vmem:[#allocation23_spill] sm:$0xff] }
 0x1ef   :  { %2033 = vmatprep.subr.bf16.mxu1 %v1962_v60  ;;  %v1891_v58 = vsel %vm854_vm5, %v1888_v42, %v1890_v38  ;;  %v1894_v13 = vsel %vm854_vm5, %v1890_v38, %v4539_v32 }
 0x1f0   :  { %v1897_v49 = vmul.f32 %v1891_v58, %v5986_v23  ;;  %v1898_v2 = vmul.f32 %v1894_v13, %v5987_v56  ;;  %1993 = vmatpush1.bf16.msra.mxu0 %v1959_v10 }
 0x1f1   :  { %1994 = vmatprep.subr.bf16.mxu0 %v1956_v6  ;;  %v5989_v6 = vld [vmem:[#allocation24_spill] sm:$0xff] }
 0x1f2   :  { %v1957_v30 = vpack.c.bf16 %v1897_v49, %v3569_v63  ;;  %2034 = vmatpush1.bf16.msra.mxu1 %v1961_v36  ;;  %v1854_v60 = vpop.permute.xlu1 %1853  ;;  %v1958_v62 = vpack.c.bf16 %v1898_v2, %v3625_v40  ;;  %v1868_v42 = vpop.permute.xlu0 %1867  ;;  %v6027_v40 = vld [vmem:[#allocation60_spill] sm:$0xff] }
 0x1f3   :  { %v1861_v8 = vsel %vm774_vm6, %v1852_v57, %v1854_v60  ;;  %v1860_v49 = vsel %vm774_vm6, %v1854_v60, %v1856_v45 }
 0x1f4   :  { %1995 = vmatpush1.bf16.msra.mxu0 %v1955_v26  ;;  %2035 = vmatprep.subr.bf16.mxu1 %v1958_v62  ;;  %v1864_v47 = vmul.f32 %v1861_v8, %v5988_v18  ;;  %v5992_v18 = vld [vmem:[#allocation26_spill] sm:$0xff] }
 0x1f6   :  { %2036 = vmatpush1.bf16.msra.mxu1 %v1957_v30  ;;  %v1858_v32 = vpop.permute.xlu1 %1857  ;;  %v1872_v3 = vpop.permute.xlu0 %1871  ;;  %v5990_v30 = vld [vmem:[#allocation27_spill] sm:$0xff] }
 0x1f7   :  { %v1859_v13 = vsel %vm774_vm6, %v1856_v45, %v1858_v32  ;;  %v1862_v36 = vsel %vm774_vm6, %v1858_v32, %v1852_v57  ;;  %v5994_v32 = vld [vmem:[#allocation29_spill] sm:$0xff]  ;;  %v5995_v45 = vld [vmem:[#allocation30_spill] sm:$0xff] }
 0x1f8   :  { %v1866_v23 = vmul.f32 %v1859_v13, %v5992_v18  ;;  %v1865_v60 = vmul.f32 %v1860_v49, %v5995_v45 }
 0x1fa   :  { %v1870_v21 = vpop.permute.xlu1 %1869  ;;  %v1820_v10 = vpop.permute.xlu0 %1819 }
 0x1fb   :  { %v1877_v33 = vsel %vm814_vm7, %v1868_v42, %v1870_v21  ;;  %v1876_v38 = vsel %vm814_vm7, %v1870_v21, %v1872_v3 }
 0x1fc   :  { %v1880_v58 = vmul.f32 %v1877_v33, %v5989_v6  ;;  %v1881_v62 = vmul.f32 %v1876_v38, %v5990_v30  ;;  %v5991_v33 = vld [vmem:[#allocation25_spill] sm:$0xff] }
 0x1fd   :  { %v1863_v6 = vmul.f32 %v1862_v36, %v5991_v33  ;;  %v6014_v33 = vld [vmem:[#allocation48_spill] sm:$0xff] }
 0x1fe   :  { %v1874_v2 = vpop.permute.xlu1 %1873  ;;  %v1952_v26 = vpack.c.bf16 %v1880_v58, %v1864_v47  ;;  %v1824_v56 = vpop.permute.xlu0 %1823  ;;  %v1953_v30 = vpack.c.bf16 %v1881_v62, %v1865_v60 }
 0x1ff   :  { %v1875_v8 = vsel %vm814_vm7, %v1872_v3, %v1874_v2  ;;  %v1878_v21 = vsel %vm814_vm7, %v1874_v2, %v1868_v42 }
 0x200   :  { %v1879_v57 = vmul.f32 %v1878_v21, %v5993_v12  ;;  %v1882_v46 = vmul.f32 %v1875_v8, %v5994_v32  ;;  %1996 = vmatprep.subr.bf16.mxu0 %v1952_v26  ;;  %v5996_v8 = vld [vmem:[#allocation31_spill] sm:$0xff]  ;;  %v6002_v12 = vld [vmem:[#allocation36_spill] sm:$0xff] }
 0x201   :  { %v6001_v32 = vld [vmem:[#allocation35_spill] sm:$0xff] }
 0x202   :  { %v1951_v47 = vpack.c.bf16 %v1879_v57, %v1863_v6  ;;  %v1822_v38 = vpop.permute.xlu1 %1821  ;;  %v1954_v58 = vpack.c.bf16 %v1882_v46, %v1866_v23  ;;  %v1836_v16 = vpop.permute.xlu0 %1835  ;;  %v5997_v23 = vld [vmem:[#allocation32_spill] sm:$0xff] }
 0x203   :  { %v1829_v13 = vsel %vm694_vm8, %v1820_v10, %v1822_v38  ;;  %v1828_v60 = vsel %vm694_vm8, %v1822_v38, %v1824_v56 }
 0x204   :  { %1997 = vmatpush1.bf16.msra.mxu0 %v1951_v47  ;;  %2037 = vmatprep.subr.bf16.mxu1 %v1954_v58  ;;  %v1832_v49 = vmul.f32 %v1829_v13, %v5996_v8  ;;  %v5998_v47 = vld [vmem:[#allocation33_spill] sm:$0xff] }
 0x205   :  { %2038 = vmatpush1.bf16.msra.mxu1 %v1953_v30 }
 0x206   :  { %v1826_v42 = vpop.permute.xlu1 %1825  ;;  %v1840_v3 = vpop.permute.xlu0 %1839 }
 0x207   :  { %v1830_v46 = vsel %vm694_vm8, %v1826_v42, %v1820_v10  ;;  %v1827_v30 = vsel %vm694_vm8, %v1824_v56, %v1826_v42  ;;  %v6000_v42 = vld [vmem:[#allocation37_spill] sm:$0xff] }
 0x208   :  { %v1831_v58 = vmul.f32 %v1830_v46, %v5998_v47 }
 0x20a   :  { %v1838_v36 = vpop.permute.xlu1 %1837  ;;  %v1783_v2 = vpop.permute.xlu0 %1782 }
 0x20b   :  { %v1845_v26 = vsel %vm734_vm9, %v1836_v16, %v1838_v36  ;;  %v1844_v62 = vsel %vm734_vm9, %v1838_v36, %v1840_v3 }
 0x20c   :  { %v1848_v6 = vmul.f32 %v1845_v26, %v5997_v23  ;;  %v5999_v26 = vld [vmem:[#allocation34_spill] sm:$0xff]  ;;  %v1849_v8 = vmul.f32 %v1844_v62, %v6000_v42  ;;  %v6004_v62 = vld [vmem:[#allocation39_spill] sm:$0xff] }
 0x20d   :  { %v1834_v23 = vmul.f32 %v1827_v30, %v5999_v26 }
 0x20e   :  { %v1842_v21 = vpop.permute.xlu1 %1841  ;;  %v1948_v57 = vpack.c.bf16 %v1848_v6, %v1832_v49  ;;  %v1787_v45 = vpop.permute.xlu0 %1786  ;;  %v6003_v6 = vld [vmem:[#allocation38_spill] sm:$0xff] }
 0x20f   :  { %v1843_v13 = vsel %vm734_vm9, %v1840_v3, %v1842_v21  ;;  %v1846_v10 = vsel %vm734_vm9, %v1842_v21, %v1836_v16  ;;  %v1833_v56 = vmul.f32 %v1828_v60, %v6003_v6 }
 0x210   :  { %v1847_v36 = vmul.f32 %v1846_v10, %v6001_v32  ;;  %v1850_v49 = vmul.f32 %v1843_v13, %v6002_v12  ;;  %1998 = vmatprep.subr.bf16.mxu0 %v1948_v57  ;;  %v6005_v13 = vld [vmem:[#allocation40_spill] sm:$0xff]  ;;  %v6010_v32 = vld [vmem:[#allocation45_spill] sm:$0xff] }
 0x211   :  { %v1949_v30 = vpack.c.bf16 %v1849_v8, %v1833_v56  ;;  %v6006_v56 = vld [vmem:[#allocation41_spill] sm:$0xff] }
 0x212   :  { %v1947_v38 = vpack.c.bf16 %v1847_v36, %v1831_v58  ;;  %v1785_v46 = vpop.permute.xlu1 %1784  ;;  %v1950_v47 = vpack.c.bf16 %v1850_v49, %v1834_v23  ;;  %v1751_v18 = vpop.permute.xlu0 %1750  ;;  %v3094_v23 = vld [vmem:[%s5610_s9 + $0x4] sm:$0xf] }
 0x213   :  { %v4658_v3 = vsel %vm5798_vm10, %v1785_v46, %v1787_v45  ;;  %v4662_v16 = vsel %vm5798_vm10, %v1783_v2, %v1785_v46  ;;  %v6007_v46 = vld [vmem:[#allocation42_spill] sm:$0xff] }
 0x214   :  { %v1795_v21 = vmul.f32 %v4662_v16, %v6004_v62  ;;  %v1796_v57 = vmul.f32 %v4658_v3, %v6005_v13  ;;  %1999 = vmatpush1.bf16.msra.mxu0 %v1947_v38  ;;  %2039 = vmatprep.subr.bf16.mxu1 %v1950_v47  ;;  %v6008_v13 = vld [vmem:[#allocation43_spill] sm:$0xff] }
 0x215   :  { %2040 = vmatpush1.bf16.msra.mxu1 %v1949_v30 }
 0x216   :  { %v1815_v60 = vpack.c.bf16 %v1795_v21, %v1795_v21  ;;  %v1789_v58 = vpop.permute.xlu1 %1788  ;;  %v1755_v10 = vpop.permute.xlu0 %1754  ;;  %v1816_v49 = vpack.c.bf16 %v1796_v57, %v1796_v57 }
 0x217   :  { %v4673_v36 = vsel %vm5798_vm10, %v1787_v45, %v1789_v58  ;;  %v4677_v8 = vsel %vm5798_vm10, %v1789_v58, %v1783_v2  ;;  %3096 = vmatmul.mubr.msk.bf16.vlgmr.msra.gmra.mxu0 %vm1034_vm11, %v3094_v23 }
 0x218   :  { %v1794_v38 = vmul.f32 %v4677_v8, %v6006_v56  ;;  %v1797_v47 = vmul.f32 %v4673_v36, %v6007_v46  ;;  %3099 = vmatprep.subr.msk.bf16.mxu0 %vm76_vm0, %v1815_v60  ;;  %3098 = vmatmul.mubr.msk.bf16.vlgmr.msra.gmra.mxu1 %vm1034_vm11, %v3094_v23  ;;  %v2076_v57 = vsel %vm76_vm0, %v1816_v49, 0 }
 0x219   :  { %2113 = vmatprep.mubr.bf16.mxu0 %v5950_v20  ;;  %2154 = vmatprep.mubr.bf16.mxu1 %v5950_v20 }
 0x21a   :  { %v1814_v45 = vpack.c.bf16 %v1794_v38, %v1794_v38  ;;  %v1817_v30 = vpack.c.bf16 %v1797_v47, %v1797_v47  ;;  %v1753_v21 = vpop.permute.xlu1 %1752  ;;  %v1767_v2 = vpop.permute.xlu0 %1766 }
 0x21b   :  { %v4693_v23 = vsel %vm5797_vm12, %v1751_v18, %v1753_v21 }
 0x21c   :  { %3101 = vmatprep.subr.msk.bf16.mxu1 %vm76_vm0, %v1817_v30  ;;  %v2070_v58 = vsel %vm76_vm0, %v1814_v45, 0  ;;  %v1763_v30 = vmul.f32 %v4693_v23, %v6008_v13  ;;  %v6009_v45 = vld [vmem:[#allocation44_spill] sm:$0xff]  ;;  %v4717_v13 = vsel %vm5797_vm12, %v1753_v21, %v1755_v10 }
 0x21d   :  { %2129 = vmatpush1.bf16.msra.mxu1 %v2076_v57  ;;  %2088 = vmatpush1.bf16.msra.mxu0 %v2070_v58 }
 0x21e   :  { %v1757_v46 = vpop.permute.xlu1 %1756  ;;  %v1771_v60 = vpop.permute.xlu0 %1770 }
 0x21f   :  { %v4703_v49 = vsel %vm5797_vm12, %v1757_v46, %v1751_v18  ;;  %v4709_v58 = vsel %vm5797_vm12, %v1755_v10, %v1757_v46  ;;  %v6013_v10 = vld [vmem:[#allocation47_spill] sm:$0xff] }
 0x220   :  { %v1762_v18 = vmul.f32 %v4703_v49, %v6010_v32 }
 0x222   :  { %v1769_v38 = vpop.permute.xlu1 %1768  ;;  %v1719_v47 = vpop.permute.xlu0 %1718 }
 0x223   :  { %v4697_v56 = vsel %vm5796_vm13, %v1767_v2, %v1769_v38  ;;  %v4713_v62 = vsel %vm5796_vm13, %v1769_v38, %v1771_v60  ;;  %v6011_v38 = vld [vmem:[#allocation46_spill] sm:$0xff] }
 0x224   :  { %v1779_v57 = vmul.f32 %v4697_v56, %v6009_v45  ;;  %v1765_v42 = vmul.f32 %v4709_v58, %v6011_v38 }
 0x226   :  { %v1773_v6 = vpop.permute.xlu1 %1772  ;;  %v1811_v12 = vpack.c.bf16 %v1779_v57, %v1763_v30  ;;  %v1723_v26 = vpop.permute.xlu0 %1722  ;;  %v6012_v30 = vld [vmem:[#allocation49_spill] sm:$0xff] }
 0x227   :  { %v4723_v45 = vsel %vm5796_vm13, %v1771_v60, %v1773_v6  ;;  %v4727_v46 = vsel %vm5796_vm13, %v1773_v6, %v1767_v2  ;;  %v1780_v57 = vmul.f32 %v4713_v62, %v6012_v30  ;;  %v1764_v60 = vmul.f32 %v4717_v13, %v6015_v37  ;;  %v6020_v37 = vld [vmem:[#allocation53_spill] sm:$0xff] }
 0x228   :  { %v1778_v21 = vmul.f32 %v4727_v46, %v6013_v10  ;;  %v1781_v32 = vmul.f32 %v4723_v45, %v6014_v33  ;;  %2089 = vmatprep.subr.bf16.mxu0 %v1811_v12  ;;  %vm6016_vm13 = vcmp.lt.s32.totalorder %v3469_v14, 63 }
 0x229   :  { %v1812_v41 = vpack.c.bf16 %v1780_v57, %v1764_v60  ;;  %vm6019_vm12 = vmmov %vm6016_vm13 }
 0x22a   :  { %v1810_v35 = vpack.c.bf16 %v1778_v21, %v1762_v18  ;;  %v1721_v19 = vpop.permute.xlu1 %1720  ;;  %v1813_v6 = vpack.c.bf16 %v1781_v32, %v1765_v42  ;;  %v1735_v2 = vpop.permute.xlu0 %1734  ;;  %v6017_v18 = vld [vmem:[#allocation51_spill] sm:$0xff]  ;;  %vm6022_vm10 = vmmov %vm6019_vm12 }
 0x22b   :  { %v4741_v10 = vsel %vm5803_vm14, %v1719_v47, %v1721_v19 }
 0x22c   :  { %2090 = vmatpush1.bf16.msra.mxu0 %v1810_v35  ;;  %2130 = vmatprep.subr.bf16.mxu1 %v1813_v6  ;;  %v1731_v32 = vmul.f32 %v4741_v10, %v6017_v18  ;;  %v4765_v18 = vsel %vm5803_vm14, %v1721_v19, %v1723_v26  ;;  %v6025_v19 = vld [vmem:[#allocation55_spill] sm:$0xff] }
 0x22d   :  { %2131 = vmatpush1.bf16.msra.mxu1 %v1812_v41  ;;  %v6018_v41 = vld [vmem:[#allocation52_spill] sm:$0xff] }
 0x22e   :  { %v1725_v38 = vpop.permute.xlu1 %1724  ;;  %v1739_v30 = vpop.permute.xlu0 %1738 }
 0x22f   :  { %v4751_v35 = vsel %vm5803_vm14, %v1725_v38, %v1719_v47  ;;  %v4757_v57 = vsel %vm5803_vm14, %v1723_v26, %v1725_v38 }
 0x230   :  { %v1730_v47 = vmul.f32 %v4751_v35, %v6020_v37 }
 0x232   :  { %v1737_v15 = vpop.permute.xlu1 %1736  ;;  %v1687_v33 = vpop.permute.xlu0 %1686 }
 0x233   :  { %v4745_v12 = vsel %vm6016_vm13, %v1735_v2, %v1737_v15  ;;  %v4761_v21 = vsel %vm6019_vm12, %v1737_v15, %v1739_v30  ;;  %vm6021_vm13 = vmmov %vm6019_vm12  ;;  %v6023_v15 = vld [vmem:[#allocation54_spill] sm:$0xff]  ;;  %vm6030_vm12 = vcmp.lt.s32.totalorder %v3469_v14, 65 }
 0x234   :  { %v1747_v42 = vmul.f32 %v4745_v12, %v6018_v41  ;;  %v1733_v39 = vmul.f32 %v4757_v57, %v6023_v15 }
 0x236   :  { %v1741_v60 = vpop.permute.xlu1 %1740  ;;  %v1807_v6 = vpack.c.bf16 %v1747_v42, %v1731_v32  ;;  %v1691_v4 = vpop.permute.xlu0 %1690  ;;  %v6024_v32 = vld [vmem:[#allocation59_spill] sm:$0xff] }
 0x237   :  { %v4771_v41 = vsel %vm6021_vm13, %v1739_v30, %v1741_v60  ;;  %v4775_v38 = vsel %vm6022_vm10, %v1741_v60, %v1735_v2  ;;  %v1748_v42 = vmul.f32 %v4761_v21, %v6024_v32  ;;  %v2322_v30 = vld [vmem:[%s5611_s10] sm:$0xff]  ;;  %v1732_v2 = vmul.f32 %v4765_v18, %v6027_v40 }
 0x238   :  { %v1746_v26 = vmul.f32 %v4775_v38, %v6025_v19  ;;  %v1749_v37 = vmul.f32 %v4771_v41, %v6026_v11  ;;  %2091 = vmatprep.subr.bf16.mxu0 %v1807_v6  ;;  %2325 = vperm.xlu1 %3141, %v2322_v30   ;;  %vm6028_vm10 = vcmp.lt.s32.totalorder %v3469_v14, 71 }
 0x239   :  { %v1808_v32 = vpack.c.bf16 %v1748_v42, %v1732_v2  ;;  %vm6033_vm13 = vmmov %vm6028_vm10 }
 0x23a   :  { %v1806_v60 = vpack.c.bf16 %v1746_v26, %v1730_v47  ;;  %v1689_v28 = vpop.permute.xlu1 %1688  ;;  %v1809_v15 = vpack.c.bf16 %v1749_v37, %v1733_v39  ;;  %v1703_v63 = vpop.permute.xlu0 %1702  ;;  %v6032_v47 = vld [vmem:[#allocation63_spill] sm:$0xff]  ;;  %vm6035_vm14 = vmmov %vm6028_vm10 }
 0x23b   :  { %v4792_v6 = vsel %vm6028_vm10, %v1687_v33, %v1689_v28  ;;  %vm6037_vm10 = vmmov %vm6030_vm12 }
 0x23c   :  { %2092 = vmatpush1.bf16.msra.mxu0 %v1806_v60  ;;  %2132 = vmatprep.subr.bf16.mxu1 %v1809_v15  ;;  %6029 = vst [vmem:[#allocation61_spill] sm:$0xff] %v4792_v6  ;;  %v1699_v39 = vmul.f32 %v4792_v6, %v6032_v47  ;;  %v6034_v15 = vld [vmem:[#allocation64_spill] sm:$0xff] }
 0x23d   :  { %2133 = vmatpush1.bf16.msra.mxu1 %v1808_v32  ;;  %v6039_v47 = vld [vmem:[#allocation68_spill] sm:$0xff] }
 0x23e   :  { %v1693_v19 = vpop.permute.xlu1 %1692  ;;  %v1707_v51 = vpop.permute.xlu0 %1706 }
 0x23f   :  { %v4802_v37 = vsel %vm6033_vm13, %v1693_v19, %v1687_v33  ;;  %v4808_v42 = vsel %vm6035_vm14, %v1691_v4, %v1693_v19  ;;  %vm6041_vm14 = vmmov %vm6037_vm10 }
 0x240   :  { %6036 = vst [vmem:[#allocation62_spill] sm:$0xff] %v4808_v42  ;;  %v1698_v33 = vmul.f32 %v4802_v37, %v6039_v47 }
 0x242   :  { %v1705_v11 = vpop.permute.xlu1 %1704  ;;  %v1655_v50 = vpop.permute.xlu0 %1654 }
 0x243   :  { %v4796_v40 = vsel %vm6030_vm12, %v1703_v63, %v1705_v11  ;;  %v4812_v26 = vsel %vm6037_vm10, %v1705_v11, %v1707_v51  ;;  %vm6038_vm12 = vmmov %vm6033_vm13  ;;  %v6042_v11 = vld [vmem:[#allocation69_spill] sm:$0xff] }
 0x244   :  { %6031 = vst [vmem:[#allocation84_spill] sm:$0xff] %v4796_v40  ;;  %v1715_v32 = vmul.f32 %v4796_v40, %v6034_v15  ;;  %v4816_v60 = vsel %vm6038_vm12, %v1689_v28, %v1691_v4  ;;  %vm6040_vm13 = vmmov %vm6037_vm10  ;;  %v1701_v17 = vmul.f32 %v4808_v42, %v6042_v11  ;;  %v6044_v28 = vld [vmem:[#allocation71_spill] sm:$0xff] }
 0x246   :  { %v1709_v30 = vpop.permute.xlu1 %1708  ;;  %v1803_v2 = vpack.c.bf16 %v1715_v32, %v1699_v39  ;;  %v1659_v29 = vpop.permute.xlu0 %1658  ;;  %v6043_v39 = vld [vmem:[#allocation76_spill] sm:$0xff] }
 0x247   :  { %v4822_v15 = vsel %vm6040_vm13, %v1707_v51, %v1709_v30  ;;  %v4826_v19 = vsel %vm6041_vm14, %v1709_v30, %v1703_v63  ;;  %v1716_v32 = vmul.f32 %v4812_v26, %v6043_v39  ;;  %v1700_v51 = vmul.f32 %v4816_v60, %v6046_v24  ;;  %v6048_v24 = vld [vmem:[#allocation96_spill] sm:$0xff] }
 0x248   :  { %v1714_v4 = vmul.f32 %v4826_v19, %v6044_v28  ;;  %v1717_v47 = vmul.f32 %v4822_v15, %v6045_v31  ;;  %2093 = vmatprep.subr.bf16.mxu0 %v1803_v2  ;;  %v6051_v31 = vld [vmem:[#allocation107_spill] sm:$0xff] }
 0x249   :  { %v1804_v30 = vpack.c.bf16 %v1716_v32, %v1700_v51  ;;  %v2195_v32 = vmul.f32 %v4662_v16, %v4089_v43  ;;  %v6050_v43 = vld [vmem:[#allocation77_spill] sm:$0xff] }
 0x24a   :  { %v1802_v6 = vpack.c.bf16 %v1714_v4, %v1698_v33  ;;  %v1657_v27 = vpop.permute.xlu1 %1656  ;;  %v1805_v63 = vpack.c.bf16 %v1717_v47, %v1701_v17  ;;  %v1671_v40 = vpop.permute.xlu0 %1670 }
 0x24b   :  { %v4840_v39 = vsel %vm313_vm15, %v1655_v50, %v1657_v27 }
 0x24c   :  { %2094 = vmatpush1.bf16.msra.mxu0 %v1802_v6  ;;  %2134 = vmatprep.subr.bf16.mxu1 %v1805_v63  ;;  %6047 = vst [vmem:[#allocation89_spill] sm:$0xff] %v4840_v39  ;;  %v1667_v33 = vmul.f32 %v4840_v39, %v6048_v24  ;;  %v6049_v6 = vld [vmem:[#allocation97_spill] sm:$0xff]  ;;  %v2196_v63 = vmul.f32 %v4658_v3, %v4092_v55 }
 0x24d   :  { %2135 = vmatpush1.bf16.msra.mxu1 %v1804_v30  ;;  %v4870_v30 = vsel %vm313_vm15, %v1657_v27, %v1659_v29  ;;  %v2198_v24 = vmul.f32 %v4677_v8, %v6050_v43 }
 0x24e   :  { %v1661_v11 = vpop.permute.xlu1 %1660  ;;  %v1675_v42 = vpop.permute.xlu0 %1674 }
 0x24f   :  { %v4858_v4 = vsel %vm313_vm15, %v1659_v29, %v1661_v11  ;;  %v4862_v51 = vsel %vm313_vm15, %v1661_v11, %v1655_v50  ;;  %v6053_v29 = vld [vmem:[#allocation104_spill] sm:$0xff] }
 0x250   :  { %v1669_v11 = vmul.f32 %v4858_v4, %v6053_v29  ;;  %v2218_v29 = vpack.c.bf16 %v2198_v24, %v2198_v24  ;;  %v2191_v24 = vmul.f32 %v4697_v56, %v4195_v61 }
 0x252   :  { %v1673_v28 = vpop.permute.xlu1 %1672 }
 0x253   :  { %v4844_v2 = vsel %vm352_vm1, %v1671_v40, %v1673_v28  ;;  %v4850_v17 = vsel %vm352_vm1, %v1673_v28, %v1675_v42  ;;  %v2197_v28 = vmul.f32 %v4673_v36, %v4122_v7  ;;  %v6052_v36 = vld [vmem:[#allocation103_spill] sm:$0xff] }
 0x254   :  { %v1683_v47 = vmul.f32 %v4844_v2, %v6049_v6  ;;  %v1684_v39 = vmul.f32 %v4850_v17, %v6051_v31  ;;  %v1666_v27 = vmul.f32 %v4862_v51, %v6052_v36  ;;  %v2192_v36 = vmul.f32 %v4713_v62, %v4203_v9 }
 0x255   :  { %v2217_v14 = vpack.c.bf16 %v2197_v28, %v2197_v28  ;;  %v2190_v62 = vmul.f32 %v4703_v49, %v4192_v25  ;;  %v2186_v49 = vmul.f32 %v4775_v38, %v5943_v54  ;;  %v6057_v28 = vld [vmem:[#allocation87_spill] sm:$0xff] }
 0x256   :  { %v1677_v6 = vpop.permute.xlu1 %1676  ;;  %v1799_v16 = vpack.c.bf16 %v1683_v47, %v1667_v33  ;;  %v6054_v33 = vld [vmem:[#allocation108_spill] sm:$0xff]  ;;  %v6055_v47 = vld [vmem:[#allocation109_spill] sm:$0xff]  ;;  %v2183_v38 = vmul.f32 %v4745_v12, %v6057_v28 }
 0x257   :  { %v4878_v50 = vsel %vm352_vm1, %v1675_v42, %v1677_v6  ;;  %v4882_v3 = vsel %vm352_vm1, %v1677_v6, %v1671_v40  ;;  %v1668_v42 = vmul.f32 %v4870_v30, %v4293_v0  ;;  %v2215_v40 = vpack.c.bf16 %v2195_v32, %v2195_v32 }
 0x258   :  { %v1682_v8 = vmul.f32 %v4882_v3, %v6054_v33  ;;  %v1685_v31 = vmul.f32 %v4878_v50, %v6055_v47  ;;  %2095 = vmatprep.subr.bf16.mxu0 %v1799_v16  ;;  %v2216_v6 = vpack.c.bf16 %v2196_v63, %v2196_v63  ;;  %v2194_v33 = vmul.f32 %v4727_v46, %v4209_v59  ;;  %v1818_v16 = vld [vmem:[%s5610_s9] sm:$0xf] }
 0x259   :  { %v1800_v55 = vpack.c.bf16 %v1684_v39, %v1668_v42  ;;  %v2187_v46 = vmul.f32 %v4693_v23, %v4142_v1  ;;  %v2231_v56 = vsel %vm76_vm0, %v2217_v14, 0  ;;  %v2180_v39 = vmul.f32 %v4765_v18, %v5941_v48  ;;  %v6056_v63 = vld [vmem:[#allocation86_spill] sm:$0xff]  ;;  %v6062_v42 = vld [vmem:[#allocation85_spill] sm:$0xff] }
 0x25a   :  { %v1798_v43 = vpack.c.bf16 %v1682_v8, %v1666_v27  ;;  %v1801_v7 = vpack.c.bf16 %v1685_v31, %v1669_v11  ;;  %v2188_v31 = vmul.f32 %v4717_v13, %v4179_v5  ;;  %v2182_v23 = vmul.f32 %v4751_v35, %v6056_v63  ;;  %v6060_v11 = vld [vmem:[#allocation83_spill] sm:$0xff] }
 0x25b   :  { %v2211_v32 = vpack.c.bf16 %v2191_v24, %v2187_v46  ;;  %v6061_v35 = vld [vmem:[#allocation99_spill] sm:$0xff]  ;;  %v6069_v46 = vld [vmem:[#allocation114_spill] sm:$0xff] }
 0x25c   :  { %2096 = vmatpush1.bf16.msra.mxu0 %v1798_v43  ;;  %2136 = vmatprep.subr.bf16.mxu1 %v1801_v7  ;;  %v2193_v7 = vmul.f32 %v4723_v45, %v4206_v22  ;;  %v2184_v43 = vmul.f32 %v4761_v21, %v4239_v52  ;;  %v2212_v13 = vpack.c.bf16 %v2192_v36, %v2188_v31  ;;  %v6058_v36 = vld [vmem:[#allocation88_spill] sm:$0xff] }
 0x25d   :  { %2137 = vmatpush1.bf16.msra.mxu1 %v1800_v55  ;;  %3104 = vmatprep.subr.msk.bf16.mxu0 %vm76_vm0, %v2216_v6  ;;  %v2225_v55 = vsel %vm76_vm0, %v2215_v40, 0  ;;  %v2214_v45 = vpack.c.bf16 %v2194_v33, %v2190_v62  ;;  %v2189_v21 = vmul.f32 %v4709_v58, %v4182_v53  ;;  %v2185_v27 = vmul.f32 %v4771_v41, %v6058_v36  ;;  %v6059_v58 = vld [vmem:[#allocation95_spill] sm:$0xff]  ;;  %v6064_v31 = vld [vmem:[#allocation84_spill] sm:$0xff] }
 0x25e   :  { %3106 = vmatprep.subr.msk.bf16.mxu1 %vm76_vm0, %v2218_v29  ;;  %v2176_v29 = vmul.f32 %v4812_v26, %v6059_v58  ;;  %v2208_v18 = vpack.c.bf16 %v2184_v43, %v2180_v39  ;;  %v2179_v33 = vmul.f32 %v4741_v10, %v6060_v11  ;;  %v2178_v8 = vmul.f32 %v4826_v19, %v6061_v35  ;;  %v6065_v19 = vld [vmem:[#allocation98_spill] sm:$0xff] }
 0x25f   :  { %3100 = vmatmul.mubr.msk.bf16.vlgmr.msra.gmra.mxu0 %vm1034_vm11, %v1818_v16  ;;  %v2213_v14 = vpack.c.bf16 %v2193_v7, %v2189_v21  ;;  %v2210_v12 = vpack.c.bf16 %v2186_v49, %v2182_v23  ;;  %v2181_v40 = vmul.f32 %v4757_v57, %v6062_v42  ;;  %v2172_v41 = vmul.f32 %v4816_v60, %v5958_v44  ;;  %v6066_v7 = vld [vmem:[#allocation112_spill] sm:$0xff]  ;;  %v6068_v60 = vld [vmem:[#allocation61_spill] sm:$0xff]  ;;  %v6072_v39 = vld [vmem:[#allocation102_spill] sm:$0xff] }
 0x260   :  { %3102 = vmatmul.mubr.msk.bf16.vlgmr.msra.gmra.mxu1 %vm1034_vm11, %v1818_v16  ;;  %2243 = vmatpush1.bf16.msra.mxu0 %v2225_v55  ;;  %v2207_v26 = vpack.c.bf16 %v2183_v38, %v2179_v33  ;;  %v2174_v6 = vmul.f32 %v4802_v37, %v5962_v34  ;;  %v6063_v16 = vld [vmem:[#allocation94_spill] sm:$0xff]  ;;  %v2177_v24 = vmul.f32 %v4822_v15, %v6065_v19  ;;  %v6074_v38 = vld [vmem:[#allocation111_spill] sm:$0xff]  ;;  %v6076_v33 = vld [vmem:[#allocation101_spill] sm:$0xff] }
 0x261   :  { %2244 = vmatprep.subr.bf16.mxu0 %v2212_v13  ;;  %2284 = vmatpush1.bf16.msra.mxu1 %v2231_v56  ;;  %v2175_v10 = vmul.f32 %v6064_v31, %v6063_v16  ;;  %v2209_v62 = vpack.c.bf16 %v2185_v27, %v2181_v40  ;;  %v2168_v57 = vmul.f32 %v4850_v17, %v6066_v7  ;;  %v6067_v55 = vld [vmem:[#allocation90_spill] sm:$0xff]  ;;  %v6070_v56 = vld [vmem:[#allocation92_spill] sm:$0xff]  ;;  %v6078_v40 = vld [vmem:[#allocation105_spill] sm:$0xff] }
 0x262   :  { %2285 = vmatprep.subr.bf16.mxu1 %v2214_v45  ;;  %2268 = vmatprep.mubr.bf16.mxu0 %v5950_v20  ;;  %v2204_v43 = vpack.c.bf16 %v2176_v29, %v2172_v41  ;;  %v2171_v13 = vmul.f32 %v6068_v60, %v6067_v55  ;;  %v2170_v49 = vmul.f32 %v4882_v3, %v6069_v46  ;;  %v6071_v45 = vld [vmem:[#allocation62_spill] sm:$0xff]  ;;  %v6075_v3 = vld [vmem:[#allocation113_spill] sm:$0xff] }
 0x263   :  { %2309 = vmatprep.mubr.bf16.mxu1 %v5950_v20  ;;  %v2206_v37 = vpack.c.bf16 %v2178_v8, %v2174_v6  ;;  %v2173_v21 = vmul.f32 %v6071_v45, %v6070_v56  ;;  %v6073_v23 = vld [vmem:[#allocation110_spill] sm:$0xff]  ;;  %v2169_v29 = vmul.f32 %v4878_v50, %v6075_v3  ;;  %v6077_v8 = vld [vmem:[#allocation89_spill] sm:$0xff]  ;;  %v2165_v41 = vmul.f32 %v4858_v4, %v6078_v40  ;;  %v1084_v4 = vpop.f32.mrf.mxu0  ;;  %v1127_v50 = vpop.f32.mrf.mxu1 }
 0x264   :  { %2245 = vmatpush1.bf16.msra.mxu0 %v2211_v32  ;;  %v2164_v32 = vmul.f32 %v4870_v30, %v6072_v39  ;;  %v2203_v15 = vpack.c.bf16 %v2175_v10, %v2171_v13  ;;  %v2166_v17 = vmul.f32 %v4862_v51, %v6073_v23 }
 0x265   :  { %2246 = vmatprep.subr.bf16.mxu0 %v2208_v18  ;;  %2286 = vmatpush1.bf16.msra.mxu1 %v2213_v14  ;;  %v2167_v14 = vmul.f32 %v4844_v2, %v6074_v38  ;;  %v2205_v27 = vpack.c.bf16 %v2177_v24, %v2173_v21  ;;  %v3103_v2 = vld [vmem:[%s5610_s9 + $0x8] sm:$0xf]  ;;  %v1086_v6 = vpop.f32.mrf.mxu0  ;;  %v1129_v31 = vpop.f32.mrf.mxu1 }
 0x266   :  { %2287 = vmatprep.subr.bf16.mxu1 %v2210_v12  ;;  %v2200_v18 = vpack.c.bf16 %v2168_v57, %v2164_v32  ;;  %v2163_v12 = vmul.f32 %v6077_v8, %v6076_v33  ;;  %v2202_v30 = vpack.c.bf16 %v2170_v49, %v2166_v17  ;;  %v1627_v8 = vpop.permute.xlu0 %1626 }
 0x267   :  { %v1088_v10 = vpop.f32.mrf.mxu0 }
 0x268   :  { %2247 = vmatpush1.bf16.msra.mxu0 %v2207_v26  ;;  %v2199_v51 = vpack.c.bf16 %v2167_v14, %v2163_v12  ;;  %v2201_v26 = vpack.c.bf16 %v2169_v29, %v2165_v41 }
 0x269   :  { %2248 = vmatprep.subr.bf16.mxu0 %v2204_v43  ;;  %2288 = vmatpush1.bf16.msra.mxu1 %v2209_v62  ;;  %v1131_v62 = vpop.f32.mrf.mxu1  ;;  %v1090_v24 = vpop.f32.mrf.mxu0 }
 0x26a   :  { %2289 = vmatprep.subr.bf16.mxu1 %v2206_v37 }
 0x26b   :  { %v1133_v57 = vpop.f32.mrf.mxu1 }
 0x26c   :  { %2249 = vmatpush1.bf16.msra.mxu0 %v2203_v15 }
 0x26d   :  { %2250 = vmatprep.subr.bf16.mxu0 %v2200_v18  ;;  %2290 = vmatpush1.bf16.msra.mxu1 %v2205_v27 }
 0x26e   :  { %2291 = vmatprep.subr.bf16.mxu1 %v2202_v30 }
 0x270   :  { %2251 = vmatpush1.bf16.msra.mxu0 %v2199_v51 }
 0x271   :  { %2292 = vmatpush1.bf16.msra.mxu1 %v2201_v26 }
 0x273   :  { %3105 = vmatmul.mubr.msk.bf16.vlgmr.msra.gmra.mxu0 %vm1034_vm11, %v3103_v2 }
 0x274   :  { %3107 = vmatmul.mubr.msk.bf16.vlgmr.msra.gmra.mxu1 %vm1034_vm11, %v3103_v2  ;;  %2702 = vmatprep.mubr.bf16.mxu0 %v5950_v20 }
 0x275   :  { %2743 = vmatprep.mubr.bf16.mxu1 %v5950_v20 }
 0x297   :  { %v1190_v43 = vpop.f32.mrf.mxu0 }
 0x298   :  { %v1233_v60 = vpop.f32.mrf.mxu1  ;;  %v1191_v14 = vadd.f32 %v1190_v43, %v1084_v4  ;;  %v6080_v43 = vld [vmem:[#allocation7_spill] sm:$0xff] }
 0x299   :  { %v1192_v13 = vpop.f32.mrf.mxu0  ;;  %v1234_v27 = vadd.f32 %v1233_v60, %v1127_v50 }
 0x29a   :  { %v1235_v49 = vpop.f32.mrf.mxu1  ;;  %v1193_v29 = vadd.f32 %v1192_v13, %v1086_v6 }
 0x29b   :  { %v1194_v37 = vpop.f32.mrf.mxu0  ;;  %v1236_v12 = vadd.f32 %v1235_v49, %v1129_v31 }
 0x29c   :  { %v1237_v45 = vpop.f32.mrf.mxu1  ;;  %v1195_v41 = vadd.f32 %v1194_v37, %v1088_v10 }
 0x29d   :  { %v1196_v21 = vpop.f32.mrf.mxu0  ;;  %v1238_v3 = vadd.f32 %v1237_v45, %v1131_v62 }
 0x29e   :  { %v1197_v32 = vadd.f32 %v1196_v21, %v1090_v24  ;;  %v1239_v15 = vpop.f32.mrf.mxu1 }
 0x29f   :  { %v1240_v17 = vadd.f32 %v1239_v15, %v1133_v57 }
 0x2ab   :  { %v1562_v18 = vpop.f32.mrf.mxu0 }
 0x2ac   :  { %v1614_v30 = vadd.f32 %v1562_v18, %v1191_v14 }
 0x2ad   :  { %v1605_v51 = vpop.f32.mrf.mxu1  ;;  %v1564_v26 = vpop.f32.mrf.mxu0 }
 0x2ae   :  { %v1634_v2 = vadd.f32 %v1627_v8, %v1614_v30  ;;  %v1616_v40 = vadd.f32 %v1605_v51, %v1234_v27  ;;  %v1615_v33 = vadd.f32 %v1564_v26, %v1193_v29 }
 0x2af   :  { %v1607_v38 = vpop.f32.mrf.mxu1  ;;  %v1566_v23 = vpop.f32.mrf.mxu0 }
 0x2b0   :  { %v1642_v39 = vmax.f32 %v1634_v2, 0.0  ;;  %v1636_v24 = vadd.f32 %v1627_v8, %v1616_v40  ;;  %v1635_v21 = vadd.f32 %v1627_v8, %v1615_v33  ;;  %v1617_v57 = vadd.f32 %v1607_v38, %v1236_v12  ;;  %v6083_v33 = vld [vmem:[#allocation13_spill] sm:$0xff] }
 0x2b1   :  { %v4976_v4 = vadd.f32 %v1566_v23, %v1195_v41  ;;  %v1568_v50 = vpop.f32.mrf.mxu0  ;;  %v1609_v6 = vpop.f32.mrf.mxu1  ;;  %v6084_v23 = vld [vmem:[#allocation17_spill] sm:$0xff] }
 0x2b2   :  { %v1650_v31 = vadd.f32 %v1642_v39, %v6080_v43  ;;  %v1644_v60 = vmax.f32 %v1636_v24, 0.0  ;;  %v1643_v10 = vmax.f32 %v1635_v21, 0.0  ;;  %v1637_v13 = vadd.f32 %v1627_v8, %v1617_v57  ;;  %v6086_v39 = vld [vmem:[#allocation20_spill] sm:$0xff] }
 0x2b3   :  { %6079 = vst [vmem:[#allocation57_spill] sm:$0xff] %v4976_v4  ;;  %v4979_v49 = vadd.f32 %v1568_v50, %v1197_v32  ;;  %v4981_v37 = vadd.f32 %v1609_v6, %v1238_v3  ;;  %v1611_v62 = vpop.f32.mrf.mxu1 }
 0x2b4   :  { %3026 = vst [vmem:[%s5612_s13] sm:$0xff] %v1650_v31  ;;  %v1652_v38 = vadd.f32 %v1644_v60, %v6083_v33  ;;  %v1651_v40 = vadd.f32 %v1643_v10, %v6084_v23  ;;  %v1645_v45 = vmax.f32 %v1637_v13, 0.0  ;;  %v4988_v15 = vadd.f32 %v1611_v62, %v1240_v17  ;;  %v2326_v60 = vpop.permute.xlu1 %2325 }
 0x2b5   :  { %6081 = vst [vmem:[#allocation58_spill] sm:$0xff] %v4979_v49  ;;  %6082 = vst [vmem:[#allocation78_spill] sm:$0xff] %v4981_v37  ;;  %v6157_v37 = vld [vmem:[#allocation54_spill] sm:$0xff] }
 0x2b6   :  { %6085 = vst [vmem:[#allocation70_spill] sm:$0xff] %v4988_v15  ;;  %3028 = vst [vmem:[%s5612_s13 + $0x10] sm:$0xff] %v1652_v38  ;;  %v1653_v3 = vadd.f32 %v1645_v45, %v6086_v39 }
 0x2b7   :  { %3027 = vst [vmem:[%s5612_s13 + $0x8] sm:$0xff] %v1651_v40 }
 0x2b8   :  { %3029 = vst [vmem:[%s5612_s13 + $0x18] sm:$0xff] %v1653_v3 }
 0x2d7   :  { %v2018_v32 = vpop.f32.mrf.mxu0 }
 0x2d8   :  { %v2059_v27 = vpop.f32.mrf.mxu1 }
 0x2d9   :  { %v2020_v14 = vpop.f32.mrf.mxu0 }
 0x2da   :  { %v2061_v17 = vpop.f32.mrf.mxu1 }
 0x2db   :  { %v2022_v29 = vpop.f32.mrf.mxu0 }
 0x2dc   :  { %v2063_v8 = vpop.f32.mrf.mxu1 }
 0x2dd   :  { %v2023_v18 = vpop.f32.mrf.mxu0 }
 0x2de   :  { %v2064_v12 = vpop.f32.mrf.mxu1 }
 0x31f   :  { %v2115_v30 = vpop.f32.mrf.mxu0 }
 0x320   :  { %v2156_v41 = vpop.f32.mrf.mxu1  ;;  %v2116_v50 = vadd.f32 %v2115_v30, %v2018_v32 }
 0x321   :  { %v2117_v51 = vpop.f32.mrf.mxu0  ;;  %v2157_v6 = vadd.f32 %v2156_v41, %v2059_v27 }
 0x322   :  { %v2158_v26 = vpop.f32.mrf.mxu1  ;;  %v2118_v10 = vadd.f32 %v2117_v51, %v2020_v14 }
 0x323   :  { %v2119_v2 = vpop.f32.mrf.mxu0  ;;  %v2159_v33 = vadd.f32 %v2158_v26, %v2061_v17 }
 0x324   :  { %v2160_v24 = vpop.f32.mrf.mxu1 }
 0x325   :  { %v2120_v21 = vpop.f32.mrf.mxu0 }
 0x326   :  { %v2161_v57 = vpop.f32.mrf.mxu1 }
 0x333   :  { %v2270_v43 = vpop.f32.mrf.mxu0 }
 0x334   :  { %v2318_v13 = vadd.f32 %v2270_v43, %v2116_v50  ;;  %v2311_v62 = vpop.f32.mrf.mxu1  ;;  %v6088_v50 = vld [vmem:[#allocation3_spill] sm:$0xff] }
 0x335   :  { %v2320_v23 = vadd.f32 %v2311_v62, %v2157_v6  ;;  %v2272_v45 = vpop.f32.mrf.mxu0 }
 0x336   :  { %v2319_v39 = vadd.f32 %v2272_v45, %v2118_v10  ;;  %v2328_v29 = vadd.f32 %v2326_v60, %v2318_v13  ;;  %v2313_v18 = vpop.f32.mrf.mxu1  ;;  %v6089_v13 = vld [vmem:[#allocation4_spill] sm:$0xff] }
 0x337   :  { %v2330_v8 = vadd.f32 %v2326_v60, %v2320_v23  ;;  %v2321_v12 = vadd.f32 %v2313_v18, %v2159_v33  ;;  %v2274_v15 = vpop.f32.mrf.mxu0 }
 0x338   :  { %v2329_v2 = vadd.f32 %v2326_v60, %v2319_v39  ;;  %v2332_v24 = vmax.f32 %v2328_v29, 0.0  ;;  %v2315_v21 = vpop.f32.mrf.mxu1  ;;  %v6087_v15 = vld [vmem:[#allocation2_spill] sm:$0xff]  ;;  %v6090_v29 = vld [vmem:[#allocation5_spill] sm:$0xff] }
 0x339   :  { %v2334_v57 = vmax.f32 %v2330_v8, 0.0  ;;  %v2331_v32 = vadd.f32 %v2326_v60, %v2321_v12  ;;  %v2275_v27 = vpop.f32.mrf.mxu0  ;;  %v6091_v8 = vld [vmem:[#allocation6_spill] sm:$0xff] }
 0x33a   :  { %v2333_v30 = vmax.f32 %v2329_v2, 0.0  ;;  %v5000_v41 = vadd.f32 %v2332_v24, %v1650_v31  ;;  %v2316_v14 = vpop.f32.mrf.mxu1 }
 0x33b   :  { %v5002_v51 = vadd.f32 %v2334_v57, %v1652_v38  ;;  %v2335_v17 = vmax.f32 %v2331_v32, 0.0 }
 0x33c   :  { %v5004_v26 = vadd.f32 %v2333_v30, %v1651_v40  ;;  %3030 = vst [vmem:[%s5612_s13 + $0x20] sm:$0xff] %v5000_v41  ;;  %2617 = vrot.lane.b32.xlu0 %v5000_v41, %s3146_s5 }
 0x33d   :  { %3032 = vst [vmem:[%s5612_s13 + $0x30] sm:$0xff] %v5002_v51  ;;  %v5016_v31 = vadd.f32 %v2335_v17, %v1653_v3 }
 0x33e   :  { %3031 = vst [vmem:[%s5612_s13 + $0x28] sm:$0xff] %v5004_v26  ;;  %2619 = vrot.lane.b32.xlu1 %v5004_v26, %s3146_s5 }
 0x33f   :  { %3033 = vst [vmem:[%s5612_s13 + $0x38] sm:$0xff] %v5016_v31 }
 0x340   :  { %2621 = vrot.lane.b32.xlu0 %v5002_v51, %s3146_s5 }
 0x342   :  { %2623 = vrot.lane.b32.xlu1 %v5016_v31, %s3146_s5 }
 0x344   :  { %2585 = vrot.lane.b32.xlu0 %v5000_v41, %s3147_s6 }
 0x346   :  { %2587 = vrot.lane.b32.xlu1 %v5004_v26, %s3147_s6 }
 0x348   :  { %2589 = vrot.lane.b32.xlu0 %v5002_v51, %s3147_s6 }
 0x34a   :  { %2591 = vrot.lane.b32.xlu1 %v5016_v31, %s3147_s6 }
 0x34c   :  { %2601 = vrot.lane.b32.xlu0 %v5000_v41, %s3148_s25 }
 0x34e   :  { %2603 = vrot.lane.b32.xlu1 %v5004_v26, %s3148_s25 }
 0x350   :  { %2605 = vrot.lane.b32.xlu0 %v5002_v51, %s3148_s25 }
 0x352   :  { %2607 = vrot.lane.b32.xlu1 %v5016_v31, %s3148_s25 }
 0x354   :  { %2569 = vrot.lane.b32.xlu0 %v5000_v41, %s3149_s26 }
 0x356   :  { %2571 = vrot.lane.b32.xlu1 %v5004_v26, %s3149_s26 }
 0x358   :  { %2573 = vrot.lane.b32.xlu0 %v5002_v51, %s3149_s26 }
 0x35a   :  { %2575 = vrot.lane.b32.xlu1 %v5016_v31, %s3149_s26 }
 0x35c   :  { %2537 = vrot.lane.b32.xlu0 %v5000_v41, %s3150_s27 }
 0x35e   :  { %2539 = vrot.lane.b32.xlu1 %v5004_v26, %s3150_s27 }
 0x360   :  { %2541 = vrot.lane.b32.xlu0 %v5002_v51, %s3150_s27 }
 0x362   :  { %2543 = vrot.lane.b32.xlu1 %v5016_v31, %s3150_s27 }
 0x364   :  { %2553 = vrot.lane.b32.xlu0 %v5000_v41, %s3151_s28 }
 0x366   :  { %2555 = vrot.lane.b32.xlu1 %v5004_v26, %s3151_s28 }
 0x368   :  { %2557 = vrot.lane.b32.xlu0 %v5002_v51, %s3151_s28 }
 0x36a   :  { %2559 = vrot.lane.b32.xlu1 %v5016_v31, %s3151_s28 }
 0x36c   :  { %2505 = vrot.lane.b32.xlu0 %v5000_v41, %s3152_s29 }
 0x36e   :  { %2507 = vrot.lane.b32.xlu1 %v5004_v26, %s3152_s29 }
 0x370   :  { %2509 = vrot.lane.b32.xlu0 %v5002_v51, %s3152_s29 }
 0x372   :  { %2511 = vrot.lane.b32.xlu1 %v5016_v31, %s3152_s29 }
 0x374   :  { %2521 = vrot.lane.b32.xlu0 %v5000_v41, %s3153_s30 }
 0x376   :  { %2523 = vrot.lane.b32.xlu1 %v5004_v26, %s3153_s30 }
 0x378   :  { %2525 = vrot.lane.b32.xlu0 %v5002_v51, %s3153_s30 }
 0x37a   :  { %2527 = vrot.lane.b32.xlu1 %v5016_v31, %s3153_s30 }
 0x37c   :  { %2468 = vrot.lane.b32.xlu0 %v5000_v41, %s3154_s14 }
 0x37e   :  { %2470 = vrot.lane.b32.xlu1 %v5004_v26, %s3154_s14 }
 0x380   :  { %2472 = vrot.lane.b32.xlu0 %v5002_v51, %s3154_s14 }
 0x382   :  { %2474 = vrot.lane.b32.xlu1 %v5016_v31, %s3154_s14 }
 0x384   :  { %2436 = vrot.lane.b32.xlu0 %v5000_v41, %s3155_s15 }
 0x386   :  { %2438 = vrot.lane.b32.xlu1 %v5004_v26, %s3155_s15 }
 0x388   :  { %2440 = vrot.lane.b32.xlu0 %v5002_v51, %s3155_s15 }
 0x38a   :  { %2442 = vrot.lane.b32.xlu1 %v5016_v31, %s3155_s15 }
 0x38c   :  { %2452 = vrot.lane.b32.xlu0 %v5000_v41, %s3156_s16 }
 0x38e   :  { %2454 = vrot.lane.b32.xlu1 %v5004_v26, %s3156_s16 }
 0x390   :  { %2456 = vrot.lane.b32.xlu0 %v5002_v51, %s3156_s16 }
 0x392   :  { %2458 = vrot.lane.b32.xlu1 %v5016_v31, %s3156_s16 }
 0x394   :  { %2404 = vrot.lane.b32.xlu0 %v5000_v41, %s3157_s17 }
 0x396   :  { %2406 = vrot.lane.b32.xlu1 %v5004_v26, %s3157_s17 }
 0x398   :  { %2408 = vrot.lane.b32.xlu0 %v5002_v51, %s3157_s17 }
 0x39a   :  { %2410 = vrot.lane.b32.xlu1 %v5016_v31, %s3157_s17 }
 0x39c   :  { %2420 = vrot.lane.b32.xlu0 %v5000_v41, %s3158_s18 }
 0x39e   :  { %2422 = vrot.lane.b32.xlu1 %v5004_v26, %s3158_s18 }
 0x3a0   :  { %2424 = vrot.lane.b32.xlu0 %v5002_v51, %s3158_s18 }
 0x3a2   :  { %2426 = vrot.lane.b32.xlu1 %v5016_v31, %s3158_s18 }
 0x3a4   :  { %2372 = vrot.lane.b32.xlu0 %v5000_v41, %s3159_s19 }
 0x3a6   :  { %2374 = vrot.lane.b32.xlu1 %v5004_v26, %s3159_s19 }
 0x3a8   :  { %2376 = vrot.lane.b32.xlu0 %v5002_v51, %s3159_s19 }
 0x3aa   :  { %2378 = vrot.lane.b32.xlu1 %v5016_v31, %s3159_s19 }
 0x3ac   :  { %2388 = vrot.lane.b32.xlu0 %v5000_v41, %s3160_s20 }
 0x3ae   :  { %2390 = vrot.lane.b32.xlu1 %v5004_v26, %s3160_s20  ;;  %v2618_v38 = vpop.permute.xlu0 %2617 }
 0x3b0   :  { %v2620_v40 = vpop.permute.xlu1 %2619  ;;  %2392 = vrot.lane.b32.xlu0 %v5002_v51, %s3160_s20 }
 0x3b1   :  { %v2627_v3 = vsel %vm974_vm2, %v2618_v38, %v2620_v40 }
 0x3b2   :  { %v2629_v6 = vmul.f32 %v2627_v3, %v6088_v50  ;;  %2394 = vrot.lane.b32.xlu1 %v5016_v31, %s3160_s20  ;;  %v2622_v43 = vpop.permute.xlu0 %2621  ;;  %v1623_v50 = vld [vmem:[%s5609_s8 + $0x8] sm:$0xff] }
 0x3b3   :  { %v2626_v60 = vsel %vm974_vm2, %v2620_v40, %v2622_v43 }
 0x3b4   :  { %v2649_v10 = vpack.c.bf16 %v2629_v6, %v2629_v6  ;;  %v2630_v62 = vmul.f32 %v2626_v60, %v6089_v13  ;;  %v2624_v33 = vpop.permute.xlu1 %2623  ;;  %2340 = vrot.lane.b32.xlu0 %v5000_v41, %s3161_s0  ;;  %v6092_v13 = vld [vmem:[#allocation10_spill] sm:$0xff] }
 0x3b5   :  { %v2625_v23 = vsel %vm974_vm2, %v2622_v43, %v2624_v33  ;;  %v2628_v45 = vsel %vm974_vm2, %v2624_v33, %v2618_v38  ;;  %vm6120_vm2 = vcmp.lt.s32.totalorder %v6087_v15, 55 }
 0x3b6   :  { %v2650_v39 = vpack.c.bf16 %v2630_v62, %v2630_v62  ;;  %v2631_v18 = vmul.f32 %v2625_v23, %v6090_v29  ;;  %v2632_v12 = vmul.f32 %v2628_v45, %v6091_v8  ;;  %2342 = vrot.lane.b32.xlu1 %v5004_v26, %s3161_s0  ;;  %v2586_v2 = vpop.permute.xlu0 %2585  ;;  %v2659_v32 = vsel %vm76_vm0, %v2649_v10, 0  ;;  %v3008_v23 = vld [vmem:[%s5613_s12] sm:$0xff]  ;;  %v6093_v45 = vld [vmem:[#allocation9_spill] sm:$0xff]  ;;  %v6094_v29 = vld [vmem:[#allocation11_spill] sm:$0xff] }
 0x3b8   :  { %v2651_v24 = vpack.c.bf16 %v2631_v18, %v2631_v18  ;;  %v2652_v21 = vpack.c.bf16 %v2632_v12, %v2632_v12  ;;  %v2588_v57 = vpop.permute.xlu1 %2587  ;;  %2344 = vrot.lane.b32.xlu0 %v5002_v51, %s3161_s0  ;;  %3109 = vmatprep.subr.msk.bf16.mxu0 %vm76_vm0, %v2650_v39  ;;  %v6095_v12 = vld [vmem:[#allocation8_spill] sm:$0xff] }
 0x3b9   :  { %2677 = vmatpush1.bf16.msra.mxu0 %v2659_v32  ;;  %v2595_v6 = vsel %vm894_vm3, %v2586_v2, %v2588_v57 }
 0x3ba   :  { %2346 = vrot.lane.b32.xlu1 %v5016_v31, %s3161_s0  ;;  %3111 = vmatprep.subr.msk.bf16.mxu1 %vm76_vm0, %v2652_v21  ;;  %v2590_v27 = vpop.permute.xlu0 %2589  ;;  %v2665_v30 = vsel %vm76_vm0, %v2651_v24, 0  ;;  %v2597_v24 = vmul.f32 %v2595_v6, %v6095_v12  ;;  %v6096_v21 = vld [vmem:[#allocation12_spill] sm:$0xff] }
 0x3bb   :  { %2718 = vmatpush1.bf16.msra.mxu1 %v2665_v30  ;;  %v2594_v40 = vsel %vm894_vm3, %v2588_v57, %v2590_v27 }
 0x3bc   :  { %v2592_v14 = vpop.permute.xlu1 %2591  ;;  %2356 = vrot.lane.b32.xlu0 %v5000_v41, %s3162_s21  ;;  %v2598_v39 = vmul.f32 %v2594_v40, %v6093_v45 }
 0x3bd   :  { %v2593_v43 = vsel %vm894_vm3, %v2590_v27, %v2592_v14  ;;  %v2596_v10 = vsel %vm894_vm3, %v2592_v14, %v2586_v2  ;;  %v6097_v27 = vld [vmem:[#allocation14_spill] sm:$0xff]  ;;  %v6098_v14 = vld [vmem:[#allocation15_spill] sm:$0xff]  ;;  %vm6122_vm3 = vmmov %vm6120_vm2 }
 0x3be   :  { %2358 = vrot.lane.b32.xlu1 %v5004_v26, %s3162_s21  ;;  %v2602_v17 = vpop.permute.xlu0 %2601  ;;  %v2599_v57 = vmul.f32 %v2593_v43, %v6096_v21  ;;  %v2600_v30 = vmul.f32 %v2596_v10, %v6097_v27 }
 0x3c0   :  { %v2604_v38 = vpop.permute.xlu1 %2603  ;;  %2360 = vrot.lane.b32.xlu0 %v5002_v51, %s3162_s21 }
 0x3c1   :  { %v2611_v3 = vsel %vm934_vm4, %v2602_v17, %v2604_v38 }
 0x3c2   :  { %2362 = vrot.lane.b32.xlu1 %v5016_v31, %s3162_s21  ;;  %v2606_v60 = vpop.permute.xlu0 %2605  ;;  %v2613_v62 = vmul.f32 %v2611_v3, %v6092_v13  ;;  %v6099_v3 = vld [vmem:[#allocation16_spill] sm:$0xff] }
 0x3c3   :  { %v2610_v33 = vsel %vm934_vm4, %v2604_v38, %v2606_v60 }
 0x3c4   :  { %v2614_v18 = vmul.f32 %v2610_v33, %v6094_v29  ;;  %v2608_v8 = vpop.permute.xlu1 %2607  ;;  %1631 = vperm.xlu0 %3140, %v1623_v50   ;;  %v2645_v50 = vpack.c.bf16 %v2613_v62, %v2597_v24  ;;  %v6100_v29 = vld [vmem:[#allocation18_spill] sm:$0xff]  ;;  %v6102_v24 = vld [vmem:[#allocation21_spill] sm:$0xff] }
 0x3c5   :  { %v2609_v2 = vsel %vm934_vm4, %v2606_v60, %v2608_v8  ;;  %v2612_v32 = vsel %vm934_vm4, %v2608_v8, %v2602_v17  ;;  %vm6124_vm4 = vmmov %vm6120_vm2 }
 0x3c6   :  { %v2615_v38 = vmul.f32 %v2609_v2, %v6098_v14  ;;  %v2616_v40 = vmul.f32 %v2612_v32, %v6099_v3  ;;  %3011 = vperm.xlu1 %3141, %v3008_v23   ;;  %v2570_v13 = vpop.permute.xlu0 %2569  ;;  %v2646_v33 = vpack.c.bf16 %v2614_v18, %v2598_v39  ;;  %v6101_v23 = vld [vmem:[#allocation19_spill] sm:$0xff] }
 0x3c8   :  { %v2647_v45 = vpack.c.bf16 %v2615_v38, %v2599_v57  ;;  %v2572_v6 = vpop.permute.xlu1 %2571  ;;  %2678 = vmatprep.subr.bf16.mxu0 %v2646_v33  ;;  %v2648_v43 = vpack.c.bf16 %v2616_v40, %v2600_v30  ;;  %v6103_v57 = vld [vmem:[#allocation22_spill] sm:$0xff] }
 0x3c9   :  { %v2579_v60 = vsel %vm854_vm5, %v2570_v13, %v2572_v6  ;;  %2679 = vmatpush1.bf16.msra.mxu0 %v2645_v50 }
 0x3ca   :  { %2719 = vmatprep.subr.bf16.mxu1 %v2648_v43  ;;  %v2574_v17 = vpop.permute.xlu0 %2573  ;;  %v2581_v10 = vmul.f32 %v2579_v60, %v6100_v29 }
 0x3cb   :  { %v2578_v8 = vsel %vm854_vm5, %v2572_v6, %v2574_v17  ;;  %2720 = vmatpush1.bf16.msra.mxu1 %v2647_v45 }
 0x3cc   :  { %v2582_v12 = vmul.f32 %v2578_v8, %v6101_v23  ;;  %v2576_v39 = vpop.permute.xlu1 %2575  ;;  %v2641_v30 = vpack.c.bf16 %v2581_v10, %v5000_v41  ;;  %v6104_v41 = vld [vmem:[#allocation23_spill] sm:$0xff] }
 0x3cd   :  { %v2577_v62 = vsel %vm854_vm5, %v2574_v17, %v2576_v39  ;;  %v2580_v18 = vsel %vm854_vm5, %v2576_v39, %v2570_v13  ;;  %vm6125_vm5 = vmmov %vm6120_vm2 }
 0x3ce   :  { %v2583_v21 = vmul.f32 %v2577_v62, %v6102_v24  ;;  %v2584_v2 = vmul.f32 %v2580_v18, %v6103_v57  ;;  %v2538_v32 = vpop.permute.xlu0 %2537  ;;  %v2642_v27 = vpack.c.bf16 %v2582_v12, %v5004_v26  ;;  %v6106_v12 = vld [vmem:[#allocation27_spill] sm:$0xff]  ;;  %v6107_v24 = vld [vmem:[#allocation25_spill] sm:$0xff]  ;;  %v6108_v57 = vld [vmem:[#allocation26_spill] sm:$0xff] }
 0x3d0   :  { %v2643_v14 = vpack.c.bf16 %v2583_v21, %v5002_v51  ;;  %v2540_v38 = vpop.permute.xlu1 %2539  ;;  %2680 = vmatprep.subr.bf16.mxu0 %v2642_v27  ;;  %v2644_v3 = vpack.c.bf16 %v2584_v2, %v5016_v31  ;;  %v6105_v51 = vld [vmem:[#allocation24_spill] sm:$0xff] }
 0x3d1   :  { %2681 = vmatpush1.bf16.msra.mxu0 %v2641_v30  ;;  %v2547_v50 = vsel %vm774_vm6, %v2538_v32, %v2540_v38  ;;  %v6110_v30 = vld [vmem:[#allocation29_spill] sm:$0xff] }
 0x3d2   :  { %2721 = vmatprep.subr.bf16.mxu1 %v2644_v3  ;;  %v2542_v40 = vpop.permute.xlu0 %2541  ;;  %v2550_v6 = vmul.f32 %v2547_v50, %v6104_v41  ;;  %v6111_v3 = vld [vmem:[#allocation30_spill] sm:$0xff] }
 0x3d3   :  { %2722 = vmatpush1.bf16.msra.mxu1 %v2643_v14  ;;  %v2546_v10 = vsel %vm774_vm6, %v2540_v38, %v2542_v40 }
 0x3d4   :  { %v2544_v13 = vpop.permute.xlu1 %2543 }
 0x3d5   :  { %v2545_v31 = vsel %vm774_vm6, %v2542_v40, %v2544_v13  ;;  %v2548_v17 = vsel %vm774_vm6, %v2544_v13, %v2538_v32  ;;  %v6109_v32 = vld [vmem:[#allocation28_spill] sm:$0xff]  ;;  %v2551_v40 = vmul.f32 %v2546_v10, %v6111_v3  ;;  %v6117_v3 = vld [vmem:[#allocation35_spill] sm:$0xff]  ;;  %vm6128_vm6 = vcmp.lt.s32.totalorder %v6087_v15, 57 }
 0x3d6   :  { %v2554_v33 = vpop.permute.xlu0 %2553  ;;  %v2549_v21 = vmul.f32 %v2548_v17, %v6107_v24  ;;  %v2552_v2 = vmul.f32 %v2545_v31, %v6108_v57  ;;  %v6112_v31 = vld [vmem:[#allocation31_spill] sm:$0xff]  ;;  %vm6135_vm12 = vmmov %vm6128_vm6 }
 0x3d8   :  { %v2556_v45 = vpop.permute.xlu1 %2555 }
 0x3d9   :  { %v2563_v26 = vsel %vm814_vm7, %v2554_v33, %v2556_v45 }
 0x3da   :  { %v2566_v43 = vmul.f32 %v2563_v26, %v6105_v51  ;;  %v2558_v60 = vpop.permute.xlu0 %2557 }
 0x3db   :  { %v2562_v29 = vsel %vm814_vm7, %v2556_v45, %v2558_v60 }
 0x3dc   :  { %v2560_v8 = vpop.permute.xlu1 %2559  ;;  %v2638_v23 = vpack.c.bf16 %v2566_v43, %v2550_v6  ;;  %v2567_v39 = vmul.f32 %v2562_v29, %v6106_v12  ;;  %v6113_v29 = vld [vmem:[#allocation32_spill] sm:$0xff] }
 0x3dd   :  { %v2561_v62 = vsel %vm814_vm7, %v2558_v60, %v2560_v8  ;;  %v2564_v18 = vsel %vm814_vm7, %v2560_v8, %v2554_v33  ;;  %vm6129_vm7 = vcmp.lt.s32.totalorder %v6087_v15, 56 }
 0x3de   :  { %v2565_v27 = vmul.f32 %v2564_v18, %v6109_v32  ;;  %v2568_v14 = vmul.f32 %v2561_v62, %v6110_v30  ;;  %2682 = vmatprep.subr.bf16.mxu0 %v2638_v23  ;;  %v2506_v38 = vpop.permute.xlu0 %2505  ;;  %v2639_v26 = vpack.c.bf16 %v2567_v39, %v2551_v40  ;;  %vm6134_vm10 = vmmov %vm6129_vm7 }
 0x3df   :  { %vm6137_vm13 = vmmov %vm6129_vm7 }
 0x3e0   :  { %v2637_v13 = vpack.c.bf16 %v2565_v27, %v2549_v21  ;;  %v2508_v50 = vpop.permute.xlu1 %2507  ;;  %v2640_v45 = vpack.c.bf16 %v2568_v14, %v2552_v2  ;;  %v6114_v21 = vld [vmem:[#allocation37_spill] sm:$0xff]  ;;  %v6116_v14 = vld [vmem:[#allocation34_spill] sm:$0xff]  ;;  %vm6138_vm14 = vmmov %vm6129_vm7 }
 0x3e1   :  { %v2515_v51 = vsel %vm694_vm8, %v2506_v38, %v2508_v50  ;;  %v6115_v27 = vld [vmem:[#allocation33_spill] sm:$0xff] }
 0x3e2   :  { %2683 = vmatpush1.bf16.msra.mxu0 %v2637_v13  ;;  %2723 = vmatprep.subr.bf16.mxu1 %v2640_v45  ;;  %v2510_v41 = vpop.permute.xlu0 %2509  ;;  %v2518_v17 = vmul.f32 %v2515_v51, %v6112_v31  ;;  %v6118_v13 = vld [vmem:[#allocation36_spill] sm:$0xff] }
 0x3e3   :  { %2724 = vmatpush1.bf16.msra.mxu1 %v2639_v26  ;;  %v2514_v62 = vsel %vm694_vm8, %v2508_v50, %v2510_v41  ;;  %v6119_v26 = vld [vmem:[#allocation38_spill] sm:$0xff] }
 0x3e4   :  { %v2512_v33 = vpop.permute.xlu1 %2511 }
 0x3e5   :  { %v2513_v23 = vsel %vm694_vm8, %v2510_v41, %v2512_v33  ;;  %v2516_v12 = vsel %vm694_vm8, %v2512_v33, %v2506_v38  ;;  %v2519_v41 = vmul.f32 %v2514_v62, %v6119_v26  ;;  %vm6132_vm8 = vmmov %vm6128_vm6 }
 0x3e6   :  { %v2522_v6 = vpop.permute.xlu0 %2521  ;;  %v2517_v30 = vmul.f32 %v2516_v12, %v6115_v27  ;;  %v2520_v38 = vmul.f32 %v2513_v23, %v6116_v14  ;;  %v6123_v12 = vld [vmem:[#allocation40_spill] sm:$0xff] }
 0x3e8   :  { %v2524_v43 = vpop.permute.xlu1 %2523 }
 0x3e9   :  { %v2531_v60 = vsel %vm734_vm9, %v2522_v6, %v2524_v43 }
 0x3ea   :  { %v2534_v10 = vmul.f32 %v2531_v60, %v6113_v29  ;;  %v2526_v8 = vpop.permute.xlu0 %2525 }
 0x3eb   :  { %v2530_v39 = vsel %vm734_vm9, %v2524_v43, %v2526_v8 }
 0x3ec   :  { %v2528_v18 = vpop.permute.xlu1 %2527  ;;  %v2634_v24 = vpack.c.bf16 %v2534_v10, %v2518_v17  ;;  %v2535_v57 = vmul.f32 %v2530_v39, %v6114_v21  ;;  %v3108_v10 = vld [vmem:[%s5614_s11 + $0x4] sm:$0xf] }
 0x3ed   :  { %v2529_v2 = vsel %vm734_vm9, %v2526_v8, %v2528_v18  ;;  %v2532_v32 = vsel %vm734_vm9, %v2528_v18, %v2522_v6  ;;  %v6121_v6 = vld [vmem:[#allocation39_spill] sm:$0xff]  ;;  %vm6133_vm9 = vmmov %vm6128_vm6 }
 0x3ee   :  { %v2533_v40 = vmul.f32 %v2532_v32, %v6117_v3  ;;  %v2536_v45 = vmul.f32 %v2529_v2, %v6118_v13  ;;  %2684 = vmatprep.subr.bf16.mxu0 %v2634_v24  ;;  %v2469_v50 = vpop.permute.xlu0 %2468  ;;  %v2635_v60 = vpack.c.bf16 %v2535_v57, %v2519_v41  ;;  %v6126_v57 = vld [vmem:[#allocation41_spill] sm:$0xff]  ;;  %v6127_v32 = vld [vmem:[#allocation42_spill] sm:$0xff] }
 0x3f0   :  { %v2633_v33 = vpack.c.bf16 %v2533_v40, %v2517_v30  ;;  %v2471_v51 = vpop.permute.xlu1 %2470  ;;  %v2636_v43 = vpack.c.bf16 %v2536_v45, %v2520_v38 }
 0x3f1   :  { %v5272_v31 = vsel %vm6120_vm2, %v2469_v50, %v2471_v51  ;;  %vm6144_vm2 = vcmp.lt.s32.totalorder %v6087_v15, 64 }
 0x3f2   :  { %v2481_v17 = vmul.f32 %v5272_v31, %v6121_v6  ;;  %2685 = vmatpush1.bf16.msra.mxu0 %v2633_v33  ;;  %2725 = vmatprep.subr.bf16.mxu1 %v2636_v43  ;;  %v2473_v29 = vpop.permute.xlu0 %2472  ;;  %v6130_v43 = vld [vmem:[#allocation43_spill] sm:$0xff]  ;;  %v6131_v6 = vld [vmem:[#allocation44_spill] sm:$0xff] }
 0x3f3   :  { %v5281_v8 = vsel %vm6122_vm3, %v2471_v51, %v2473_v29  ;;  %2726 = vmatpush1.bf16.msra.mxu1 %v2635_v60  ;;  %vm6145_vm3 = vcmp.lt.s32.totalorder %v6087_v15, 63 }
 0x3f4   :  { %v2501_v23 = vpack.c.bf16 %v2481_v17, %v2481_v17  ;;  %v2482_v39 = vmul.f32 %v5281_v8, %v6123_v12  ;;  %v2475_v62 = vpop.permute.xlu1 %2474 }
 0x3f5   :  { %v5287_v18 = vsel %vm6124_vm4, %v2473_v29, %v2475_v62  ;;  %v5291_v24 = vsel %vm6125_vm5, %v2475_v62, %v2469_v50  ;;  %3110 = vmatmul.mubr.msk.bf16.vlgmr.msra.gmra.mxu0 %vm1034_vm11, %v3108_v10  ;;  %vm6148_vm4 = vmmov %vm6144_vm2 }
 0x3f6   :  { %v2502_v21 = vpack.c.bf16 %v2482_v39, %v2482_v39  ;;  %v2480_v2 = vmul.f32 %v5291_v24, %v6126_v57  ;;  %v2483_v27 = vmul.f32 %v5287_v18, %v6127_v32  ;;  %3113 = vmatprep.subr.msk.bf16.mxu0 %vm76_vm0, %v2501_v23  ;;  %v2437_v30 = vpop.permute.xlu0 %2436  ;;  %3112 = vmatmul.mubr.msk.bf16.vlgmr.msra.gmra.mxu1 %vm1034_vm11, %v3108_v10  ;;  %v6136_v57 = vld [vmem:[#allocation49_spill] sm:$0xff]  ;;  %vm6150_vm5 = vmmov %vm6144_vm2 }
 0x3f7   :  { %2799 = vmatprep.mubr.bf16.mxu0 %v5950_v20  ;;  %2840 = vmatprep.mubr.bf16.mxu1 %v5950_v20 }
 0x3f8   :  { %v2500_v14 = vpack.c.bf16 %v2480_v2, %v2480_v2  ;;  %v2503_v38 = vpack.c.bf16 %v2483_v27, %v2483_v27  ;;  %v2439_v3 = vpop.permute.xlu1 %2438  ;;  %v2762_v45 = vsel %vm76_vm0, %v2502_v21, 0 }
 0x3f9   :  { %v5307_v41 = vsel %vm6128_vm6, %v2437_v30, %v2439_v3  ;;  %vm6151_vm6 = vmmov %vm6145_vm3 }
 0x3fa   :  { %3115 = vmatprep.subr.msk.bf16.mxu1 %vm76_vm0, %v2503_v38  ;;  %v2441_v40 = vpop.permute.xlu0 %2440  ;;  %v2756_v13 = vsel %vm76_vm0, %v2500_v14, 0  ;;  %v2449_v60 = vmul.f32 %v5307_v41, %v6130_v43  ;;  %v6140_v38 = vld [vmem:[#allocation46_spill] sm:$0xff] }
 0x3fb   :  { %2774 = vmatpush1.bf16.msra.mxu0 %v2756_v13  ;;  %2815 = vmatpush1.bf16.msra.mxu1 %v2762_v45  ;;  %v5331_v39 = vsel %vm6135_vm12, %v2439_v3, %v2441_v40  ;;  %v6142_v45 = vld [vmem:[#allocation48_spill] sm:$0xff]  ;;  %v6143_v43 = vld [vmem:[#allocation50_spill] sm:$0xff]  ;;  %vm6163_vm12 = vcmp.lt.s32.totalorder %v6087_v15, 65 }
 0x3fc   :  { %v2443_v50 = vpop.permute.xlu1 %2442 }
 0x3fd   :  { %v5319_v10 = vsel %vm6132_vm8, %v2441_v40, %v2443_v50  ;;  %v5323_v23 = vsel %vm6133_vm9, %v2443_v50, %v2437_v30  ;;  %v6139_v30 = vld [vmem:[#allocation45_spill] sm:$0xff]  ;;  %v6141_v40 = vld [vmem:[#allocation47_spill] sm:$0xff]  ;;  %vm6154_vm8 = vmmov %vm6145_vm3 }
 0x3fe   :  { %v2453_v26 = vpop.permute.xlu0 %2452  ;;  %v2448_v14 = vmul.f32 %v5323_v23, %v6139_v30  ;;  %v2451_v3 = vmul.f32 %v5319_v10, %v6140_v38  ;;  %vm6155_vm9 = vmmov %vm6145_vm3 }
 0x400   :  { %v2455_v33 = vpop.permute.xlu1 %2454 }
 0x401   :  { %v5311_v51 = vsel %vm6129_vm7, %v2453_v26, %v2455_v33  ;;  %vm6152_vm7 = vmmov %vm6144_vm2 }
 0x402   :  { %v2465_v17 = vmul.f32 %v5311_v51, %v6131_v6  ;;  %v2457_v29 = vpop.permute.xlu0 %2456 }
 0x403   :  { %v5327_v12 = vsel %vm6134_vm10, %v2455_v33, %v2457_v29  ;;  %vm6161_vm10 = vcmp.lt.s32.totalorder %v6087_v15, 71 }
 0x404   :  { %v2459_v62 = vpop.permute.xlu1 %2458  ;;  %v2497_v21 = vpack.c.bf16 %v2465_v17, %v2449_v60  ;;  %v2466_v2 = vmul.f32 %v5327_v12, %v6136_v57  ;;  %v2450_v60 = vmul.f32 %v5331_v39, %v6143_v43 }
 0x405   :  { %v5337_v32 = vsel %vm6137_vm13, %v2457_v29, %v2459_v62  ;;  %v5341_v27 = vsel %vm6138_vm14, %v2459_v62, %v2453_v26  ;;  %vm6167_vm13 = vmmov %vm6161_vm10 }
 0x406   :  { %v2464_v13 = vmul.f32 %v5341_v27, %v6141_v40  ;;  %v2467_v50 = vmul.f32 %v5337_v32, %v6142_v45  ;;  %2775 = vmatprep.subr.bf16.mxu0 %v2497_v21  ;;  %v2405_v33 = vpop.permute.xlu0 %2404  ;;  %v2498_v29 = vpack.c.bf16 %v2466_v2, %v2450_v60  ;;  %v6146_v45 = vld [vmem:[#allocation51_spill] sm:$0xff]  ;;  %vm6169_vm14 = vmmov %vm6161_vm10 }
 0x408   :  { %v2496_v6 = vpack.c.bf16 %v2464_v13, %v2448_v14  ;;  %v2407_v26 = vpop.permute.xlu1 %2406  ;;  %v2499_v17 = vpack.c.bf16 %v2467_v50, %v2451_v3  ;;  %v6147_v3 = vld [vmem:[#allocation52_spill] sm:$0xff] }
 0x409   :  { %v5355_v38 = vsel %vm6144_vm2, %v2405_v33, %v2407_v26  ;;  %vm6171_vm2 = vmmov %vm6163_vm12 }
 0x40a   :  { %2776 = vmatpush1.bf16.msra.mxu0 %v2496_v6  ;;  %2816 = vmatprep.subr.bf16.mxu1 %v2499_v17  ;;  %v2409_v62 = vpop.permute.xlu0 %2408  ;;  %v2417_v14 = vmul.f32 %v5355_v38, %v6146_v45  ;;  %v6153_v45 = vld [vmem:[#allocation59_spill] sm:$0xff] }
 0x40b   :  { %2817 = vmatpush1.bf16.msra.mxu1 %v2498_v29  ;;  %v5379_v6 = vsel %vm6152_vm7, %v2407_v26, %v2409_v62 }
 0x40c   :  { %v2411_v57 = vpop.permute.xlu1 %2410 }
 0x40d   :  { %v5367_v50 = vsel %vm6148_vm4, %v2409_v62, %v2411_v57  ;;  %v5371_v43 = vsel %vm6150_vm5, %v2411_v57, %v2405_v33  ;;  %v6156_v57 = vld [vmem:[#allocation53_spill] sm:$0xff]  ;;  %v6158_v62 = vld [vmem:[#allocation55_spill] sm:$0xff]  ;;  %vm6175_vm4 = vmmov %vm6171_vm2 }
 0x40e   :  { %v2421_v30 = vpop.permute.xlu0 %2420  ;;  %6149 = vst [vmem:[#allocation82_spill] sm:$0xff] %v5367_v50  ;;  %v2419_v26 = vmul.f32 %v5367_v50, %v6157_v37  ;;  %vm6177_vm5 = vmmov %vm6171_vm2 }
 0x410   :  { %v2423_v40 = vpop.permute.xlu1 %2422 }
 0x411   :  { %v5359_v21 = vsel %vm6145_vm3, %v2421_v30, %v2423_v40  ;;  %vm6172_vm3 = vmmov %vm6161_vm10 }
 0x412   :  { %v2433_v2 = vmul.f32 %v5359_v21, %v6147_v3  ;;  %v2425_v13 = vpop.permute.xlu0 %2424 }
 0x413   :  { %v5375_v60 = vsel %vm6151_vm6, %v2423_v40, %v2425_v13  ;;  %v2416_v40 = vmul.f32 %v5371_v43, %v6156_v57 }
 0x414   :  { %v2427_v17 = vpop.permute.xlu1 %2426  ;;  %v2493_v29 = vpack.c.bf16 %v2433_v2, %v2417_v14  ;;  %v2434_v3 = vmul.f32 %v5375_v60, %v6153_v45  ;;  %v6159_v2 = vld [vmem:[#allocation56_spill] sm:$0xff] }
 0x415   :  { %v5385_v49 = vsel %vm6154_vm8, %v2425_v13, %v2427_v17  ;;  %v5389_v33 = vsel %vm6155_vm9, %v2427_v17, %v2421_v30  ;;  %v6160_v13 = vld [vmem:[#allocation60_spill] sm:$0xff] }
 0x416   :  { %v2432_v14 = vmul.f32 %v5389_v33, %v6158_v62  ;;  %v2435_v45 = vmul.f32 %v5385_v49, %v6159_v2  ;;  %2777 = vmatprep.subr.bf16.mxu0 %v2493_v29  ;;  %v2373_v4 = vpop.permute.xlu0 %2372  ;;  %v2418_v56 = vmul.f32 %v5379_v6, %v6160_v13  ;;  %v6165_v13 = vld [vmem:[#allocation63_spill] sm:$0xff] }
 0x418   :  { %v2492_v46 = vpack.c.bf16 %v2432_v14, %v2416_v40  ;;  %v2375_v30 = vpop.permute.xlu1 %2374  ;;  %v2495_v17 = vpack.c.bf16 %v2435_v45, %v2419_v26  ;;  %v2494_v55 = vpack.c.bf16 %v2434_v3, %v2418_v56  ;;  %v6166_v26 = vld [vmem:[#allocation64_spill] sm:$0xff] }
 0x419   :  { %v5403_v62 = vsel %vm6161_vm10, %v2373_v4, %v2375_v30 }
 0x41a   :  { %2778 = vmatpush1.bf16.msra.mxu0 %v2492_v46  ;;  %2818 = vmatprep.subr.bf16.mxu1 %v2495_v17  ;;  %v2377_v57 = vpop.permute.xlu0 %2376  ;;  %6162 = vst [vmem:[#allocation65_spill] sm:$0xff] %v5403_v62  ;;  %v2385_v40 = vmul.f32 %v5403_v62, %v6165_v13 }
 0x41b   :  { %2819 = vmatpush1.bf16.msra.mxu1 %v2494_v55  ;;  %v5427_v45 = vsel %vm6172_vm3, %v2375_v30, %v2377_v57 }
 0x41c   :  { %v2379_v37 = vpop.permute.xlu1 %2378  ;;  %6173 = vst [vmem:[#allocation81_spill] sm:$0xff] %v5427_v45 }
 0x41d   :  { %v5415_v55 = vsel %vm6167_vm13, %v2377_v57, %v2379_v37  ;;  %v5419_v3 = vsel %vm6169_vm14, %v2379_v37, %v2373_v4  ;;  %v6178_v37 = vld [vmem:[#allocation68_spill] sm:$0xff]  ;;  %v6180_v57 = vld [vmem:[#allocation71_spill] sm:$0xff] }
 0x41e   :  { %v2389_v7 = vpop.permute.xlu0 %2388  ;;  %6168 = vst [vmem:[#allocation74_spill] sm:$0xff] %v5415_v55  ;;  %6170 = vst [vmem:[#allocation75_spill] sm:$0xff] %v5419_v3 }
 0x420   :  { %v2391_v2 = vpop.permute.xlu1 %2390 }
 0x421   :  { %v5407_v29 = vsel %vm6163_vm12, %v2389_v7, %v2391_v2 }
 0x422   :  { %6164 = vst [vmem:[#allocation80_spill] sm:$0xff] %v5407_v29  ;;  %v2401_v46 = vmul.f32 %v5407_v29, %v6166_v26  ;;  %v2393_v56 = vpop.permute.xlu0 %2392  ;;  %v6174_v26 = vld [vmem:[#allocation76_spill] sm:$0xff]  ;;  %v6179_v29 = vld [vmem:[#allocation69_spill] sm:$0xff] }
 0x423   :  { %v5423_v14 = vsel %vm6171_vm2, %v2391_v2, %v2393_v56  ;;  %v2384_v2 = vmul.f32 %v5419_v3, %v6178_v37  ;;  %v2387_v30 = vmul.f32 %v5415_v55, %v6179_v29  ;;  %v6190_v3 = vld [vmem:[#allocation77_spill] sm:$0xff] }
 0x424   :  { %v2395_v17 = vpop.permute.xlu1 %2394  ;;  %v2489_v13 = vpack.c.bf16 %v2401_v46, %v2385_v40  ;;  %v2402_v62 = vmul.f32 %v5423_v14, %v6174_v26  ;;  %v6181_v46 = vld [vmem:[#allocation72_spill] sm:$0xff] }
 0x425   :  { %v5433_v19 = vsel %vm6175_vm4, %v2393_v56, %v2395_v17  ;;  %v5437_v4 = vsel %vm6177_vm5, %v2395_v17, %v2389_v7  ;;  %v6182_v56 = vld [vmem:[#allocation79_spill] sm:$0xff] }
 0x426   :  { %6176 = vst [vmem:[#allocation106_spill] sm:$0xff] %v5433_v19  ;;  %v2400_v40 = vmul.f32 %v5437_v4, %v6180_v57  ;;  %v2403_v26 = vmul.f32 %v5433_v19, %v6181_v46  ;;  %2779 = vmatprep.subr.bf16.mxu0 %v2489_v13  ;;  %v2341_v16 = vpop.permute.xlu0 %2340  ;;  %v2386_v34 = vmul.f32 %v5427_v45, %v6182_v56  ;;  %v6185_v56 = vld [vmem:[#allocation96_spill] sm:$0xff] }
 0x428   :  { %v2488_v44 = vpack.c.bf16 %v2400_v40, %v2384_v2  ;;  %v2343_v7 = vpop.permute.xlu1 %2342  ;;  %v2491_v17 = vpack.c.bf16 %v2403_v26, %v2387_v30  ;;  %v2490_v50 = vpack.c.bf16 %v2402_v62, %v2386_v34  ;;  %v6186_v30 = vld [vmem:[#allocation97_spill] sm:$0xff]  ;;  %v6187_v62 = vld [vmem:[#allocation66_spill] sm:$0xff] }
 0x429   :  { %v5451_v57 = vsel %vm313_vm15, %v2341_v16, %v2343_v7 }
 0x42a   :  { %2780 = vmatpush1.bf16.msra.mxu0 %v2488_v44  ;;  %2820 = vmatprep.subr.bf16.mxu1 %v2491_v17  ;;  %v2345_v37 = vpop.permute.xlu0 %2344  ;;  %6183 = vst [vmem:[#allocation100_spill] sm:$0xff] %v5451_v57  ;;  %v2353_v2 = vmul.f32 %v5451_v57, %v6185_v56  ;;  %v6188_v56 = vld [vmem:[#allocation67_spill] sm:$0xff] }
 0x42b   :  { %2821 = vmatpush1.bf16.msra.mxu1 %v2490_v50  ;;  %v2881_v50 = vmul.f32 %v5272_v31, %v6187_v62  ;;  %v2882_v57 = vmul.f32 %v5281_v8, %v6188_v56  ;;  %v5481_v31 = vsel %vm313_vm15, %v2343_v7, %v2345_v37 }
 0x42c   :  { %v2347_v29 = vpop.permute.xlu1 %2346 }
 0x42d   :  { %v5465_v40 = vsel %vm313_vm15, %v2345_v37, %v2347_v29  ;;  %v5469_v26 = vsel %vm313_vm15, %v2347_v29, %v2341_v16  ;;  %v2884_v16 = vmul.f32 %v5291_v24, %v6190_v3  ;;  %v6191_v29 = vld [vmem:[#allocation107_spill] sm:$0xff]  ;;  %v6193_v37 = vld [vmem:[#allocation104_spill] sm:$0xff] }
 0x42e   :  { %v2357_v55 = vpop.permute.xlu0 %2356 }
 0x430   :  { %v2359_v46 = vpop.permute.xlu1 %2358 }
 0x431   :  { %v5455_v13 = vsel %vm352_vm1, %v2357_v55, %v2359_v46 }
 0x432   :  { %6184 = vst [vmem:[#allocation109_spill] sm:$0xff] %v5455_v13  ;;  %v2369_v44 = vmul.f32 %v5455_v13, %v6186_v30  ;;  %v2361_v34 = vpop.permute.xlu0 %2360  ;;  %v6189_v30 = vld [vmem:[#allocation73_spill] sm:$0xff] }
 0x433   :  { %v5473_v17 = vsel %vm352_vm1, %v2359_v46, %v2361_v34  ;;  %v2883_v13 = vmul.f32 %v5287_v18, %v6189_v30  ;;  %v6192_v18 = vld [vmem:[#allocation103_spill] sm:$0xff]  ;;  %v2902_v30 = vpack.c.bf16 %v2882_v57, %v2882_v57 }
 0x434   :  { %v2363_v62 = vpop.permute.xlu1 %2362  ;;  %v2485_v19 = vpack.c.bf16 %v2369_v44, %v2353_v2  ;;  %v2370_v45 = vmul.f32 %v5473_v17, %v6191_v29  ;;  %v2352_v7 = vmul.f32 %v5469_v26, %v6192_v18  ;;  %v2355_v2 = vmul.f32 %v5465_v40, %v6193_v37  ;;  %v6194_v44 = vld [vmem:[#allocation108_spill] sm:$0xff] }
 0x435   :  { %v5489_v46 = vsel %vm352_vm1, %v2361_v34, %v2363_v62  ;;  %v5493_v8 = vsel %vm352_vm1, %v2363_v62, %v2357_v55  ;;  %v2354_v34 = vmul.f32 %v5481_v31, %v4293_v0  ;;  %v2901_v55 = vpack.c.bf16 %v2881_v50, %v2881_v50 }
 0x436   :  { %v2368_v24 = vmul.f32 %v5493_v8, %v6194_v44  ;;  %v2371_v3 = vmul.f32 %v5489_v46, %v6055_v47  ;;  %2781 = vmatprep.subr.bf16.mxu0 %v2485_v19  ;;  %v2878_v62 = vmul.f32 %v5327_v12, %v4203_v9  ;;  %v2903_v18 = vpack.c.bf16 %v2883_v13, %v2883_v13  ;;  %v2504_v47 = vld [vmem:[%s5614_s11] sm:$0xf]  ;;  %v6204_v13 = vld [vmem:[#allocation112_spill] sm:$0xff] }
 0x437   :  { %v2486_v29 = vpack.c.bf16 %v2370_v45, %v2354_v34  ;;  %v2904_v37 = vpack.c.bf16 %v2884_v16, %v2884_v16  ;;  %v2880_v44 = vmul.f32 %v5341_v27, %v4209_v59  ;;  %v2874_v0 = vmul.f32 %v5331_v39, %v4179_v5  ;;  %v6201_v45 = vld [vmem:[#allocation80_spill] sm:$0xff]  ;;  %v6205_v16 = vld [vmem:[#allocation90_spill] sm:$0xff] }
 0x438   :  { %v2484_v56 = vpack.c.bf16 %v2368_v24, %v2352_v7  ;;  %v2487_v15 = vpack.c.bf16 %v2371_v3, %v2355_v2  ;;  %v2876_v9 = vmul.f32 %v5323_v23, %v4192_v25  ;;  %v2877_v19 = vmul.f32 %v5311_v51, %v4195_v61  ;;  %v6206_v7 = vld [vmem:[#allocation65_spill] sm:$0xff]  ;;  %v6207_v24 = vld [vmem:[#allocation114_spill] sm:$0xff] }
 0x439   :  { %v2879_v59 = vmul.f32 %v5337_v32, %v4206_v22  ;;  %v2873_v12 = vmul.f32 %v5307_v41, %v4142_v1  ;;  %v2870_v5 = vmul.f32 %v5375_v60, %v4239_v52  ;;  %v2911_v39 = vsel %vm76_vm0, %v2901_v55, 0 }
 0x43a   :  { %2782 = vmatpush1.bf16.msra.mxu0 %v2484_v56  ;;  %2822 = vmatprep.subr.bf16.mxu1 %v2487_v15  ;;  %v2898_v27 = vpack.c.bf16 %v2878_v62, %v2874_v0  ;;  %v2875_v25 = vmul.f32 %v5319_v10, %v4182_v53  ;;  %v2872_v61 = vmul.f32 %v5389_v33, %v5943_v54  ;;  %v2917_v22 = vsel %vm76_vm0, %v2903_v18, 0  ;;  %v6199_v33 = vld [vmem:[#allocation75_spill] sm:$0xff]  ;;  %v6208_v56 = vld [vmem:[#allocation92_spill] sm:$0xff]  ;;  %v6209_v15 = vld [vmem:[#allocation74_spill] sm:$0xff] }
 0x43b   :  { %2823 = vmatpush1.bf16.msra.mxu1 %v2486_v29  ;;  %3118 = vmatprep.subr.msk.bf16.mxu0 %vm76_vm0, %v2902_v30  ;;  %v2900_v1 = vpack.c.bf16 %v2880_v44, %v2876_v9  ;;  %v2866_v52 = vmul.f32 %v5379_v6, %v5941_v48  ;;  %v2897_v41 = vpack.c.bf16 %v2877_v19, %v2873_v12  ;;  %v6198_v6 = vld [vmem:[#allocation93_spill] sm:$0xff]  ;;  %v6210_v30 = vld [vmem:[#allocation102_spill] sm:$0xff]  ;;  %v6216_v12 = vld [vmem:[#allocation100_spill] sm:$0xff] }
 0x43c   :  { %3120 = vmatprep.subr.msk.bf16.mxu1 %vm76_vm0, %v2904_v37  ;;  %v2899_v51 = vpack.c.bf16 %v2879_v59, %v2875_v25  ;;  %v2868_v23 = vmul.f32 %v5371_v43, %v6056_v63  ;;  %v2869_v53 = vmul.f32 %v5359_v21, %v6057_v28  ;;  %v2871_v54 = vmul.f32 %v5385_v49, %v6058_v36  ;;  %v6195_v21 = vld [vmem:[#allocation82_spill] sm:$0xff]  ;;  %v6196_v36 = vld [vmem:[#allocation91_spill] sm:$0xff]  ;;  %v6197_v49 = vld [vmem:[#allocation81_spill] sm:$0xff] }
 0x43d   :  { %3114 = vmatmul.mubr.msk.bf16.vlgmr.msra.gmra.mxu0 %vm1034_vm11, %v2504_v47  ;;  %v2862_v10 = vmul.f32 %v5423_v14, %v6059_v58  ;;  %v2894_v32 = vpack.c.bf16 %v2870_v5, %v2866_v52  ;;  %v2865_v48 = vmul.f32 %v5355_v38, %v6060_v11  ;;  %v2864_v63 = vmul.f32 %v5437_v4, %v6061_v35  ;;  %v6200_v14 = vld [vmem:[#allocation94_spill] sm:$0xff]  ;;  %v6212_v37 = vld [vmem:[#allocation111_spill] sm:$0xff]  ;;  %v6213_v44 = vld [vmem:[#allocation109_spill] sm:$0xff] }
 0x43e   :  { %3116 = vmatmul.mubr.msk.bf16.vlgmr.msra.gmra.mxu1 %vm1034_vm11, %v2504_v47  ;;  %2929 = vmatpush1.bf16.msra.mxu0 %v2911_v39  ;;  %v2896_v28 = vpack.c.bf16 %v2872_v61, %v2868_v23  ;;  %v2867_v43 = vmul.f32 %v6195_v21, %v6062_v42  ;;  %v2858_v60 = vmul.f32 %v6197_v49, %v6196_v36  ;;  %v6202_v35 = vld [vmem:[#allocation98_spill] sm:$0xff]  ;;  %v6215_v59 = vld [vmem:[#allocation101_spill] sm:$0xff]  ;;  %v3117_v61 = vld [vmem:[%s5614_s11 + $0x8] sm:$0xf] }
 0x43f   :  { %2930 = vmatprep.subr.bf16.mxu0 %v2898_v27  ;;  %2970 = vmatpush1.bf16.msra.mxu1 %v2917_v22  ;;  %v2893_v58 = vpack.c.bf16 %v2869_v53, %v2865_v48  ;;  %v2861_v11 = vmul.f32 %v6201_v45, %v6200_v14  ;;  %v6203_v4 = vld [vmem:[#allocation106_spill] sm:$0xff]  ;;  %v2854_v42 = vmul.f32 %v5473_v17, %v6204_v13  ;;  %v6217_v39 = vld [vmem:[#allocation105_spill] sm:$0xff] }
 0x440   :  { %2971 = vmatprep.subr.bf16.mxu1 %v2900_v1  ;;  %2954 = vmatprep.mubr.bf16.mxu0 %v5950_v20  ;;  %v2895_v38 = vpack.c.bf16 %v2871_v54, %v2867_v43  ;;  %v2863_v57 = vmul.f32 %v6203_v4, %v6202_v35  ;;  %v2890_v50 = vpack.c.bf16 %v2862_v10, %v2858_v60  ;;  %v6211_v18 = vld [vmem:[#allocation110_spill] sm:$0xff]  ;;  %v1632_v43 = vpop.permute.xlu0 %1631 }
 0x441   :  { %2995 = vmatprep.mubr.bf16.mxu1 %v5950_v20  ;;  %v2860_v20 = vmul.f32 %v6199_v33, %v6198_v6  ;;  %v2857_v2 = vmul.f32 %v6206_v7, %v6205_v16  ;;  %v2856_v3 = vmul.f32 %v5493_v8, %v6207_v24  ;;  %v2859_v55 = vmul.f32 %v6209_v15, %v6208_v56  ;;  %v6214_v8 = vld [vmem:[#allocation113_spill] sm:$0xff]  ;;  %v6219_v45 = vld [vmem:[#allocation78_spill] sm:$0xff] }
 0x442   :  { %2931 = vmatpush1.bf16.msra.mxu0 %v2897_v41  ;;  %v2850_v62 = vmul.f32 %v5481_v31, %v6210_v30  ;;  %v2852_v17 = vmul.f32 %v5469_v26, %v6211_v18  ;;  %v2853_v47 = vmul.f32 %v6213_v44, %v6212_v37  ;;  %v2855_v9 = vmul.f32 %v5489_v46, %v6214_v8  ;;  %v6220_v13 = vld [vmem:[#allocation58_spill] sm:$0xff] }
 0x443   :  { %2932 = vmatprep.subr.bf16.mxu0 %v2894_v32  ;;  %2972 = vmatpush1.bf16.msra.mxu1 %v2899_v51  ;;  %v2892_v34 = vpack.c.bf16 %v2864_v63, %v2860_v20  ;;  %v2889_v29 = vpack.c.bf16 %v2861_v11, %v2857_v2  ;;  %v2891_v0 = vpack.c.bf16 %v2863_v57, %v2859_v55  ;;  %v6221_v2 = vld [vmem:[#allocation70_spill] sm:$0xff] }
 0x444   :  { %2973 = vmatprep.subr.bf16.mxu1 %v2896_v28  ;;  %v2886_v19 = vpack.c.bf16 %v2854_v42, %v2850_v62  ;;  %v2849_v5 = vmul.f32 %v6216_v12, %v6215_v59  ;;  %v2888_v31 = vpack.c.bf16 %v2856_v3, %v2852_v17  ;;  %v2851_v27 = vmul.f32 %v5465_v40, %v6217_v39 }
 0x445   :  { %v1640_v11 = vadd.f32 %v1632_v43, %v6219_v45  ;;  %v1639_v42 = vadd.f32 %v1632_v43, %v6220_v13  ;;  %v1641_v24 = vadd.f32 %v1632_v43, %v6221_v2 }
 0x446   :  { %2933 = vmatpush1.bf16.msra.mxu0 %v2893_v58  ;;  %v2885_v26 = vpack.c.bf16 %v2853_v47, %v2849_v5  ;;  %v2887_v25 = vpack.c.bf16 %v2855_v9, %v2851_v27  ;;  %v6218_v58 = vld [vmem:[#allocation57_spill] sm:$0xff] }
 0x447   :  { %2934 = vmatprep.subr.bf16.mxu0 %v2890_v50  ;;  %2974 = vmatpush1.bf16.msra.mxu1 %v2895_v38  ;;  %v1638_v6 = vadd.f32 %v1632_v43, %v6218_v58  ;;  %v3012_v38 = vpop.permute.xlu1 %3011  ;;  %v1647_v44 = vmax.f32 %v1639_v42, 0.0  ;;  %v1649_v9 = vmax.f32 %v1641_v24, 0.0 }
 0x448   :  { %2975 = vmatprep.subr.bf16.mxu1 %v2892_v34 }
 0x449   :  { %v1646_v15 = vmax.f32 %v1638_v6, 0.0 }
 0x44a   :  { %2935 = vmatpush1.bf16.msra.mxu0 %v2889_v29  ;;  %v1648_v29 = vmax.f32 %v1640_v11, 0.0 }
 0x44b   :  { %2936 = vmatprep.subr.bf16.mxu0 %v2886_v19  ;;  %2976 = vmatpush1.bf16.msra.mxu1 %v2891_v0 }
 0x44c   :  { %2977 = vmatprep.subr.bf16.mxu1 %v2888_v31 }
 0x44e   :  { %2937 = vmatpush1.bf16.msra.mxu0 %v2885_v26 }
 0x44f   :  { %2978 = vmatpush1.bf16.msra.mxu1 %v2887_v25 }
 0x451   :  { %3119 = vmatmul.mubr.msk.bf16.vlgmr.msra.gmra.mxu0 %vm1034_vm11, %v3117_v61 }
 0x452   :  { %3121 = vmatmul.mubr.msk.bf16.vlgmr.msra.gmra.mxu1 %vm1034_vm11, %v3117_v61 }
 0x4b5   :  { %v2704_v46 = vpop.f32.mrf.mxu0 }
 0x4b6   :  { %v2745_v22 = vpop.f32.mrf.mxu1 }
 0x4b7   :  { %v2706_v1 = vpop.f32.mrf.mxu0 }
 0x4b8   :  { %v2747_v52 = vpop.f32.mrf.mxu1 }
 0x4b9   :  { %v2708_v40 = vpop.f32.mrf.mxu0 }
 0x4ba   :  { %v2749_v41 = vpop.f32.mrf.mxu1 }
 0x4bb   :  { %v2709_v51 = vpop.f32.mrf.mxu0 }
 0x4bc   :  { %v2750_v23 = vpop.f32.mrf.mxu1 }
 0x4fd   :  { %v2801_v53 = vpop.f32.mrf.mxu0 }
 0x4fe   :  { %v2842_v54 = vpop.f32.mrf.mxu1  ;;  %v2802_v36 = vadd.f32 %v2801_v53, %v2704_v46 }
 0x4ff   :  { %v2803_v10 = vpop.f32.mrf.mxu0  ;;  %v2843_v49 = vadd.f32 %v2842_v54, %v2745_v22 }
 0x500   :  { %v2844_v32 = vpop.f32.mrf.mxu1  ;;  %v2804_v33 = vadd.f32 %v2803_v10, %v2706_v1 }
 0x501   :  { %v2805_v48 = vpop.f32.mrf.mxu0  ;;  %v2845_v35 = vadd.f32 %v2844_v32, %v2747_v52 }
 0x502   :  { %v2846_v63 = vpop.f32.mrf.mxu1 }
 0x503   :  { %v2806_v28 = vpop.f32.mrf.mxu0 }
 0x504   :  { %v2847_v21 = vpop.f32.mrf.mxu1 }
 0x511   :  { %v2956_v60 = vpop.f32.mrf.mxu0 }
 0x512   :  { %v3004_v20 = vadd.f32 %v2956_v60, %v2802_v36  ;;  %v2997_v14 = vpop.f32.mrf.mxu1 }
 0x513   :  { %v3006_v4 = vadd.f32 %v2997_v14, %v2843_v49  ;;  %v2958_v57 = vpop.f32.mrf.mxu0 }
 0x514   :  { %v3014_v50 = vadd.f32 %v3012_v38, %v3004_v20  ;;  %v3005_v16 = vadd.f32 %v2958_v57, %v2804_v33  ;;  %v2999_v7 = vpop.f32.mrf.mxu1 }
 0x515   :  { %v3016_v3 = vadd.f32 %v3012_v38, %v3006_v4  ;;  %v3007_v34 = vadd.f32 %v2999_v7, %v2845_v35  ;;  %v2960_v56 = vpop.f32.mrf.mxu0 }
 0x516   :  { %v3018_v55 = vmax.f32 %v3014_v50, 0.0  ;;  %v3015_v30 = vadd.f32 %v3012_v38, %v3005_v16  ;;  %v3001_v62 = vpop.f32.mrf.mxu1 }
 0x517   :  { %v3020_v18 = vmax.f32 %v3016_v3, 0.0  ;;  %v3017_v17 = vadd.f32 %v3012_v38, %v3007_v34  ;;  %v2961_v37 = vpop.f32.mrf.mxu0 }
 0x518   :  { %v3022_v47 = vadd.f32 %v3018_v55, %v1646_v15  ;;  %v3019_v0 = vmax.f32 %v3015_v30, 0.0  ;;  %v3002_v8 = vpop.f32.mrf.mxu1 }
 0x519   :  { %v3024_v19 = vadd.f32 %v3020_v18, %v1648_v29  ;;  %v3021_v59 = vmax.f32 %v3017_v17, 0.0 }
 0x51a   :  { %3034 = vst [vmem:[%s5612_s13 + $0x40] sm:$0xff] %v3022_v47  ;;  %v3023_v12 = vadd.f32 %v3019_v0, %v1647_v44 }
 0x51b   :  { %3036 = vst [vmem:[%s5612_s13 + $0x50] sm:$0xff] %v3024_v19  ;;  %v3025_v5 = vadd.f32 %v3021_v59, %v1649_v9 }
 0x51c   :  { %3035 = vst [vmem:[%s5612_s13 + $0x48] sm:$0xff] %v3023_v12 }
 0x51d   :  { %3037 = vst [vmem:[%s5612_s13 + $0x58] sm:$0xff] %v3025_v5 }

</bundles_post_ra>
